<compile_context>
chip_gen: v7x
topology: tpu7x:2x2x1
jax: 0.10.0
libtpu: 0.0.40
codegen_flags: <defaults>
</compile_context>

<pallas_src>
import functools
import numpy as np
import jax
import jax.numpy as jnp
from jax.experimental import pallas as pl
from jax.experimental.pallas import tpu as pltpu

VMEM = pltpu.MemorySpace.VMEM


def _full_vmem(n):
    return [pl.BlockSpec(memory_space=VMEM) for _ in range(n)]


# --------------------- kernel 1: edge-net + NNConv x2 (fused, whole batch) ---------------------

def _nnconv2_kernel(x_ref, ea_ref, g_ref, s_ref,
                    nn1w_ref, nn1b_ref, root1_ref, b1_ref,
                    nn2w_ref, nn2b_ref, root2_ref, b2_ref,
                    o_ref, *, De):
    f32 = jnp.float32
    x = x_ref[...]            # (Ns, D0)  node features in padded per-graph slot layout
    ea = ea_ref[...]          # (E, De)
    g = g_ref[...]            # (E, Ns)   one-hot gather of edge sources
    s = s_ref[...]            # (Ns, E)   one-hot scatter-add to edge targets

    def nnconv(xin, nnw_ref, nnb_ref, root_ref, bias_ref):
        # NNConv(aggr='add') with the edge-net Linear folded in:
        #   W_e = reshape(ea[e] @ nn_w + nn_b) ;  msg_e = x_src[e] @ W_e
        #   => msgs = x_src @ nn_b_r + sum_d (ea[:, d] * x_src) @ nn_w_r[d]
        x_src = jnp.dot(g, xin, preferred_element_type=f32)                  # (E, Fin)
        msgs = jnp.dot(x_src, nnb_ref[...], preferred_element_type=f32)      # bias part
        for d in range(De):
            msgs = msgs + jnp.dot(ea[:, d:d + 1] * x_src, nnw_ref[d],
                                  preferred_element_type=f32)
        agg = jnp.dot(s, msgs, preferred_element_type=f32)                   # scatter-add
        out = agg + jnp.dot(xin, root_ref[...], preferred_element_type=f32) + bias_ref[...]
        return jnp.maximum(out, 0.0)                                         # module-level ReLU

    h1 = nnconv(x, nn1w_ref, nn1b_ref, root1_ref, b1_ref)
    o_ref[...] = nnconv(h1, nn2w_ref, nn2b_ref, root2_ref, b2_ref)


def pallas_nnconv2(x_slots, edge_attr, gmat, smat,
                   nn1w, nn1b, root1, b1, nn2w, nn2b, root2, b2):
    De = edge_attr.shape[1]
    Ns = x_slots.shape[0]
    H2 = root2.shape[1]
    return pl.pallas_call(
        functools.partial(_nnconv2_kernel, De=De),
        out_shape=jax.ShapeDtypeStruct((Ns, H2), jnp.float32),
        in_specs=_full_vmem(12),
        out_specs=pl.BlockSpec(memory_space=VMEM),
    )(x_slots, edge_attr, gmat, smat, nn1w, nn1b, root1, b1, nn2w, nn2b, root2, b2)


# ------------- kernel 2: per-graph fused attn-scatter + ARMA + attn-sum + MLP head -------------

def _per_graph_kernel(xg_ref, nmask_ref, sam_ref, ft_ref, adj_ref, amask_ref,
                      awa_ref, aba_ref,
                      wit_ref, wib_ref, wbd_ref, wrt_ref, wrb_ref, bc_ref,
                      awm_ref, abm_ref,
                      l1w_ref, l1b_ref, l2w_ref, l2b_ref, l3w_ref, l3b_ref, l4w_ref, l4b_ref,
                      o_ref, *, K, L, G1):
    f32 = jnp.float32
    x = xg_ref[0]          # (N_pad, H2)
    nmask = nmask_ref[0]   # (N_pad, 1)  1 for real atoms of this graph
    sam = sam_ref[0]       # (A_pad, N_pad) one-hot scatter atoms -> amino acids
    ft = ft_ref[0]         # (A_pad, 95) amino-acid features (zero padded)
    adj = adj_ref[0]       # (A_pad, A_pad) gcn-normalized chain adjacency (zero padded)
    amask = amask_ref[0]   # (A_pad, 1)  1 for real amino acids

    # --- AttentionReadoutAtom: softmax over this graph's atoms, scatter-sum by monomer label ---
    logits = jnp.dot(x, awa_ref[...], preferred_element_type=f32) + aba_ref[...]
    logits = jnp.where(nmask > 0.0, logits, jnp.full_like(logits, -1e30))
    e = jnp.exp(logits - jnp.max(logits, axis=0, keepdims=True))
    attn = e * pl.reciprocal(jnp.sum(e, axis=0, keepdims=True), approx=True)
    xa = jnp.dot(sam, x * attn, preferred_element_type=f32)                  # (A_pad, H2)

    # --- ARMAConv: K stacks batched along the lane axis (width K*G1); the torch.cat with the
    #     amino-acid features is realised as split matmuls (top = H2 rows, bot = 95 rows). ---
    def root_t(t):
        return (jnp.dot(xa, wrt_ref[t], preferred_element_type=f32)
                + jnp.dot(ft, wrb_ref[t], preferred_element_type=f32)
                + bc_ref[t])

    h = (jnp.dot(xa, wit_ref[...], preferred_element_type=f32)
         + jnp.dot(ft, wib_ref[...], preferred_element_type=f32))
    h = jnp.maximum(jnp.dot(adj, h, preferred_element_type=f32) + root_t(0), 0.0)
    for t in range(1, L):
        h = jnp.dot(h, wbd_ref[t - 1], preferred_element_type=f32)           # block-diag (K*G1, K*G1)
        h = jnp.maximum(jnp.dot(adj, h, preferred_element_type=f32) + root_t(t), 0.0)

    xs = h[:, 0:G1]
    for k in range(1, K):
        xs = xs + h[:, k * G1:(k + 1) * G1]
    xs = jnp.maximum(xs * (1.0 / K), 0.0)            # mean over stacks + module-level F.relu

    # --- AttentionReadoutAminoAcid: softmax over amino rows + global sum ---
    logits2 = jnp.dot(xs, awm_ref[...], preferred_element_type=f32) + abm_ref[...]
    logits2 = jnp.where(amask > 0.0, logits2, jnp.full_like(logits2, -1e30))
    e2 = jnp.exp(logits2 - jnp.max(logits2, axis=0, keepdims=True))
    attn2 = e2 * pl.reciprocal(jnp.sum(e2, axis=0, keepdims=True), approx=True)
    p = jnp.sum(xs * attn2, axis=0, keepdims=True)                           # (1, G1)

    # --- MLP head epilogue (row-wise, so per-graph application == concat-then-MLP).
    #     nn.Dropout(0.2) layers are eval-mode identity. ---
    p = jnp.maximum(jnp.dot(p, l1w_ref[...], preferred_element_type=f32) + l1b_ref[...], 0.0)
    p = jnp.maximum(jnp.dot(p, l2w_ref[...], preferred_element_type=f32) + l2b_ref[...], 0.0)
    p = jnp.maximum(jnp.dot(p, l3w_ref[...], preferred_element_type=f32) + l3b_ref[...], 0.0)
    o_ref[0] = jnp.dot(p, l4w_ref[...], preferred_element_type=f32) + l4b_ref[...]


def _spec_per_graph(a):
    nd = a.ndim
    return pl.BlockSpec((1,) + tuple(a.shape[1:]),
                        lambda b, nd=nd: (b,) + (0,) * (nd - 1))


def _spec_const(a):
    nd = a.ndim
    return pl.BlockSpec(tuple(a.shape), lambda b, nd=nd: (0,) * nd)


def pallas_per_graph(xg, nmask, sam, ft, adj, amask, weights, K, L, G1):
    B = xg.shape[0]
    data = [xg, nmask, sam, ft, adj, amask]
    in_specs = [_spec_per_graph(a) for a in data] + [_spec_const(w) for w in weights]
    return pl.pallas_call(
        functools.partial(_per_graph_kernel, K=K, L=L, G1=G1),
        out_shape=jax.ShapeDtypeStruct((B, 1, 1), jnp.float32),
        grid=(B,),
        in_specs=in_specs,
        out_specs=pl.BlockSpec((1, 1, 1), lambda b: (b, 0, 0)),
        compiler_params=pltpu.CompilerParams(dimension_semantics=("parallel",)),
    )(*data, *weights)


# ---------------------------- host-side preprocessing (once per dataset) ----------------------------

def _gcn_norm_dense(src, tgt, num_nodes):
    """Dense equivalent of PyG gcn_norm(add_self_loops=False) for ARMAConv propagate."""
    deg = np.zeros(num_nodes, np.float32)
    np.add.at(deg, tgt, 1.0)
    dinv = np.where(deg > 0, 1.0 / np.sqrt(np.maximum(deg, 1e-12)), 0.0).astype(np.float32)
    adj = np.zeros((num_nodes, num_nodes), np.float32)
    if len(src):
        np.add.at(adj, (tgt, src), dinv[src] * dinv[tgt])
    return adj


def preprocess_graphs(edge_index, idx_batch, cc, monomer_labels, aminoacids_features, num_nodes):
    idx_batch = np.asarray(idx_batch)
    monomer_labels = np.asarray(monomer_labels)
    src = np.asarray(edge_index[0])
    tgt = np.asarray(edge_index[1])
    B = len(cc)
    E = src.shape[0]

    node_lists = [np.nonzero(idx_batch == i)[0] for i in range(B)]
    n_per = [len(nl) for nl in node_lists]
    N_pad = int(-(-max(n_per) // 8) * 8)

    label_lists, amino_fts, a_per = [], [], []
    for i in range(B):
        labels_i = monomer_labels[idx_batch == i]
        label_lists.append(labels_i)
        ft_i = [f for (c, f) in aminoacids_features if c == cc[i]][0]
        amino_fts.append(np.asarray(ft_i, np.float32))
        # TODO(synk): original uses max(monomer_labels_i) as num_aminoacid; we use the
        # 0-based amino-acid count so scatter output and amino features stay consistent.
        a_per.append(int(labels_i.max()) + 1)
    A_pad = int(-(-max(a_per) // 8) * 8)
    F_am = amino_fts[0].shape[1]

    # padded per-graph "slot" layout for nodes: node -> graph*N_pad + rank
    slot_of_node = np.zeros(num_nodes, np.int64)
    for i, nl in enumerate(node_lists):
        slot_of_node[nl] = i * N_pad + np.arange(len(nl))
    Ns = B * N_pad

    gmat = np.zeros((E, Ns), np.float32)
    gmat[np.arange(E), slot_of_node[src]] = 1.0
    smat = np.zeros((Ns, E), np.float32)
    smat[slot_of_node[tgt], np.arange(E)] = 1.0

    nmask = np.zeros((B, N_pad, 1), np.float32)
    sam = np.zeros((B, A_pad, N_pad), np.float32)
    ftp = np.zeros((B, A_pad, F_am), np.float32)
    adjp = np.zeros((B, A_pad, A_pad), np.float32)
    amask = np.zeros((B, A_pad, 1), np.float32)
    for i in range(B):
        n_i, a_i = n_per[i], a_per[i]
        nmask[i, :n_i, 0] = 1.0
        sam[i, label_lists[i], np.arange(n_i)] = 1.0
        ftp[i, :amino_fts[i].shape[0], :] = amino_fts[i]
        a_src = np.arange(a_i - 1)
        a_tgt = np.arange(1, a_i)
        adjp[i, :a_i, :a_i] = _gcn_norm_dense(a_src, a_tgt, a_i)
        amask[i, :a_i, 0] = 1.0

    return dict(
        slot_of_node=jnp.asarray(slot_of_node, jnp.int32),
        gmat=jnp.asarray(gmat), smat=jnp.asarray(smat),
        nmask=jnp.asarray(nmask), sam=jnp.asarray(sam),
        ftp=jnp.asarray(ftp), adjp=jnp.asarray(adjp), amask=jnp.asarray(amask),
    )


# ---------------------------- device forward (jitted, 2 Pallas launches) ----------------------------

@jax.jit
def _forward_device(params, x, edge_attr, slot_of_node, gmat, smat,
                    nmask, sam, ftp, adjp, amask):
    D0 = x.shape[1]
    De = edge_attr.shape[1]
    H1 = params['conv1_root'].shape[1]
    H2 = params['conv2_root'].shape[1]
    G1 = params['attn_amino_w'].shape[0]
    K = params['arma_init_w'].shape[0]
    L = params['arma_bias'].shape[0] // K
    KG = K * G1
    B, N_pad = nmask.shape[0], nmask.shape[1]
    Ns = gmat.shape[1]

    # scatter node features into the padded per-graph slot layout (single XLA scatter)
    x_slots = jnp.zeros((Ns, D0), jnp.float32).at[slot_of_node].set(x)

    # ---- derived weights (tiny, folded by XLA) ----
    nn1w = params['nn1_w'].reshape(De, D0, H1)
    nn1b = params['nn1_b'].reshape(D0, H1)
    nn2w = params['nn2_w'].reshape(De, H1, H2)
    nn2b = params['nn2_b'].reshape(H1, H2)

    h = pallas_nnconv2(x_slots, edge_attr, gmat, smat,
                       nn1w, nn1b, params['conv1_root'], params['conv1_bias'],
                       nn2w, nn2b, params['conv2_root'], params['conv2_bias'])
    xg = h.reshape(B, N_pad, H2)

    # ARMA weights: concatenate the K stacks along the output axis; inner-layer weights
    # become block-diagonal so each layer is a single (A, K*G1) x (K*G1, K*G1) matmul.
    wi = jnp.concatenate([params['arma_init_w'][k] for k in range(K)], axis=1)   # (H2+95, KG)
    wit, wib = wi[:H2], wi[H2:]
    wrt_l, wrb_l, bc_l = [], [], []
    for t in range(L):
        wr = jnp.concatenate([params['arma_root_w'][t * K + k] for k in range(K)], axis=1)
        wrt_l.append(wr[:H2])
        wrb_l.append(wr[H2:])
        bc_l.append(jnp.concatenate([params['arma_bias'][t * K + k] for k in range(K)], axis=1))
    wrt, wrb, bc = jnp.stack(wrt_l), jnp.stack(wrb_l), jnp.stack(bc_l)
    wbd_l = []
    for t in range(1, L):
        m = jnp.zeros((KG, KG), jnp.float32)
        for k in range(K):
            m = m.at[k * G1:(k + 1) * G1, k * G1:(k + 1) * G1].set(
                params['arma_w'][(t - 1) * K + k])
        wbd_l.append(m)
    wbd = jnp.stack(wbd_l)

    weights = [params['attn_atom_w'], params['attn_atom_b'],
               wit, wib, wbd, wrt, wrb, bc,
               params['attn_amino_w'], params['attn_amino_b'],
               params['lin1_w'], params['lin1_b'], params['lin2_w'], params['lin2_b'],
               params['lin3_w'], params['lin3_b'], params['lin4_w'], params['lin4_b']]

    out = pallas_per_graph(xg, nmask, sam, ftp, adjp, amask, weights, K, L, G1)
    return out.reshape(-1)


def gcn_geo_forward(params, dims, x, edge_index, edge_attr, idx_batch, cc,
                    monomer_labels, aminoacids_features):
    del dims  # all dimensions are derived from array / parameter shapes
    prep = preprocess_graphs(edge_index, idx_batch, cc, monomer_labels,
                             aminoacids_features, int(x.shape[0]))
    return _forward_device(params, x, edge_attr,
                           prep['slot_of_node'], prep['gmat'], prep['smat'],
                           prep['nmask'], prep['sam'], prep['ftp'],
                           prep['adjp'], prep['amask'])


# ---------------------------- parameters ----------------------------

def init_params(key, dims):
    D0, De, H1, H2, G1, F1, F2, F3, K, L = dims
    shapes = {
        'nn1_w': (De, D0 * H1), 'nn1_b': (1, D0 * H1),
        'conv1_root': (D0, H1), 'conv1_bias': (1, H1),
        'nn2_w': (De, H1 * H2), 'nn2_b': (1, H1 * H2),
        'conv2_root': (H1, H2), 'conv2_bias': (1, H2),
        'attn_atom_w': (H2, 1), 'attn_atom_b': (1, 1),
        'arma_init_w': (K, H2 + 95, G1),
        'arma_w': ((L - 1) * K, G1, G1),
        'arma_root_w': (L * K, H2 + 95, G1),
        'arma_bias': (L * K, 1, G1),
        'attn_amino_w': (G1, 1), 'attn_amino_b': (1, 1),
        'lin1_w': (G1, F1), 'lin1_b': (1, F1),
        'lin2_w': (F1, F2), 'lin2_b': (1, F2),
        'lin3_w': (F2, F3), 'lin3_b': (1, F3),
        'lin4_w': (F3, 1), 'lin4_b': (1, 1),
    }
    keys = jax.random.split(key, len(shapes))
    return {name: 0.1 * jax.random.normal(k, shp, jnp.float32)
            for (name, shp), k in zip(shapes.items(), keys)}


# ---------------------------- example run ----------------------------

if __name__ == "__main__":
    # dims: initial_dim_gcn, edge_dim_feature, hidden_nn_1, hidden_nn_2,
    #       hidden_gat_1, fcn_1, fcn_2, fcn_3, ARMA stacks K, ARMA layers L
    dims = (8, 4, 16, 16, 16, 32, 16, 8, 3, 6)
    D0, De = dims[0], dims[1]

    # two graphs (peptides): 12 and 10 atoms, 3 and 4 amino acids
    atoms_per_graph = [12, 10]
    labels0 = [0] * 4 + [1] * 4 + [2] * 4
    labels1 = [0] * 3 + [1] * 2 + [2] * 2 + [3] * 3
    idx_batch = np.array([0] * 12 + [1] * 10, dtype=np.int32)
    monomer_labels = np.array(labels0 + labels1, dtype=np.int32)

    # bidirectional chain bonds within each graph
    rows, cols, off = [], [], 0
    for n in atoms_per_graph:
        for a in range(n - 1):
            rows += [off + a, off + a + 1]
            cols += [off + a + 1, off + a]
        off += n
    edge_index = np.array([rows, cols], dtype=np.int64)
    N, E = sum(atoms_per_graph), edge_index.shape[1]

    key = jax.random.PRNGKey(0)
    k_x, k_e, k_a0, k_a1, k_p = jax.random.split(key, 5)
    x = jax.random.normal(k_x, (N, D0), jnp.float32)
    edge_attr = jax.random.normal(k_e, (E, De), jnp.float32)
    cc = [101, 202]
    aminoacids_features = [
        (101, jax.random.normal(k_a0, (3, 95), jnp.float32)),
        (202, jax.random.normal(k_a1, (4, 95), jnp.float32)),
    ]

    params = init_params(k_p, dims)
    out = gcn_geo_forward(params, dims, x, edge_index, edge_attr, idx_batch, cc,
                          monomer_labels, aminoacids_features)
    out = jax.block_until_ready(out)
    assert out.shape == (len(cc),) and out.dtype == jnp.float32
    assert bool(jnp.all(jnp.isfinite(out)))
    print("KERNEL_OK")
</pallas_src>

<mosaic_0001>
module attributes {stable_mosaic.version = 11 : i64} {
  func.func @_nnconv2_kernel(%arg0: memref<32x8xf32, #tpu.memory_space<vmem>>, %arg1: memref<40x4xf32, #tpu.memory_space<vmem>>, %arg2: memref<40x32xf32, #tpu.memory_space<vmem>>, %arg3: memref<32x40xf32, #tpu.memory_space<vmem>>, %arg4: memref<4x8x16xf32, #tpu.memory_space<vmem>>, %arg5: memref<8x16xf32, #tpu.memory_space<vmem>>, %arg6: memref<8x16xf32, #tpu.memory_space<vmem>>, %arg7: memref<1x16xf32, #tpu.memory_space<vmem>>, %arg8: memref<4x16x16xf32, #tpu.memory_space<vmem>>, %arg9: memref<16x16xf32, #tpu.memory_space<vmem>>, %arg10: memref<16x16xf32, #tpu.memory_space<vmem>>, %arg11: memref<1x16xf32, #tpu.memory_space<vmem>>, %arg12: memref<32x16xf32, #tpu.memory_space<vmem>>) attributes {dimension_semantics = [], scalar_prefetch = 0 : i64, scratch_operands = 0 : i64, tpu.core_type = #tpu.core_type<tc>} {
    %c0 = arith.constant 0 : index
    %c0_0 = arith.constant 0 : index
    %0 = vector.load %arg0[%c0, %c0_0] : memref<32x8xf32, #tpu.memory_space<vmem>>, vector<32x8xf32>
    %c0_1 = arith.constant 0 : index
    %c0_2 = arith.constant 0 : index
    %1 = vector.load %arg1[%c0_1, %c0_2] : memref<40x4xf32, #tpu.memory_space<vmem>>, vector<40x4xf32>
    %c0_3 = arith.constant 0 : index
    %c0_4 = arith.constant 0 : index
    %2 = vector.load %arg2[%c0_3, %c0_4] : memref<40x32xf32, #tpu.memory_space<vmem>>, vector<40x32xf32>
    %c0_5 = arith.constant 0 : index
    %c0_6 = arith.constant 0 : index
    %3 = vector.load %arg3[%c0_5, %c0_6] : memref<32x40xf32, #tpu.memory_space<vmem>>, vector<32x40xf32>
    %cst = arith.constant dense<0.000000e+00> : vector<40x8xf32>
    %4 = tpu.matmul %2, %0, %cst {dimension_numbers = #tpu.dot_dimension_numbers<[1], [0], [0], [1], [0, 0, 1, 1], [], []>} : vector<40x32xf32>, vector<32x8xf32>, vector<40x8xf32> -> vector<40x8xf32>
    %c0_7 = arith.constant 0 : index
    %c0_8 = arith.constant 0 : index
    %5 = vector.load %arg5[%c0_7, %c0_8] : memref<8x16xf32, #tpu.memory_space<vmem>>, vector<8x16xf32>
    %cst_9 = arith.constant dense<0.000000e+00> : vector<40x16xf32>
    %6 = tpu.matmul %4, %5, %cst_9 {dimension_numbers = #tpu.dot_dimension_numbers<[1], [0], [0], [1], [0, 0, 1, 1], [], []>} : vector<40x8xf32>, vector<8x16xf32>, vector<40x16xf32> -> vector<40x16xf32>
    %7 = vector.extract_strided_slice %1 {offsets = [0, 0], sizes = [40, 1], strides = [1, 1]} : vector<40x4xf32> to vector<40x1xf32>
    %8 = vector.broadcast %7 : vector<40x1xf32> to vector<40x8xf32>
    %9 = arith.mulf %8, %4 : vector<40x8xf32>
    %c0_10 = arith.constant 0 : index
    %c0_11 = arith.constant 0 : index
    %c0_12 = arith.constant 0 : index
    %10 = vector.load %arg4[%c0_10, %c0_11, %c0_12] : memref<4x8x16xf32, #tpu.memory_space<vmem>>, vector<1x8x16xf32>
    %11 = vector.shape_cast %10 : vector<1x8x16xf32> to vector<8x16xf32>
    %cst_13 = arith.constant dense<0.000000e+00> : vector<40x16xf32>
    %12 = tpu.matmul %9, %11, %cst_13 {dimension_numbers = #tpu.dot_dimension_numbers<[1], [0], [0], [1], [0, 0, 1, 1], [], []>} : vector<40x8xf32>, vector<8x16xf32>, vector<40x16xf32> -> vector<40x16xf32>
    %13 = arith.addf %6, %12 : vector<40x16xf32>
    %14 = vector.extract_strided_slice %1 {offsets = [0, 1], sizes = [40, 1], strides = [1, 1]} : vector<40x4xf32> to vector<40x1xf32>
    %15 = vector.broadcast %14 : vector<40x1xf32> to vector<40x8xf32>
    %16 = arith.mulf %15, %4 : vector<40x8xf32>
    %c1 = arith.constant 1 : index
    %c0_14 = arith.constant 0 : index
    %c0_15 = arith.constant 0 : index
    %17 = vector.load %arg4[%c1, %c0_14, %c0_15] : memref<4x8x16xf32, #tpu.memory_space<vmem>>, vector<1x8x16xf32>
    %18 = vector.shape_cast %17 : vector<1x8x16xf32> to vector<8x16xf32>
    %cst_16 = arith.constant dense<0.000000e+00> : vector<40x16xf32>
    %19 = tpu.matmul %16, %18, %cst_16 {dimension_numbers = #tpu.dot_dimension_numbers<[1], [0], [0], [1], [0, 0, 1, 1], [], []>} : vector<40x8xf32>, vector<8x16xf32>, vector<40x16xf32> -> vector<40x16xf32>
    %20 = arith.addf %13, %19 : vector<40x16xf32>
    %21 = vector.extract_strided_slice %1 {offsets = [0, 2], sizes = [40, 1], strides = [1, 1]} : vector<40x4xf32> to vector<40x1xf32>
    %22 = vector.broadcast %21 : vector<40x1xf32> to vector<40x8xf32>
    %23 = arith.mulf %22, %4 : vector<40x8xf32>
    %c2 = arith.constant 2 : index
    %c0_17 = arith.constant 0 : index
    %c0_18 = arith.constant 0 : index
    %24 = vector.load %arg4[%c2, %c0_17, %c0_18] : memref<4x8x16xf32, #tpu.memory_space<vmem>>, vector<1x8x16xf32>
    %25 = vector.shape_cast %24 : vector<1x8x16xf32> to vector<8x16xf32>
    %cst_19 = arith.constant dense<0.000000e+00> : vector<40x16xf32>
    %26 = tpu.matmul %23, %25, %cst_19 {dimension_numbers = #tpu.dot_dimension_numbers<[1], [0], [0], [1], [0, 0, 1, 1], [], []>} : vector<40x8xf32>, vector<8x16xf32>, vector<40x16xf32> -> vector<40x16xf32>
    %27 = arith.addf %20, %26 : vector<40x16xf32>
    %28 = vector.extract_strided_slice %1 {offsets = [0, 3], sizes = [40, 1], strides = [1, 1]} : vector<40x4xf32> to vector<40x1xf32>
    %29 = vector.broadcast %28 : vector<40x1xf32> to vector<40x8xf32>
    %30 = arith.mulf %29, %4 : vector<40x8xf32>
    %c3 = arith.constant 3 : index
    %c0_20 = arith.constant 0 : index
    %c0_21 = arith.constant 0 : index
    %31 = vector.load %arg4[%c3, %c0_20, %c0_21] : memref<4x8x16xf32, #tpu.memory_space<vmem>>, vector<1x8x16xf32>
    %32 = vector.shape_cast %31 : vector<1x8x16xf32> to vector<8x16xf32>
    %cst_22 = arith.constant dense<0.000000e+00> : vector<40x16xf32>
    %33 = tpu.matmul %30, %32, %cst_22 {dimension_numbers = #tpu.dot_dimension_numbers<[1], [0], [0], [1], [0, 0, 1, 1], [], []>} : vector<40x8xf32>, vector<8x16xf32>, vector<40x16xf32> -> vector<40x16xf32>
    %34 = arith.addf %27, %33 : vector<40x16xf32>
    %cst_23 = arith.constant dense<0.000000e+00> : vector<32x16xf32>
    %35 = tpu.matmul %3, %34, %cst_23 {dimension_numbers = #tpu.dot_dimension_numbers<[1], [0], [0], [1], [0, 0, 1, 1], [], []>} : vector<32x40xf32>, vector<40x16xf32>, vector<32x16xf32> -> vector<32x16xf32>
    %c0_24 = arith.constant 0 : index
    %c0_25 = arith.constant 0 : index
    %36 = vector.load %arg6[%c0_24, %c0_25] : memref<8x16xf32, #tpu.memory_space<vmem>>, vector<8x16xf32>
    %cst_26 = arith.constant dense<0.000000e+00> : vector<32x16xf32>
    %37 = tpu.matmul %0, %36, %cst_26 {dimension_numbers = #tpu.dot_dimension_numbers<[1], [0], [0], [1], [0, 0, 1, 1], [], []>} : vector<32x8xf32>, vector<8x16xf32>, vector<32x16xf32> -> vector<32x16xf32>
    %38 = arith.addf %35, %37 : vector<32x16xf32>
    %c0_27 = arith.constant 0 : index
    %c0_28 = arith.constant 0 : index
    %39 = vector.load %arg7[%c0_27, %c0_28] : memref<1x16xf32, #tpu.memory_space<vmem>>, vector<1x16xf32>
    %40 = vector.broadcast %39 : vector<1x16xf32> to vector<32x16xf32>
    %41 = arith.addf %38, %40 : vector<32x16xf32>
    %cst_29 = arith.constant 0.000000e+00 : f32
    %42 = vector.broadcast %cst_29 : f32 to vector<32x16xf32>
    %43 = arith.maximumf %41, %42 : vector<32x16xf32>
    %cst_30 = arith.constant dense<0.000000e+00> : vector<40x16xf32>
    %44 = tpu.matmul %2, %43, %cst_30 {dimension_numbers = #tpu.dot_dimension_numbers<[1], [0], [0], [1], [0, 0, 1, 1], [], []>} : vector<40x32xf32>, vector<32x16xf32>, vector<40x16xf32> -> vector<40x16xf32>
    %c0_31 = arith.constant 0 : index
    %c0_32 = arith.constant 0 : index
    %45 = vector.load %arg9[%c0_31, %c0_32] : memref<16x16xf32, #tpu.memory_space<vmem>>, vector<16x16xf32>
    %cst_33 = arith.constant dense<0.000000e+00> : vector<40x16xf32>
    %46 = tpu.matmul %44, %45, %cst_33 {dimension_numbers = #tpu.dot_dimension_numbers<[1], [0], [0], [1], [0, 0, 1, 1], [], []>} : vector<40x16xf32>, vector<16x16xf32>, vector<40x16xf32> -> vector<40x16xf32>
    %47 = vector.extract_strided_slice %1 {offsets = [0, 0], sizes = [40, 1], strides = [1, 1]} : vector<40x4xf32> to vector<40x1xf32>
    %48 = vector.broadcast %47 : vector<40x1xf32> to vector<40x16xf32>
    %49 = arith.mulf %48, %44 : vector<40x16xf32>
    %c0_34 = arith.constant 0 : index
    %c0_35 = arith.constant 0 : index
    %c0_36 = arith.constant 0 : index
    %50 = vector.load %arg8[%c0_34, %c0_35, %c0_36] : memref<4x16x16xf32, #tpu.memory_space<vmem>>, vector<1x16x16xf32>
    %51 = vector.shape_cast %50 : vector<1x16x16xf32> to vector<16x16xf32>
    %cst_37 = arith.constant dense<0.000000e+00> : vector<40x16xf32>
    %52 = tpu.matmul %49, %51, %cst_37 {dimension_numbers = #tpu.dot_dimension_numbers<[1], [0], [0], [1], [0, 0, 1, 1], [], []>} : vector<40x16xf32>, vector<16x16xf32>, vector<40x16xf32> -> vector<40x16xf32>
    %53 = arith.addf %46, %52 : vector<40x16xf32>
    %54 = vector.extract_strided_slice %1 {offsets = [0, 1], sizes = [40, 1], strides = [1, 1]} : vector<40x4xf32> to vector<40x1xf32>
    %55 = vector.broadcast %54 : vector<40x1xf32> to vector<40x16xf32>
    %56 = arith.mulf %55, %44 : vector<40x16xf32>
    %c1_38 = arith.constant 1 : index
    %c0_39 = arith.constant 0 : index
    %c0_40 = arith.constant 0 : index
    %57 = vector.load %arg8[%c1_38, %c0_39, %c0_40] : memref<4x16x16xf32, #tpu.memory_space<vmem>>, vector<1x16x16xf32>
    %58 = vector.shape_cast %57 : vector<1x16x16xf32> to vector<16x16xf32>
    %cst_41 = arith.constant dense<0.000000e+00> : vector<40x16xf32>
    %59 = tpu.matmul %56, %58, %cst_41 {dimension_numbers = #tpu.dot_dimension_numbers<[1], [0], [0], [1], [0, 0, 1, 1], [], []>} : vector<40x16xf32>, vector<16x16xf32>, vector<40x16xf32> -> vector<40x16xf32>
    %60 = arith.addf %53, %59 : vector<40x16xf32>
    %61 = vector.extract_strided_slice %1 {offsets = [0, 2], sizes = [40, 1], strides = [1, 1]} : vector<40x4xf32> to vector<40x1xf32>
    %62 = vector.broadcast %61 : vector<40x1xf32> to vector<40x16xf32>
    %63 = arith.mulf %62, %44 : vector<40x16xf32>
    %c2_42 = arith.constant 2 : index
    %c0_43 = arith.constant 0 : index
    %c0_44 = arith.constant 0 : index
    %64 = vector.load %arg8[%c2_42, %c0_43, %c0_44] : memref<4x16x16xf32, #tpu.memory_space<vmem>>, vector<1x16x16xf32>
    %65 = vector.shape_cast %64 : vector<1x16x16xf32> to vector<16x16xf32>
    %cst_45 = arith.constant dense<0.000000e+00> : vector<40x16xf32>
    %66 = tpu.matmul %63, %65, %cst_45 {dimension_numbers = #tpu.dot_dimension_numbers<[1], [0], [0], [1], [0, 0, 1, 1], [], []>} : vector<40x16xf32>, vector<16x16xf32>, vector<40x16xf32> -> vector<40x16xf32>
    %67 = arith.addf %60, %66 : vector<40x16xf32>
    %68 = vector.extract_strided_slice %1 {offsets = [0, 3], sizes = [40, 1], strides = [1, 1]} : vector<40x4xf32> to vector<40x1xf32>
    %69 = vector.broadcast %68 : vector<40x1xf32> to vector<40x16xf32>
    %70 = arith.mulf %69, %44 : vector<40x16xf32>
    %c3_46 = arith.constant 3 : index
    %c0_47 = arith.constant 0 : index
    %c0_48 = arith.constant 0 : index
    %71 = vector.load %arg8[%c3_46, %c0_47, %c0_48] : memref<4x16x16xf32, #tpu.memory_space<vmem>>, vector<1x16x16xf32>
    %72 = vector.shape_cast %71 : vector<1x16x16xf32> to vector<16x16xf32>
    %cst_49 = arith.constant dense<0.000000e+00> : vector<40x16xf32>
    %73 = tpu.matmul %70, %72, %cst_49 {dimension_numbers = #tpu.dot_dimension_numbers<[1], [0], [0], [1], [0, 0, 1, 1], [], []>} : vector<40x16xf32>, vector<16x16xf32>, vector<40x16xf32> -> vector<40x16xf32>
    %74 = arith.addf %67, %73 : vector<40x16xf32>
    %cst_50 = arith.constant dense<0.000000e+00> : vector<32x16xf32>
    %75 = tpu.matmul %3, %74, %cst_50 {dimension_numbers = #tpu.dot_dimension_numbers<[1], [0], [0], [1], [0, 0, 1, 1], [], []>} : vector<32x40xf32>, vector<40x16xf32>, vector<32x16xf32> -> vector<32x16xf32>
    %c0_51 = arith.constant 0 : index
    %c0_52 = arith.constant 0 : index
    %76 = vector.load %arg10[%c0_51, %c0_52] : memref<16x16xf32, #tpu.memory_space<vmem>>, vector<16x16xf32>
    %cst_53 = arith.constant dense<0.000000e+00> : vector<32x16xf32>
    %77 = tpu.matmul %43, %76, %cst_53 {dimension_numbers = #tpu.dot_dimension_numbers<[1], [0], [0], [1], [0, 0, 1, 1], [], []>} : vector<32x16xf32>, vector<16x16xf32>, vector<32x16xf32> -> vector<32x16xf32>
    %78 = arith.addf %75, %77 : vector<32x16xf32>
    %c0_54 = arith.constant 0 : index
    %c0_55 = arith.constant 0 : index
    %79 = vector.load %arg11[%c0_54, %c0_55] : memref<1x16xf32, #tpu.memory_space<vmem>>, vector<1x16xf32>
    %80 = vector.broadcast %79 : vector<1x16xf32> to vector<32x16xf32>
    %81 = arith.addf %78, %80 : vector<32x16xf32>
    %cst_56 = arith.constant 0.000000e+00 : f32
    %82 = vector.broadcast %cst_56 : f32 to vector<32x16xf32>
    %83 = arith.maximumf %81, %82 : vector<32x16xf32>
    %c0_57 = arith.constant 0 : index
    %c0_58 = arith.constant 0 : index
    %84 = vector.load %arg12[%c0_57, %c0_58] : memref<32x16xf32, #tpu.memory_space<vmem>>, vector<32x16xf32>
    tpu.vector_store %arg12[%c0_57, %c0_58], %83 {strides = array<i32>} : memref<32x16xf32, #tpu.memory_space<vmem>>, vector<32x16xf32>,
    return
  }
}

module attributes {stable_mosaic.version = 11 : i64} {
  func.func @_per_graph_kernel(%arg0: i32, %arg1: memref<1x16x16xf32, #tpu.memory_space<vmem>>, %arg2: memref<1x16x1xf32, #tpu.memory_space<vmem>>, %arg3: memref<1x8x16xf32, #tpu.memory_space<vmem>>, %arg4: memref<1x8x95xf32, #tpu.memory_space<vmem>>, %arg5: memref<1x8x8xf32, #tpu.memory_space<vmem>>, %arg6: memref<1x8x1xf32, #tpu.memory_space<vmem>>, %arg7: memref<16x1xf32, #tpu.memory_space<vmem>>, %arg8: memref<1x1xf32, #tpu.memory_space<vmem>>, %arg9: memref<16x48xf32, #tpu.memory_space<vmem>>, %arg10: memref<95x48xf32, #tpu.memory_space<vmem>>, %arg11: memref<5x48x48xf32, #tpu.memory_space<vmem>>, %arg12: memref<6x16x48xf32, #tpu.memory_space<vmem>>, %arg13: memref<6x95x48xf32, #tpu.memory_space<vmem>>, %arg14: memref<6x1x48xf32, #tpu.memory_space<vmem>>, %arg15: memref<16x1xf32, #tpu.memory_space<vmem>>, %arg16: memref<1x1xf32, #tpu.memory_space<vmem>>, %arg17: memref<16x32xf32, #tpu.memory_space<vmem>>, %arg18: memref<1x32xf32, #tpu.memory_space<vmem>>, %arg19: memref<32x16xf32, #tpu.memory_space<vmem>>, %arg20: memref<1x16xf32, #tpu.memory_space<vmem>>, %arg21: memref<16x8xf32, #tpu.memory_space<vmem>>, %arg22: memref<1x8xf32, #tpu.memory_space<vmem>>, %arg23: memref<8x1xf32, #tpu.memory_space<vmem>>, %arg24: memref<1x1xf32, #tpu.memory_space<vmem>>, %arg25: memref<1x1x1xf32, #tpu.memory_space<vmem>>) attributes {dimension_semantics = [#tpu.dimension_semantics<parallel>], iteration_bounds = array<i64: 2>, scalar_prefetch = 0 : i64, scratch_operands = 0 : i64, tpu.core_type = #tpu.core_type<tc>, window_params = [{transform_indices = @transform_0, window_bounds = array<i64: 1, 16, 16>}, {transform_indices = @transform_1, window_bounds = array<i64: 1, 16, 1>}, {transform_indices = @transform_2, window_bounds = array<i64: 1, 8, 16>}, {transform_indices = @transform_3, window_bounds = array<i64: 1, 8, 95>}, {transform_indices = @transform_4, window_bounds = array<i64: 1, 8, 8>}, {transform_indices = @transform_5, window_bounds = array<i64: 1, 8, 1>}, {pipeline_mode = #tpu.pipeline_mode<synchronous>, transform_indices = @transform_6, window_bounds = array<i64: 16, 1>}, {pipeline_mode = #tpu.pipeline_mode<synchronous>, transform_indices = @transform_7, window_bounds = array<i64: 1, 1>}, {pipeline_mode = #tpu.pipeline_mode<synchronous>, transform_indices = @transform_8, window_bounds = array<i64: 16, 48>}, {pipeline_mode = #tpu.pipeline_mode<synchronous>, transform_indices = @transform_9, window_bounds = array<i64: 95, 48>}, {pipeline_mode = #tpu.pipeline_mode<synchronous>, transform_indices = @transform_10, window_bounds = array<i64: 5, 48, 48>}, {pipeline_mode = #tpu.pipeline_mode<synchronous>, transform_indices = @transform_11, window_bounds = array<i64: 6, 16, 48>}, {pipeline_mode = #tpu.pipeline_mode<synchronous>, transform_indices = @transform_12, window_bounds = array<i64: 6, 95, 48>}, {pipeline_mode = #tpu.pipeline_mode<synchronous>, transform_indices = @transform_13, window_bounds = array<i64: 6, 1, 48>}, {pipeline_mode = #tpu.pipeline_mode<synchronous>, transform_indices = @transform_14, window_bounds = array<i64: 16, 1>}, {pipeline_mode = #tpu.pipeline_mode<synchronous>, transform_indices = @transform_15, window_bounds = array<i64: 1, 1>}, {pipeline_mode = #tpu.pipeline_mode<synchronous>, transform_indices = @transform_16, window_bounds = array<i64: 16, 32>}, {pipeline_mode = #tpu.pipeline_mode<synchronous>, transform_indices = @transform_17, window_bounds = array<i64: 1, 32>}, {pipeline_mode = #tpu.pipeline_mode<synchronous>, transform_indices = @transform_18, window_bounds = array<i64: 32, 16>}, {pipeline_mode = #tpu.pipeline_mode<synchronous>, transform_indices = @transform_19, window_bounds = array<i64: 1, 16>}, {pipeline_mode = #tpu.pipeline_mode<synchronous>, transform_indices = @transform_20, window_bounds = array<i64: 16, 8>}, {pipeline_mode = #tpu.pipeline_mode<synchronous>, transform_indices = @transform_21, window_bounds = array<i64: 1, 8>}, {pipeline_mode = #tpu.pipeline_mode<synchronous>, transform_indices = @transform_22, window_bounds = array<i64: 8, 1>}, {pipeline_mode = #tpu.pipeline_mode<synchronous>, transform_indices = @transform_23, window_bounds = array<i64: 1, 1>}, {transform_indices = @transform_24, window_bounds = array<i64: 1, 1, 1>}]} {
    %c0 = arith.constant 0 : index
    %c0_0 = arith.constant 0 : index
    %c0_1 = arith.constant 0 : index
    %0 = vector.load %arg1[%c0, %c0_0, %c0_1] : memref<1x16x16xf32, #tpu.memory_space<vmem>>, vector<1x16x16xf32>
    %1 = vector.shape_cast %0 : vector<1x16x16xf32> to vector<16x16xf32>
    %c0_2 = arith.constant 0 : index
    %c0_3 = arith.constant 0 : index
    %c0_4 = arith.constant 0 : index
    %2 = vector.load %arg2[%c0_2, %c0_3, %c0_4] : memref<1x16x1xf32, #tpu.memory_space<vmem>>, vector<1x16x1xf32>
    %3 = vector.shape_cast %2 : vector<1x16x1xf32> to vector<16x1xf32>
    %c0_5 = arith.constant 0 : index
    %c0_6 = arith.constant 0 : index
    %c0_7 = arith.constant 0 : index
    %4 = vector.load %arg3[%c0_5, %c0_6, %c0_7] : memref<1x8x16xf32, #tpu.memory_space<vmem>>, vector<1x8x16xf32>
    %5 = vector.shape_cast %4 : vector<1x8x16xf32> to vector<8x16xf32>
    %c0_8 = arith.constant 0 : index
    %c0_9 = arith.constant 0 : index
    %c0_10 = arith.constant 0 : index
    %6 = vector.load %arg4[%c0_8, %c0_9, %c0_10] : memref<1x8x95xf32, #tpu.memory_space<vmem>>, vector<1x8x95xf32>
    %7 = vector.shape_cast %6 : vector<1x8x95xf32> to vector<8x95xf32>
    %c0_11 = arith.constant 0 : index
    %c0_12 = arith.constant 0 : index
    %c0_13 = arith.constant 0 : index
    %8 = vector.load %arg5[%c0_11, %c0_12, %c0_13] : memref<1x8x8xf32, #tpu.memory_space<vmem>>, vector<1x8x8xf32>
    %9 = vector.shape_cast %8 : vector<1x8x8xf32> to vector<8x8xf32>
    %c0_14 = arith.constant 0 : index
    %c0_15 = arith.constant 0 : index
    %c0_16 = arith.constant 0 : index
    %10 = vector.load %arg6[%c0_14, %c0_15, %c0_16] : memref<1x8x1xf32, #tpu.memory_space<vmem>>, vector<1x8x1xf32>
    %11 = vector.shape_cast %10 : vector<1x8x1xf32> to vector<8x1xf32>
    %c0_17 = arith.constant 0 : index
    %c0_18 = arith.constant 0 : index
    %12 = vector.load %arg7[%c0_17, %c0_18] : memref<16x1xf32, #tpu.memory_space<vmem>>, vector<16x1xf32>
    %cst = arith.constant dense<0.000000e+00> : vector<16x1xf32>
    %13 = tpu.matmul %1, %12, %cst {dimension_numbers = #tpu.dot_dimension_numbers<[1], [0], [0], [1], [0, 0, 1, 1], [], []>} : vector<16x16xf32>, vector<16x1xf32>, vector<16x1xf32> -> vector<16x1xf32>
    %c0_19 = arith.constant 0 : index
    %c0_20 = arith.constant 0 : index
    %14 = vector.load %arg8[%c0_19, %c0_20] : memref<1x1xf32, #tpu.memory_space<vmem>>, vector<1x1xf32>
    %15 = vector.broadcast %14 : vector<1x1xf32> to vector<16x1xf32>
    %16 = arith.addf %13, %15 : vector<16x1xf32>
    %cst_21 = arith.constant 0.000000e+00 : f32
    %17 = vector.broadcast %cst_21 : f32 to vector<16x1xf32>
    %18 = arith.cmpf ogt, %3, %17 : vector<16x1xf32>
    %cst_22 = arith.constant -1.000000e+30 : f32
    %19 = vector.broadcast %cst_22 : f32 to vector<16x1xf32>
    %20 = arith.select %18, %16, %19 : vector<16x1xi1>, vector<16x1xf32>
    %cst_23 = arith.constant dense<0xFF800000> : vector<1xf32>
    %21 = vector.multi_reduction <maximumf>, %20, %cst_23 [0] : vector<16x1xf32> to vector<1xf32>
    %22 = vector.shape_cast %21 : vector<1xf32> to vector<1x1xf32>
    %23 = vector.broadcast %22 : vector<1x1xf32> to vector<16x1xf32>
    %24 = arith.subf %20, %23 : vector<16x1xf32>
    %25 = math.exp %24 : vector<16x1xf32>
    %cst_24 = arith.constant dense<0.000000e+00> : vector<1xf32>
    %26 = vector.multi_reduction <add>, %25, %cst_24 [0] : vector<16x1xf32> to vector<1xf32>
    %27 = vector.shape_cast %26 : vector<1xf32> to vector<1x1xf32>
    %28 = tpu.reciprocal %27 {approx = true} : vector<1x1xf32> -> vector<1x1xf32>
    %29 = vector.broadcast %28 : vector<1x1xf32> to vector<16x1xf32>
    %30 = arith.mulf %25, %29 : vector<16x1xf32>
    %31 = vector.broadcast %30 : vector<16x1xf32> to vector<16x16xf32>
    %32 = arith.mulf %1, %31 : vector<16x16xf32>
    %cst_25 = arith.constant dense<0.000000e+00> : vector<8x16xf32>
    %33 = tpu.matmul %5, %32, %cst_25 {dimension_numbers = #tpu.dot_dimension_numbers<[1], [0], [0], [1], [0, 0, 1, 1], [], []>} : vector<8x16xf32>, vector<16x16xf32>, vector<8x16xf32> -> vector<8x16xf32>
    %c0_26 = arith.constant 0 : index
    %c0_27 = arith.constant 0 : index
    %34 = vector.load %arg9[%c0_26, %c0_27] : memref<16x48xf32, #tpu.memory_space<vmem>>, vector<16x48xf32>
    %cst_28 = arith.constant dense<0.000000e+00> : vector<8x48xf32>
    %35 = tpu.matmul %33, %34, %cst_28 {dimension_numbers = #tpu.dot_dimension_numbers<[1], [0], [0], [1], [0, 0, 1, 1], [], []>} : vector<8x16xf32>, vector<16x48xf32>, vector<8x48xf32> -> vector<8x48xf32>
    %c0_29 = arith.constant 0 : index
    %c0_30 = arith.constant 0 : index
    %36 = vector.load %arg10[%c0_29, %c0_30] : memref<95x48xf32, #tpu.memory_space<vmem>>, vector<95x48xf32>
    %cst_31 = arith.constant dense<0.000000e+00> : vector<8x48xf32>
    %37 = tpu.matmul %7, %36, %cst_31 {dimension_numbers = #tpu.dot_dimension_numbers<[1], [0], [0], [1], [0, 0, 1, 1], [], []>} : vector<8x95xf32>, vector<95x48xf32>, vector<8x48xf32> -> vector<8x48xf32>
    %38 = arith.addf %35, %37 : vector<8x48xf32>
    %cst_32 = arith.constant dense<0.000000e+00> : vector<8x48xf32>
    %39 = tpu.matmul %9, %38, %cst_32 {dimension_numbers = #tpu.dot_dimension_numbers<[1], [0], [0], [1], [0, 0, 1, 1], [], []>} : vector<8x8xf32>, vector<8x48xf32>, vector<8x48xf32> -> vector<8x48xf32>
    %c0_33 = arith.constant 0 : index
    %c0_34 = arith.constant 0 : index
    %c0_35 = arith.constant 0 : index
    %40 = vector.load %arg12[%c0_33, %c0_34, %c0_35] : memref<6x16x48xf32, #tpu.memory_space<vmem>>, vector<1x16x48xf32>
    %41 = vector.shape_cast %40 : vector<1x16x48xf32> to vector<16x48xf32>
    %cst_36 = arith.constant dense<0.000000e+00> : vector<8x48xf32>
    %42 = tpu.matmul %33, %41, %cst_36 {dimension_numbers = #tpu.dot_dimension_numbers<[1], [0], [0], [1], [0, 0, 1, 1], [], []>} : vector<8x16xf32>, vector<16x48xf32>, vector<8x48xf32> -> vector<8x48xf32>
    %c0_37 = arith.constant 0 : index
    %c0_38 = arith.constant 0 : index
    %c0_39 = arith.constant 0 : index
    %43 = vector.load %arg13[%c0_37, %c0_38, %c0_39] : memref<6x95x48xf32, #tpu.memory_space<vmem>>, vector<1x95x48xf32>
    %44 = vector.shape_cast %43 : vector<1x95x48xf32> to vector<95x48xf32>
    %cst_40 = arith.constant dense<0.000000e+00> : vector<8x48xf32>
    %45 = tpu.matmul %7, %44, %cst_40 {dimension_numbers = #tpu.dot_dimension_numbers<[1], [0], [0], [1], [0, 0, 1, 1], [], []>} : vector<8x95xf32>, vector<95x48xf32>, vector<8x48xf32> -> vector<8x48xf32>
    %46 = arith.addf %42, %45 : vector<8x48xf32>
    %c0_41 = arith.constant 0 : index
    %c0_42 = arith.constant 0 : index
    %c0_43 = arith.constant 0 : index
    %47 = vector.load %arg14[%c0_41, %c0_42, %c0_43] : memref<6x1x48xf32, #tpu.memory_space<vmem>>, vector<1x1x48xf32>
    %48 = vector.shape_cast %47 : vector<1x1x48xf32> to vector<1x48xf32>
    %49 = vector.broadcast %48 : vector<1x48xf32> to vector<8x48xf32>
    %50 = arith.addf %46, %49 : vector<8x48xf32>
    %51 = arith.addf %39, %50 : vector<8x48xf32>
    %cst_44 = arith.constant 0.000000e+00 : f32
    %52 = vector.broadcast %cst_44 : f32 to vector<8x48xf32>
    %53 = arith.maximumf %51, %52 : vector<8x48xf32>
    %c0_45 = arith.constant 0 : index
    %c0_46 = arith.constant 0 : index
    %c0_47 = arith.constant 0 : index
    %54 = vector.load %arg11[%c0_45, %c0_46, %c0_47] : memref<5x48x48xf32, #tpu.memory_space<vmem>>, vector<1x48x48xf32>
    %55 = vector.shape_cast %54 : vector<1x48x48xf32> to vector<48x48xf32>
    %cst_48 = arith.constant dense<0.000000e+00> : vector<8x48xf32>
    %56 = tpu.matmul %53, %55, %cst_48 {dimension_numbers = #tpu.dot_dimension_numbers<[1], [0], [0], [1], [0, 0, 1, 1], [], []>} : vector<8x48xf32>, vector<48x48xf32>, vector<8x48xf32> -> vector<8x48xf32>
    %cst_49 = arith.constant dense<0.000000e+00> : vector<8x48xf32>
    %57 = tpu.matmul %9, %56, %cst_49 {dimension_numbers = #tpu.dot_dimension_numbers<[1], [0], [0], [1], [0, 0, 1, 1], [], []>} : vector<8x8xf32>, vector<8x48xf32>, vector<8x48xf32> -> vector<8x48xf32>
    %c1 = arith.constant 1 : index
    %c0_50 = arith.constant 0 : index
    %c0_51 = arith.constant 0 : index
    %58 = vector.load %arg12[%c1, %c0_50, %c0_51] : memref<6x16x48xf32, #tpu.memory_space<vmem>>, vector<1x16x48xf32>
    %59 = vector.shape_cast %58 : vector<1x16x48xf32> to vector<16x48xf32>
    %cst_52 = arith.constant dense<0.000000e+00> : vector<8x48xf32>
    %60 = tpu.matmul %33, %59, %cst_52 {dimension_numbers = #tpu.dot_dimension_numbers<[1], [0], [0], [1], [0, 0, 1, 1], [], []>} : vector<8x16xf32>, vector<16x48xf32>, vector<8x48xf32> -> vector<8x48xf32>
    %c1_53 = arith.constant 1 : index
    %c0_54 = arith.constant 0 : index
    %c0_55 = arith.constant 0 : index
    %61 = vector.load %arg13[%c1_53, %c0_54, %c0_55] : memref<6x95x48xf32, #tpu.memory_space<vmem>>, vector<1x95x48xf32>
    %62 = vector.shape_cast %61 : vector<1x95x48xf32> to vector<95x48xf32>
    %cst_56 = arith.constant dense<0.000000e+00> : vector<8x48xf32>
    %63 = tpu.matmul %7, %62, %cst_56 {dimension_numbers = #tpu.dot_dimension_numbers<[1], [0], [0], [1], [0, 0, 1, 1], [], []>} : vector<8x95xf32>, vector<95x48xf32>, vector<8x48xf32> -> vector<8x48xf32>
    %64 = arith.addf %60, %63 : vector<8x48xf32>
    %c1_57 = arith.constant 1 : index
    %c0_58 = arith.constant 0 : index
    %c0_59 = arith.constant 0 : index
    %65 = vector.load %arg14[%c1_57, %c0_58, %c0_59] : memref<6x1x48xf32, #tpu.memory_space<vmem>>, vector<1x1x48xf32>
    %66 = vector.shape_cast %65 : vector<1x1x48xf32> to vector<1x48xf32>
    %67 = vector.broadcast %66 : vector<1x48xf32> to vector<8x48xf32>
    %68 = arith.addf %64, %67 : vector<8x48xf32>
    %69 = arith.addf %57, %68 : vector<8x48xf32>
    %cst_60 = arith.constant 0.000000e+00 : f32
    %70 = vector.broadcast %cst_60 : f32 to vector<8x48xf32>
    %71 = arith.maximumf %69, %70 : vector<8x48xf32>
    %c1_61 = arith.constant 1 : index
    %c0_62 = arith.constant 0 : index
    %c0_63 = arith.constant 0 : index
    %72 = vector.load %arg11[%c1_61, %c0_62, %c0_63] : memref<5x48x48xf32, #tpu.memory_space<vmem>>, vector<1x48x48xf32>
    %73 = vector.shape_cast %72 : vector<1x48x48xf32> to vector<48x48xf32>
    %cst_64 = arith.constant dense<0.000000e+00> : vector<8x48xf32>
    %74 = tpu.matmul %71, %73, %cst_64 {dimension_numbers = #tpu.dot_dimension_numbers<[1], [0], [0], [1], [0, 0, 1, 1], [], []>} : vector<8x48xf32>, vector<48x48xf32>, vector<8x48xf32> -> vector<8x48xf32>
    %cst_65 = arith.constant dense<0.000000e+00> : vector<8x48xf32>
    %75 = tpu.matmul %9, %74, %cst_65 {dimension_numbers = #tpu.dot_dimension_numbers<[1], [0], [0], [1], [0, 0, 1, 1], [], []>} : vector<8x8xf32>, vector<8x48xf32>, vector<8x48xf32> -> vector<8x48xf32>
    %c2 = arith.constant 2 : index
    %c0_66 = arith.constant 0 : index
    %c0_67 = arith.constant 0 : index
    %76 = vector.load %arg12[%c2, %c0_66, %c0_67] : memref<6x16x48xf32, #tpu.memory_space<vmem>>, vector<1x16x48xf32>
    %77 = vector.shape_cast %76 : vector<1x16x48xf32> to vector<16x48xf32>
    %cst_68 = arith.constant dense<0.000000e+00> : vector<8x48xf32>
    %78 = tpu.matmul %33, %77, %cst_68 {dimension_numbers = #tpu.dot_dimension_numbers<[1], [0], [0], [1], [0, 0, 1, 1], [], []>} : vector<8x16xf32>, vector<16x48xf32>, vector<8x48xf32> -> vector<8x48xf32>
    %c2_69 = arith.constant 2 : index
    %c0_70 = arith.constant 0 : index
    %c0_71 = arith.constant 0 : index
    %79 = vector.load %arg13[%c2_69, %c0_70, %c0_71] : memref<6x95x48xf32, #tpu.memory_space<vmem>>, vector<1x95x48xf32>
    %80 = vector.shape_cast %79 : vector<1x95x48xf32> to vector<95x48xf32>
    %cst_72 = arith.constant dense<0.000000e+00> : vector<8x48xf32>
    %81 = tpu.matmul %7, %80, %cst_72 {dimension_numbers = #tpu.dot_dimension_numbers<[1], [0], [0], [1], [0, 0, 1, 1], [], []>} : vector<8x95xf32>, vector<95x48xf32>, vector<8x48xf32> -> vector<8x48xf32>
    %82 = arith.addf %78, %81 : vector<8x48xf32>
    %c2_73 = arith.constant 2 : index
    %c0_74 = arith.constant 0 : index
    %c0_75 = arith.constant 0 : index
    %83 = vector.load %arg14[%c2_73, %c0_74, %c0_75] : memref<6x1x48xf32, #tpu.memory_space<vmem>>, vector<1x1x48xf32>
    %84 = vector.shape_cast %83 : vector<1x1x48xf32> to vector<1x48xf32>
    %85 = vector.broadcast %84 : vector<1x48xf32> to vector<8x48xf32>
    %86 = arith.addf %82, %85 : vector<8x48xf32>
    %87 = arith.addf %75, %86 : vector<8x48xf32>
    %cst_76 = arith.constant 0.000000e+00 : f32
    %88 = vector.broadcast %cst_76 : f32 to vector<8x48xf32>
    %89 = arith.maximumf %87, %88 : vector<8x48xf32>
    %c2_77 = arith.constant 2 : index
    %c0_78 = arith.constant 0 : index
    %c0_79 = arith.constant 0 : index
    %90 = vector.load %arg11[%c2_77, %c0_78, %c0_79] : memref<5x48x48xf32, #tpu.memory_space<vmem>>, vector<1x48x48xf32>
    %91 = vector.shape_cast %90 : vector<1x48x48xf32> to vector<48x48xf32>
    %cst_80 = arith.constant dense<0.000000e+00> : vector<8x48xf32>
    %92 = tpu.matmul %89, %91, %cst_80 {dimension_numbers = #tpu.dot_dimension_numbers<[1], [0], [0], [1], [0, 0, 1, 1], [], []>} : vector<8x48xf32>, vector<48x48xf32>, vector<8x48xf32> -> vector<8x48xf32>
    %cst_81 = arith.constant dense<0.000000e+00> : vector<8x48xf32>
    %93 = tpu.matmul %9, %92, %cst_81 {dimension_numbers = #tpu.dot_dimension_numbers<[1], [0], [0], [1], [0, 0, 1, 1], [], []>} : vector<8x8xf32>, vector<8x48xf32>, vector<8x48xf32> -> vector<8x48xf32>
    %c3 = arith.constant 3 : index
    %c0_82 = arith.constant 0 : index
    %c0_83 = arith.constant 0 : index
    %94 = vector.load %arg12[%c3, %c0_82, %c0_83] : memref<6x16x48xf32, #tpu.memory_space<vmem>>, vector<1x16x48xf32>
    %95 = vector.shape_cast %94 : vector<1x16x48xf32> to vector<16x48xf32>
    %cst_84 = arith.constant dense<0.000000e+00> : vector<8x48xf32>
    %96 = tpu.matmul %33, %95, %cst_84 {dimension_numbers = #tpu.dot_dimension_numbers<[1], [0], [0], [1], [0, 0, 1, 1], [], []>} : vector<8x16xf32>, vector<16x48xf32>, vector<8x48xf32> -> vector<8x48xf32>
    %c3_85 = arith.constant 3 : index
    %c0_86 = arith.constant 0 : index
    %c0_87 = arith.constant 0 : index
    %97 = vector.load %arg13[%c3_85, %c0_86, %c0_87] : memref<6x95x48xf32, #tpu.memory_space<vmem>>, vector<1x95x48xf32>
    %98 = vector.shape_cast %97 : vector<1x95x48xf32> to vector<95x48xf32>
    %cst_88 = arith.constant dense<0.000000e+00> : vector<8x48xf32>
    %99 = tpu.matmul %7, %98, %cst_88 {dimension_numbers = #tpu.dot_dimension_numbers<[1], [0], [0], [1], [0, 0, 1, 1], [], []>} : vector<8x95xf32>, vector<95x48xf32>, vector<8x48xf32> -> vector<8x48xf32>
    %100 = arith.addf %96, %99 : vector<8x48xf32>
    %c3_89 = arith.constant 3 : index
    %c0_90 = arith.constant 0 : index
    %c0_91 = arith.constant 0 : index
    %101 = vector.load %arg14[%c3_89, %c0_90, %c0_91] : memref<6x1x48xf32, #tpu.memory_space<vmem>>, vector<1x1x48xf32>
    %102 = vector.shape_cast %101 : vector<1x1x48xf32> to vector<1x48xf32>
    %103 = vector.broadcast %102 : vector<1x48xf32> to vector<8x48xf32>
    %104 = arith.addf %100, %103 : vector<8x48xf32>
    %105 = arith.addf %93, %104 : vector<8x48xf32>
    %cst_92 = arith.constant 0.000000e+00 : f32
    %106 = vector.broadcast %cst_92 : f32 to vector<8x48xf32>
    %107 = arith.maximumf %105, %106 : vector<8x48xf32>
    %c3_93 = arith.constant 3 : index
    %c0_94 = arith.constant 0 : index
    %c0_95 = arith.constant 0 : index
    %108 = vector.load %arg11[%c3_93, %c0_94, %c0_95] : memref<5x48x48xf32, #tpu.memory_space<vmem>>, vector<1x48x48xf32>
    %109 = vector.shape_cast %108 : vector<1x48x48xf32> to vector<48x48xf32>
    %cst_96 = arith.constant dense<0.000000e+00> : vector<8x48xf32>
    %110 = tpu.matmul %107, %109, %cst_96 {dimension_numbers = #tpu.dot_dimension_numbers<[1], [0], [0], [1], [0, 0, 1, 1], [], []>} : vector<8x48xf32>, vector<48x48xf32>, vector<8x48xf32> -> vector<8x48xf32>
    %cst_97 = arith.constant dense<0.000000e+00> : vector<8x48xf32>
    %111 = tpu.matmul %9, %110, %cst_97 {dimension_numbers = #tpu.dot_dimension_numbers<[1], [0], [0], [1], [0, 0, 1, 1], [], []>} : vector<8x8xf32>, vector<8x48xf32>, vector<8x48xf32> -> vector<8x48xf32>
    %c4 = arith.constant 4 : index
    %c0_98 = arith.constant 0 : index
    %c0_99 = arith.constant 0 : index
    %112 = vector.load %arg12[%c4, %c0_98, %c0_99] : memref<6x16x48xf32, #tpu.memory_space<vmem>>, vector<1x16x48xf32>
    %113 = vector.shape_cast %112 : vector<1x16x48xf32> to vector<16x48xf32>
    %cst_100 = arith.constant dense<0.000000e+00> : vector<8x48xf32>
    %114 = tpu.matmul %33, %113, %cst_100 {dimension_numbers = #tpu.dot_dimension_numbers<[1], [0], [0], [1], [0, 0, 1, 1], [], []>} : vector<8x16xf32>, vector<16x48xf32>, vector<8x48xf32> -> vector<8x48xf32>
    %c4_101 = arith.constant 4 : index
    %c0_102 = arith.constant 0 : index
    %c0_103 = arith.constant 0 : index
    %115 = vector.load %arg13[%c4_101, %c0_102, %c0_103] : memref<6x95x48xf32, #tpu.memory_space<vmem>>, vector<1x95x48xf32>
    %116 = vector.shape_cast %115 : vector<1x95x48xf32> to vector<95x48xf32>
    %cst_104 = arith.constant dense<0.000000e+00> : vector<8x48xf32>
    %117 = tpu.matmul %7, %116, %cst_104 {dimension_numbers = #tpu.dot_dimension_numbers<[1], [0], [0], [1], [0, 0, 1, 1], [], []>} : vector<8x95xf32>, vector<95x48xf32>, vector<8x48xf32> -> vector<8x48xf32>
    %118 = arith.addf %114, %117 : vector<8x48xf32>
    %c4_105 = arith.constant 4 : index
    %c0_106 = arith.constant 0 : index
    %c0_107 = arith.constant 0 : index
    %119 = vector.load %arg14[%c4_105, %c0_106, %c0_107] : memref<6x1x48xf32, #tpu.memory_space<vmem>>, vector<1x1x48xf32>
    %120 = vector.shape_cast %119 : vector<1x1x48xf32> to vector<1x48xf32>
    %121 = vector.broadcast %120 : vector<1x48xf32> to vector<8x48xf32>
    %122 = arith.addf %118, %121 : vector<8x48xf32>
    %123 = arith.addf %111, %122 : vector<8x48xf32>
    %cst_108 = arith.constant 0.000000e+00 : f32
    %124 = vector.broadcast %cst_108 : f32 to vector<8x48xf32>
    %125 = arith.maximumf %123, %124 : vector<8x48xf32>
    %c4_109 = arith.constant 4 : index
    %c0_110 = arith.constant 0 : index
    %c0_111 = arith.constant 0 : index
    %126 = vector.load %arg11[%c4_109, %c0_110, %c0_111] : memref<5x48x48xf32, #tpu.memory_space<vmem>>, vector<1x48x48xf32>
    %127 = vector.shape_cast %126 : vector<1x48x48xf32> to vector<48x48xf32>
    %cst_112 = arith.constant dense<0.000000e+00> : vector<8x48xf32>
    %128 = tpu.matmul %125, %127, %cst_112 {dimension_numbers = #tpu.dot_dimension_numbers<[1], [0], [0], [1], [0, 0, 1, 1], [], []>} : vector<8x48xf32>, vector<48x48xf32>, vector<8x48xf32> -> vector<8x48xf32>
    %cst_113 = arith.constant dense<0.000000e+00> : vector<8x48xf32>
    %129 = tpu.matmul %9, %128, %cst_113 {dimension_numbers = #tpu.dot_dimension_numbers<[1], [0], [0], [1], [0, 0, 1, 1], [], []>} : vector<8x8xf32>, vector<8x48xf32>, vector<8x48xf32> -> vector<8x48xf32>
    %c5 = arith.constant 5 : index
    %c0_114 = arith.constant 0 : index
    %c0_115 = arith.constant 0 : index
    %130 = vector.load %arg12[%c5, %c0_114, %c0_115] : memref<6x16x48xf32, #tpu.memory_space<vmem>>, vector<1x16x48xf32>
    %131 = vector.shape_cast %130 : vector<1x16x48xf32> to vector<16x48xf32>
    %cst_116 = arith.constant dense<0.000000e+00> : vector<8x48xf32>
    %132 = tpu.matmul %33, %131, %cst_116 {dimension_numbers = #tpu.dot_dimension_numbers<[1], [0], [0], [1], [0, 0, 1, 1], [], []>} : vector<8x16xf32>, vector<16x48xf32>, vector<8x48xf32> -> vector<8x48xf32>
    %c5_117 = arith.constant 5 : index
    %c0_118 = arith.constant 0 : index
    %c0_119 = arith.constant 0 : index
    %133 = vector.load %arg13[%c5_117, %c0_118, %c0_119] : memref<6x95x48xf32, #tpu.memory_space<vmem>>, vector<1x95x48xf32>
    %134 = vector.shape_cast %133 : vector<1x95x48xf32> to vector<95x48xf32>
    %cst_120 = arith.constant dense<0.000000e+00> : vector<8x48xf32>
    %135 = tpu.matmul %7, %134, %cst_120 {dimension_numbers = #tpu.dot_dimension_numbers<[1], [0], [0], [1], [0, 0, 1, 1], [], []>} : vector<8x95xf32>, vector<95x48xf32>, vector<8x48xf32> -> vector<8x48xf32>
    %136 = arith.addf %132, %135 : vector<8x48xf32>
    %c5_121 = arith.constant 5 : index
    %c0_122 = arith.constant 0 : index
    %c0_123 = arith.constant 0 : index
    %137 = vector.load %arg14[%c5_121, %c0_122, %c0_123] : memref<6x1x48xf32, #tpu.memory_space<vmem>>, vector<1x1x48xf32>
    %138 = vector.shape_cast %137 : vector<1x1x48xf32> to vector<1x48xf32>
    %139 = vector.broadcast %138 : vector<1x48xf32> to vector<8x48xf32>
    %140 = arith.addf %136, %139 : vector<8x48xf32>
    %141 = arith.addf %129, %140 : vector<8x48xf32>
    %cst_124 = arith.constant 0.000000e+00 : f32
    %142 = vector.broadcast %cst_124 : f32 to vector<8x48xf32>
    %143 = arith.maximumf %141, %142 : vector<8x48xf32>
    %144 = vector.extract_strided_slice %143 {offsets = [0, 0], sizes = [8, 16], strides = [1, 1]} : vector<8x48xf32> to vector<8x16xf32>
    %145 = vector.extract_strided_slice %143 {offsets = [0, 16], sizes = [8, 16], strides = [1, 1]} : vector<8x48xf32> to vector<8x16xf32>
    %146 = arith.addf %144, %145 : vector<8x16xf32>
    %147 = vector.extract_strided_slice %143 {offsets = [0, 32], sizes = [8, 16], strides = [1, 1]} : vector<8x48xf32> to vector<8x16xf32>
    %148 = arith.addf %146, %147 : vector<8x16xf32>
    %cst_125 = arith.constant 0.333333343 : f32
    %149 = vector.broadcast %cst_125 : f32 to vector<8x16xf32>
    %150 = arith.mulf %148, %149 : vector<8x16xf32>
    %cst_126 = arith.constant 0.000000e+00 : f32
    %151 = vector.broadcast %cst_126 : f32 to vector<8x16xf32>
    %152 = arith.maximumf %150, %151 : vector<8x16xf32>
    %c0_127 = arith.constant 0 : index
    %c0_128 = arith.constant 0 : index
    %153 = vector.load %arg15[%c0_127, %c0_128] : memref<16x1xf32, #tpu.memory_space<vmem>>, vector<16x1xf32>
    %cst_129 = arith.constant dense<0.000000e+00> : vector<8x1xf32>
    %154 = tpu.matmul %152, %153, %cst_129 {dimension_numbers = #tpu.dot_dimension_numbers<[1], [0], [0], [1], [0, 0, 1, 1], [], []>} : vector<8x16xf32>, vector<16x1xf32>, vector<8x1xf32> -> vector<8x1xf32>
    %c0_130 = arith.constant 0 : index
    %c0_131 = arith.constant 0 : index
    %155 = vector.load %arg16[%c0_130, %c0_131] : memref<1x1xf32, #tpu.memory_space<vmem>>, vector<1x1xf32>
    %156 = vector.broadcast %155 : vector<1x1xf32> to vector<8x1xf32>
    %157 = arith.addf %154, %156 : vector<8x1xf32>
    %cst_132 = arith.constant 0.000000e+00 : f32
    %158 = vector.broadcast %cst_132 : f32 to vector<8x1xf32>
    %159 = arith.cmpf ogt, %11, %158 : vector<8x1xf32>
    %cst_133 = arith.constant -1.000000e+30 : f32
    %160 = vector.broadcast %cst_133 : f32 to vector<8x1xf32>
    %161 = arith.select %159, %157, %160 : vector<8x1xi1>, vector<8x1xf32>
    %cst_134 = arith.constant dense<0xFF800000> : vector<1xf32>
    %162 = vector.multi_reduction <maximumf>, %161, %cst_134 [0] : vector<8x1xf32> to vector<1xf32>
    %163 = vector.shape_cast %162 : vector<1xf32> to vector<1x1xf32>
    %164 = vector.broadcast %163 : vector<1x1xf32> to vector<8x1xf32>
    %165 = arith.subf %161, %164 : vector<8x1xf32>
    %166 = math.exp %165 : vector<8x1xf32>
    %cst_135 = arith.constant dense<0.000000e+00> : vector<1xf32>
    %167 = vector.multi_reduction <add>, %166, %cst_135 [0] : vector<8x1xf32> to vector<1xf32>
    %168 = vector.shape_cast %167 : vector<1xf32> to vector<1x1xf32>
    %169 = tpu.reciprocal %168 {approx = true} : vector<1x1xf32> -> vector<1x1xf32>
    %170 = vector.broadcast %169 : vector<1x1xf32> to vector<8x1xf32>
    %171 = arith.mulf %166, %170 : vector<8x1xf32>
    %172 = vector.broadcast %171 : vector<8x1xf32> to vector<8x16xf32>
    %173 = arith.mulf %152, %172 : vector<8x16xf32>
    %cst_136 = arith.constant dense<0.000000e+00> : vector<16xf32>
    %174 = vector.multi_reduction <add>, %173, %cst_136 [0] : vector<8x16xf32> to vector<16xf32>
    %175 = vector.shape_cast %174 : vector<16xf32> to vector<1x16xf32>
    %c0_137 = arith.constant 0 : index
    %c0_138 = arith.constant 0 : index
    %176 = vector.load %arg17[%c0_137, %c0_138] : memref<16x32xf32, #tpu.memory_space<vmem>>, vector<16x32xf32>
    %cst_139 = arith.constant dense<0.000000e+00> : vector<1x32xf32>
    %177 = tpu.matmul %175, %176, %cst_139 {dimension_numbers = #tpu.dot_dimension_numbers<[1], [0], [0], [1], [0, 0, 1, 1], [], []>} : vector<1x16xf32>, vector<16x32xf32>, vector<1x32xf32> -> vector<1x32xf32>
    %c0_140 = arith.constant 0 : index
    %c0_141 = arith.constant 0 : index
    %178 = vector.load %arg18[%c0_140, %c0_141] : memref<1x32xf32, #tpu.memory_space<vmem>>, vector<1x32xf32>
    %179 = arith.addf %177, %178 : vector<1x32xf32>
    %cst_142 = arith.constant 0.000000e+00 : f32
    %180 = vector.broadcast %cst_142 : f32 to vector<1x32xf32>
    %181 = arith.maximumf %179, %180 : vector<1x32xf32>
    %c0_143 = arith.constant 0 : index
    %c0_144 = arith.constant 0 : index
    %182 = vector.load %arg19[%c0_143, %c0_144] : memref<32x16xf32, #tpu.memory_space<vmem>>, vector<32x16xf32>
    %cst_145 = arith.constant dense<0.000000e+00> : vector<1x16xf32>
    %183 = tpu.matmul %181, %182, %cst_145 {dimension_numbers = #tpu.dot_dimension_numbers<[1], [0], [0], [1], [0, 0, 1, 1], [], []>} : vector<1x32xf32>, vector<32x16xf32>, vector<1x16xf32> -> vector<1x16xf32>
    %c0_146 = arith.constant 0 : index
    %c0_147 = arith.constant 0 : index
    %184 = vector.load %arg20[%c0_146, %c0_147] : memref<1x16xf32, #tpu.memory_space<vmem>>, vector<1x16xf32>
    %185 = arith.addf %183, %184 : vector<1x16xf32>
    %cst_148 = arith.constant 0.000000e+00 : f32
    %186 = vector.broadcast %cst_148 : f32 to vector<1x16xf32>
    %187 = arith.maximumf %185, %186 : vector<1x16xf32>
    %c0_149 = arith.constant 0 : index
    %c0_150 = arith.constant 0 : index
    %188 = vector.load %arg21[%c0_149, %c0_150] : memref<16x8xf32, #tpu.memory_space<vmem>>, vector<16x8xf32>
    %cst_151 = arith.constant dense<0.000000e+00> : vector<1x8xf32>
    %189 = tpu.matmul %187, %188, %cst_151 {dimension_numbers = #tpu.dot_dimension_numbers<[1], [0], [0], [1], [0, 0, 1, 1], [], []>} : vector<1x16xf32>, vector<16x8xf32>, vector<1x8xf32> -> vector<1x8xf32>
    %c0_152 = arith.constant 0 : index
    %c0_153 = arith.constant 0 : index
    %190 = vector.load %arg22[%c0_152, %c0_153] : memref<1x8xf32, #tpu.memory_space<vmem>>, vector<1x8xf32>
    %191 = arith.addf %189, %190 : vector<1x8xf32>
    %cst_154 = arith.constant 0.000000e+00 : f32
    %192 = vector.broadcast %cst_154 : f32 to vector<1x8xf32>
    %193 = arith.maximumf %191, %192 : vector<1x8xf32>
    %c0_155 = arith.constant 0 : index
    %c0_156 = arith.constant 0 : index
    %194 = vector.load %arg23[%c0_155, %c0_156] : memref<8x1xf32, #tpu.memory_space<vmem>>, vector<8x1xf32>
    %cst_157 = arith.constant dense<0.000000e+00> : vector<1x1xf32>
    %195 = tpu.matmul %193, %194, %cst_157 {dimension_numbers = #tpu.dot_dimension_numbers<[1], [0], [0], [1], [0, 0, 1, 1], [], []>} : vector<1x8xf32>, vector<8x1xf32>, vector<1x1xf32> -> vector<1x1xf32>
    %c0_158 = arith.constant 0 : index
    %c0_159 = arith.constant 0 : index
    %196 = vector.load %arg24[%c0_158, %c0_159] : memref<1x1xf32, #tpu.memory_space<vmem>>, vector<1x1xf32>
    %197 = arith.addf %195, %196 : vector<1x1xf32>
    %c0_160 = arith.constant 0 : index
    %c0_161 = arith.constant 0 : index
    %c0_162 = arith.constant 0 : index
    %198 = vector.load %arg25[%c0_160, %c0_161, %c0_162] : memref<1x1x1xf32, #tpu.memory_space<vmem>>, vector<1x1x1xf32>
    %199 = vector.shape_cast %198 : vector<1x1x1xf32> to vector<1x1xf32>
    %200 = vector.shape_cast %197 : vector<1x1xf32> to vector<1x1x1xf32>
    tpu.vector_store %arg25[%c0_160, %c0_161, %c0_162], %200 {strides = array<i32>} : memref<1x1x1xf32, #tpu.memory_space<vmem>>, vector<1x1x1xf32>,
    return
  }
  func.func @transform_0(%arg0: i32) -> (i32, i32, i32) {
    %c0_i32 = arith.constant 0 : i32
    %c0_i32_0 = arith.constant 0 : i32
    %c0_i32_1 = arith.constant 0 : i32
    return %arg0, %c0_i32, %c0_i32_0 : i32, i32, i32
  }
  func.func @transform_1(%arg0: i32) -> (i32, i32, i32) {
    %c0_i32 = arith.constant 0 : i32
    %c0_i32_0 = arith.constant 0 : i32
    %c0_i32_1 = arith.constant 0 : i32
    return %arg0, %c0_i32, %c0_i32_0 : i32, i32, i32
  }
  func.func @transform_2(%arg0: i32) -> (i32, i32, i32) {
    %c0_i32 = arith.constant 0 : i32
    %c0_i32_0 = arith.constant 0 : i32
    %c0_i32_1 = arith.constant 0 : i32
    return %arg0, %c0_i32, %c0_i32_0 : i32, i32, i32
  }
  func.func @transform_3(%arg0: i32) -> (i32, i32, i32) {
    %c0_i32 = arith.constant 0 : i32
    %c0_i32_0 = arith.constant 0 : i32
    %c0_i32_1 = arith.constant 0 : i32
    return %arg0, %c0_i32, %c0_i32_0 : i32, i32, i32
  }
  func.func @transform_4(%arg0: i32) -> (i32, i32, i32) {
    %c0_i32 = arith.constant 0 : i32
    %c0_i32_0 = arith.constant 0 : i32
    %c0_i32_1 = arith.constant 0 : i32
    return %arg0, %c0_i32, %c0_i32_0 : i32, i32, i32
  }
  func.func @transform_5(%arg0: i32) -> (i32, i32, i32) {
    %c0_i32 = arith.constant 0 : i32
    %c0_i32_0 = arith.constant 0 : i32
    %c0_i32_1 = arith.constant 0 : i32
    return %arg0, %c0_i32, %c0_i32_0 : i32, i32, i32
  }
  func.func @transform_6(%arg0: i32) -> (i32, i32) {
    %c0_i32 = arith.constant 0 : i32
    %c0_i32_0 = arith.constant 0 : i32
    %c0_i32_1 = arith.constant 0 : i32
    return %c0_i32, %c0_i32_0 : i32, i32
  }
  func.func @transform_7(%arg0: i32) -> (i32, i32) {
    %c0_i32 = arith.constant 0 : i32
    %c0_i32_0 = arith.constant 0 : i32
    %c0_i32_1 = arith.constant 0 : i32
    return %c0_i32, %c0_i32_0 : i32, i32
  }
  func.func @transform_8(%arg0: i32) -> (i32, i32) {
    %c0_i32 = arith.constant 0 : i32
    %c0_i32_0 = arith.constant 0 : i32
    %c0_i32_1 = arith.constant 0 : i32
    return %c0_i32, %c0_i32_0 : i32, i32
  }
  func.func @transform_9(%arg0: i32) -> (i32, i32) {
    %c0_i32 = arith.constant 0 : i32
    %c0_i32_0 = arith.constant 0 : i32
    %c0_i32_1 = arith.constant 0 : i32
    return %c0_i32, %c0_i32_0 : i32, i32
  }
  func.func @transform_10(%arg0: i32) -> (i32, i32, i32) {
    %c0_i32 = arith.constant 0 : i32
    %c0_i32_0 = arith.constant 0 : i32
    %c0_i32_1 = arith.constant 0 : i32
    %c0_i32_2 = arith.constant 0 : i32
    return %c0_i32, %c0_i32_0, %c0_i32_1 : i32, i32, i32
  }
  func.func @transform_11(%arg0: i32) -> (i32, i32, i32) {
    %c0_i32 = arith.constant 0 : i32
    %c0_i32_0 = arith.constant 0 : i32
    %c0_i32_1 = arith.constant 0 : i32
    %c0_i32_2 = arith.constant 0 : i32
    return %c0_i32, %c0_i32_0, %c0_i32_1 : i32, i32, i32
  }
  func.func @transform_12(%arg0: i32) -> (i32, i32, i32) {
    %c0_i32 = arith.constant 0 : i32
    %c0_i32_0 = arith.constant 0 : i32
    %c0_i32_1 = arith.constant 0 : i32
    %c0_i32_2 = arith.constant 0 : i32
    return %c0_i32, %c0_i32_0, %c0_i32_1 : i32, i32, i32
  }
  func.func @transform_13(%arg0: i32) -> (i32, i32, i32) {
    %c0_i32 = arith.constant 0 : i32
    %c0_i32_0 = arith.constant 0 : i32
    %c0_i32_1 = arith.constant 0 : i32
    %c0_i32_2 = arith.constant 0 : i32
    return %c0_i32, %c0_i32_0, %c0_i32_1 : i32, i32, i32
  }
  func.func @transform_14(%arg0: i32) -> (i32, i32) {
    %c0_i32 = arith.constant 0 : i32
    %c0_i32_0 = arith.constant 0 : i32
    %c0_i32_1 = arith.constant 0 : i32
    return %c0_i32, %c0_i32_0 : i32, i32
  }
  func.func @transform_15(%arg0: i32) -> (i32, i32) {
    %c0_i32 = arith.constant 0 : i32
    %c0_i32_0 = arith.constant 0 : i32
    %c0_i32_1 = arith.constant 0 : i32
    return %c0_i32, %c0_i32_0 : i32, i32
  }
  func.func @transform_16(%arg0: i32) -> (i32, i32) {
    %c0_i32 = arith.constant 0 : i32
    %c0_i32_0 = arith.constant 0 : i32
    %c0_i32_1 = arith.constant 0 : i32
    return %c0_i32, %c0_i32_0 : i32, i32
  }
  func.func @transform_17(%arg0: i32) -> (i32, i32) {
    %c0_i32 = arith.constant 0 : i32
    %c0_i32_0 = arith.constant 0 : i32
    %c0_i32_1 = arith.constant 0 : i32
    return %c0_i32, %c0_i32_0 : i32, i32
  }
  func.func @transform_18(%arg0: i32) -> (i32, i32) {
    %c0_i32 = arith.constant 0 : i32
    %c0_i32_0 = arith.constant 0 : i32
    %c0_i32_1 = arith.constant 0 : i32
    return %c0_i32, %c0_i32_0 : i32, i32
  }
  func.func @transform_19(%arg0: i32) -> (i32, i32) {
    %c0_i32 = arith.constant 0 : i32
    %c0_i32_0 = arith.constant 0 : i32
    %c0_i32_1 = arith.constant 0 : i32
    return %c0_i32, %c0_i32_0 : i32, i32
  }
  func.func @transform_20(%arg0: i32) -> (i32, i32) {
    %c0_i32 = arith.constant 0 : i32
    %c0_i32_0 = arith.constant 0 : i32
    %c0_i32_1 = arith.constant 0 : i32
    return %c0_i32, %c0_i32_0 : i32, i32
  }
  func.func @transform_21(%arg0: i32) -> (i32, i32) {
    %c0_i32 = arith.constant 0 : i32
    %c0_i32_0 = arith.constant 0 : i32
    %c0_i32_1 = arith.constant 0 : i32
    return %c0_i32, %c0_i32_0 : i32, i32
  }
  func.func @transform_22(%arg0: i32) -> (i32, i32) {
    %c0_i32 = arith.constant 0 : i32
    %c0_i32_0 = arith.constant 0 : i32
    %c0_i32_1 = arith.constant 0 : i32
    return %c0_i32, %c0_i32_0 : i32, i32
  }
  func.func @transform_23(%arg0: i32) -> (i32, i32) {
    %c0_i32 = arith.constant 0 : i32
    %c0_i32_0 = arith.constant 0 : i32
    %c0_i32_1 = arith.constant 0 : i32
    return %c0_i32, %c0_i32_0 : i32, i32
  }
  func.func @transform_24(%arg0: i32) -> (i32, i32, i32) {
    %c0_i32 = arith.constant 0 : i32
    %c0_i32_0 = arith.constant 0 : i32
    %c0_i32_1 = arith.constant 0 : i32
    return %arg0, %c0_i32, %c0_i32_0 : i32, i32, i32
  }
}

</mosaic_0001>

<bundles_post_ra>
// kernel: _forward_device.2
= control target key start
LH: loop header
LB: loop body
LE: loop exit
PB: predicated region body
PF: predicated region fallthrough
CT: control target
= control target key end

     0   :  { %v2532_v0 = vmov 0.0|0.0   ;;  %vm2533_vm0 = vmmov 0   ;;  %v2534_v4 = vmov 0.0   ;;  %v2535_v7 = vmov 0   ;;  %s3148_s0 = inlined_call_operand.vmem [shape: f32[32,8], index: 0, kind: input, shape index: {}]   ;;  %s3149_s1 = inlined_call_operand.vmem [shape: f32[40,4], index: 1, kind: input, shape index: {}]   ;;  %s3150_s2 = inlined_call_operand.vmem [shape: f32[40,32], index: 2, kind: input, shape index: {}]   ;;  %s3151_s4 = inlined_call_operand.vmem [shape: f32[4,8,16], index: 4, kind: input, shape index: {}]   ;;  %s3152_s5 = inlined_call_operand.vmem [shape: f32[8,16], index: 5, kind: input, shape index: {}]   ;;  %s3153_s6 = inlined_call_operand.vmem [shape: f32[8,16], index: 6, kind: input, shape index: {}]   ;;  %s3154_s3 = inlined_call_operand.vmem [shape: f32[32,40], index: 3, kind: input, shape index: {}]   ;;  %s3155_s10 = inlined_call_operand.vmem [shape: f32[16,16], index: 10, kind: input, shape index: {}]   ;;  %s3156_s7 = inlined_call_operand.vmem [shape: f32[1,16], index: 7, kind: input, shape index: {}]   ;;  %s3157_s8 = inlined_call_operand.vmem [shape: f32[4,16,16], index: 8, kind: input, shape index: {}]   ;;  %s3158_s9 = inlined_call_operand.vmem [shape: f32[16,16], index: 9, kind: input, shape index: {}]   ;;  %s3159_s11 = inlined_call_operand.vmem [shape: f32[1,16], index: 11, kind: input, shape index: {}]   ;;  %s3160_s12 = inlined_call_operand.vmem [shape: f32[32,16], index: 12, kind: output, shape index: {}]  }
   0x1   :  { %2376 = vmatprep.subr.bf16.mxu1 %v2532_v0  ;;  %v2608_v1 = vld [vmem:[%s3148_s0] sm:$0xff]  ;;  %v2613_v2 = vld [vmem:[%s3148_s0 + $0x8] sm:$0xff]  ;;  %v2618_v3 = vld [vmem:[%s3148_s0 + $0x10] sm:$0xff]  ;;  %2108 = vmatprep.mubr.msk.f32.mxu1 %vm2533_vm0, %v2534_v4  ;;  %vm59_vm1 = vcmask 261120   ;;  %v2536_v16 = vmov 1   ;;  %v2537_v20 = vmov 2  }
   0x2   :  { %v2377_v5 = vpack.c.bf16 %v2613_v2, %v2608_v1  ;;  %v2627_v6 = vld [vmem:[%s3148_s0 + $0x18] sm:$0xff]  ;;  %2525 = vset.pattern.permute.xlu1 %v2535_v7  ;;  %2524 = vset.pattern.permute.xlu0 %v2535_v7  ;;  %v47_v9 = vld [vmem:[%s3149_s1 + $0x10] sm:$0xff]  ;;  %v45_v10 = vld [vmem:[%s3149_s1] sm:$0xff]  ;;  %v2538_v22 = vmov 3   ;;  %vm197_vm2 = vcmask 64512   ;;  %vm917_vm3 = vcmask 326656  }
   0x3   :  { %v2380_v8 = vpack.c.bf16 %v2627_v6, %v2618_v3  ;;  %178 = vperm.xlu1 %2525, %v47_v9   ;;  %v48_v11 = vld [vmem:[%s3149_s1 + $0x18] sm:$0xff]  ;;  %168 = vperm.xlu0 %2524, %v45_v10   ;;  %v46_v12 = vld [vmem:[%s3149_s1 + $0x8] sm:$0xff]  ;;  %v2647_v13 = vld [vmem:[%s3150_s2] sm:$0xff]  ;;  %vm1129_vm4 = vcmask 130048  }
   0x4   :  { %2378 = vmatpush3.bf16.msra.mxu1 %v2377_v5  ;;  %v49_v14 = vld [vmem:[%s3149_s1 + $0x20] sm:$0xff]  ;;  %v2660_v15 = vld [vmem:[%s3150_s2 + $0x8] sm:$0xff]  ;;  %v2669_v17 = vld [vmem:[%s3150_s2 + $0x10] sm:$0xff]  ;;  %2210 = vmatprep.mubr.msk.f32.mxu0 %vm197_vm2, %v2608_v1 }
   0x5   :  { %2379 = vmatprep.subr.bf16.mxu1 %v2532_v0  ;;  %v2678_v18 = vld [vmem:[%s3150_s2 + $0x18] sm:$0xff]  ;;  %v2687_v19 = vld [vmem:[%s3150_s2 + $0x20] sm:$0xff]  ;;  %v1916_v44 = vld [vmem:[%s3151_s4 + $0x8] sm:$0xff] }
   0x6   :  { %v196_v21 = vld [vmem:[%s3151_s4] sm:$0xff]  ;;  %v1922_v47 = vld [vmem:[%s3151_s4 + $0x10] sm:$0xff]  ;;  %v1928_v58 = vld [vmem:[%s3151_s4 + $0x18] sm:$0xff] }
   0x7   :  { %183 = vperm.xlu1 %2525, %v48_v11   ;;  %173 = vperm.xlu0 %2524, %v46_v12   ;;  %v165_v27 = vld [vmem:[%s3152_s5] sm:$0xff] }
   0x8   :  { %2381 = vmatpush3.bf16.msra.mxu1 %v2380_v8 }
   0x9   :  { %2123 = vmatprep.subr.mxu1 %v2534_v4 }
   0xb   :  { %2109 = vmatmul.mubr.msk.f32.vlgmr.msra.gmra.mrb[0].mxu1 %vm59_vm1, %v2647_v13  ;;  %2526 = vset.pattern.permute.xlu1 %v2536_v16 }
   0xc   :  { %2111 = vmatprep.mubr.msk.f32.mxu1 %vm2533_vm0, %v2534_v4  ;;  %409 = vperm.xlu1 %2526, %v45_v10  }
   0xd   :  { %188 = vperm.xlu0 %2524, %v49_v14   ;;  %2124 = vmatpush3.msra.mxu1 %v196_v21 }
   0xe   :  { %2140 = vmatprep.subr.mxu1 %v2534_v4 }
   0xf   :  { %2112 = vmatmul.mubr.msk.f32.gmra.mrb[2].mxu1 %vm59_vm1, %v2660_v15 }
  0x10   :  { %2114 = vmatprep.mubr.msk.f32.mxu1 %vm2533_vm0, %v2534_v4  ;;  %417 = vperm.xlu1 %2526, %v47_v9  }
  0x11   :  { %2527 = vset.pattern.permute.xlu0 %v2536_v16 }
  0x12   :  { %413 = vperm.xlu0 %2527, %v46_v12  }
  0x13   :  { %2115 = vmatmul.mubr.msk.f32.gmra.mrb[4].mxu1 %vm59_vm1, %v2669_v17 }
  0x14   :  { %2117 = vmatprep.mubr.msk.f32.mxu1 %vm2533_vm0, %v2534_v4  ;;  %421 = vperm.xlu1 %2526, %v48_v11  }
  0x16   :  { %425 = vperm.xlu0 %2527, %v49_v14  }
  0x17   :  { %2118 = vmatmul.mubr.msk.f32.gmra.mrb[6].mxu1 %vm59_vm1, %v2678_v18 }
  0x18   :  { %2120 = vmatprep.mubr.msk.f32.mxu1 %vm2533_vm0, %v2534_v4  ;;  %2528 = vset.pattern.permute.xlu1 %v2537_v20 }
  0x19   :  { %546 = vperm.xlu1 %2528, %v45_v10  }
  0x1a   :  { %2529 = vset.pattern.permute.xlu0 %v2537_v20 }
  0x1b   :  { %2121 = vmatmul.mubr.msk.f32.gmra.mrb[8].mxu1 %vm59_vm1, %v2687_v19  ;;  %550 = vperm.xlu0 %2529, %v46_v12  }
  0x1c   :  { %2125 = vmatprep.mubr.msk.f32.mxu1 %vm2533_vm0, %v2534_v4 }
  0x1d   :  { %554 = vperm.xlu1 %2528, %v47_v9  }
  0x1f   :  { %562 = vperm.xlu0 %2529, %v49_v14  }
  0x21   :  { %558 = vperm.xlu1 %2528, %v48_v11  }
  0x23   :  { %2531 = vset.pattern.permute.xlu0 %v2538_v22 }
  0x24   :  { %687 = vperm.xlu0 %2531, %v46_v12  }
  0x25   :  { %2530 = vset.pattern.permute.xlu1 %v2538_v22 }
  0x26   :  { %683 = vperm.xlu1 %2530, %v45_v10  }
  0x28   :  { %699 = vperm.xlu0 %2531, %v49_v14  }
  0x2a   :  { %691 = vperm.xlu1 %2530, %v47_v9  }
  0x2e   :  { %695 = vperm.xlu1 %2530, %v48_v11  }
  0x82   :  { %v2699_v23 = vpop.permute.xlu0 %168  ;;  %v2718_v32 = vpop.permute.xlu1 %178 }
  0x86   :  { %v2709_v28 = vpop.permute.xlu0 %173  ;;  %v2728_v36 = vpop.permute.xlu1 %183 }
  0x8b   :  { %v2770_v45 = vpop.permute.xlu1 %409 }
  0x8c   :  { %v2737_v40 = vpop.permute.xlu0 %188 }
  0x8f   :  { %v2787_v50 = vpop.permute.xlu1 %417 }
  0x91   :  { %v2780_v48 = vpop.permute.xlu0 %413 }
  0x93   :  { %v2795_v52 = vpop.permute.xlu1 %421 }
  0x95   :  { %v2802_v54 = vpop.permute.xlu0 %425 }
  0x98   :  { %v2809_v56 = vpop.permute.xlu1 %546 }
  0x9a   :  { %v2819_v59 = vpop.permute.xlu0 %550 }
  0x9c   :  { %v2825_v61 = vpop.permute.xlu1 %554 }
  0x9e   :  { %v2840_v5 = vpop.permute.xlu0 %562 }
  0xa0   :  { %v2833_v63 = vpop.permute.xlu1 %558 }
  0xa3   :  { %v2853_v10 = vpop.permute.xlu0 %687 }
  0xa5   :  { %v2846_v8 = vpop.permute.xlu1 %683 }
  0xa7   :  { %v2874_v21 = vpop.permute.xlu0 %699 }
  0xa9   :  { %v2856_v11 = vpop.permute.xlu1 %691 }
  0xad   :  { %v2867_v16 = vpop.permute.xlu1 %695 }
  0xde   :  { %v2701_v24 = vpop.f32.mrb[0].mxu1 }
  0xdf   :  { %v191_v25 = vmul.f32 %v2699_v23, %v2701_v24  ;;  %v2110_v26 = vpop.f32.mrb[1].mxu1  ;;  %v428_v46 = vmul.f32 %v2770_v45, %v2701_v24  ;;  %v565_v57 = vmul.f32 %v2809_v56, %v2701_v24  ;;  %v702_v9 = vmul.f32 %v2846_v8, %v2701_v24 }
  0xe1   :  { %2126 = vmatmul.mubr.msk.f32.vlgmr.msra.gmra.mrb[10].mxu1 %vm197_vm2, %v191_v25  ;;  %v2894_v25 = vld [vmem:[%s3154_s3] sm:$0xff] }
  0xe2   :  { %v2711_v29 = vpop.f32.mrb[2].mxu1  ;;  %2128 = vmatprep.mubr.msk.f32.mxu1 %vm2533_vm0, %v2534_v4  ;;  %2141 = vmatpush3.msra.mxu1 %v165_v27 }
  0xe3   :  { %v2113_v30 = vpop.f32.mrb[3].mxu1  ;;  %v192_v31 = vmul.f32 %v2709_v28, %v2711_v29  ;;  %2157 = vmatprep.subr.mxu1 %v2534_v4  ;;  %v429_v49 = vmul.f32 %v2780_v48, %v2711_v29  ;;  %v566_v60 = vmul.f32 %v2819_v59, %v2711_v29  ;;  %v703_v12 = vmul.f32 %v2853_v10, %v2711_v29 }
  0xe5   :  { %2129 = vmatmul.mubr.msk.f32.gmra.mrb[12].mxu1 %vm197_vm2, %v192_v31 }
  0xe6   :  { %v2721_v33 = vpop.f32.mrb[4].mxu1  ;;  %2131 = vmatprep.mubr.msk.f32.mxu1 %vm2533_vm0, %v2534_v4 }
  0xe7   :  { %v2116_v34 = vpop.f32.mrb[5].mxu1  ;;  %v193_v35 = vmul.f32 %v2718_v32, %v2721_v33  ;;  %v430_v51 = vmul.f32 %v2787_v50, %v2721_v33  ;;  %v567_v62 = vmul.f32 %v2825_v61, %v2721_v33  ;;  %v704_v14 = vmul.f32 %v2856_v11, %v2721_v33 }
  0xe9   :  { %2132 = vmatmul.mubr.msk.f32.gmra.mrb[14].mxu1 %vm197_vm2, %v193_v35 }
  0xea   :  { %v2730_v37 = vpop.f32.mrb[6].mxu1  ;;  %2134 = vmatprep.mubr.msk.f32.mxu1 %vm2533_vm0, %v2534_v4 }
  0xeb   :  { %v2119_v38 = vpop.f32.mrb[7].mxu1  ;;  %v194_v39 = vmul.f32 %v2728_v36, %v2730_v37  ;;  %v431_v53 = vmul.f32 %v2795_v52, %v2730_v37  ;;  %v568_v1 = vmul.f32 %v2833_v63, %v2730_v37  ;;  %v705_v20 = vmul.f32 %v2867_v16, %v2730_v37 }
  0xec   :  { %v2901_v38 = vld [vmem:[%s3154_s3 + $0x8] sm:$0xff] }
  0xed   :  { %2135 = vmatmul.mubr.msk.f32.gmra.mrb[16].mxu1 %vm197_vm2, %v194_v39  ;;  %v57_v39 = vld [vmem:[%s3154_s3 + $0x10] sm:$0xff] }
  0xee   :  { %v2739_v41 = vpop.f32.mrb[8].mxu1  ;;  %2137 = vmatprep.mubr.msk.f32.mxu1 %vm2533_vm0, %v2534_v4 }
  0xef   :  { %v2122_v42 = vpop.f32.mrb[9].mxu1  ;;  %v195_v43 = vmul.f32 %v2737_v40, %v2739_v41  ;;  %v432_v55 = vmul.f32 %v2802_v54, %v2739_v41  ;;  %v569_v7 = vmul.f32 %v2840_v5, %v2739_v41  ;;  %v706_v22 = vmul.f32 %v2874_v21, %v2739_v41 }
  0xf0   :  { %v1694_v42 = vld [vmem:[%s3155_s10] sm:$0xff] }
  0xf1   :  { %2138 = vmatmul.mubr.msk.f32.gmra.mrb[18].mxu1 %vm197_vm2, %v195_v43  ;;  %v1695_v43 = vld [vmem:[%s3155_s10 + $0x8] sm:$0xff] }
  0xf2   :  { %2142 = vmatprep.mubr.msk.f32.mxu1 %vm2533_vm0, %v2534_v4 }
  0xf5   :  { %2143 = vmatmul.mubr.msk.f32.vlgmr.msra.gmra.mrb[10].mxu1 %vm197_vm2, %v2701_v24  ;;  %v819_v24 = vld [vmem:[%s3153_s6] sm:$0xff] }
  0xf6   :  { %2145 = vmatprep.mubr.msk.f32.mxu1 %vm2533_vm0, %v2534_v4  ;;  %2158 = vmatpush3.msra.mxu1 %v1916_v44  ;;  %v2411_v44 = vpack.c.bf16 %v1695_v43, %v1694_v42  ;;  %v1959_v42 = vld [vmem:[%s3157_s8 + $0x18] sm:$0xff]  ;;  %v1966_v43 = vld [vmem:[%s3157_s8 + $0x28] sm:$0xff] }
  0xf7   :  { %2174 = vmatprep.subr.mxu1 %v2534_v4  ;;  %2208 = vmatprep.subr.mxu0 %v819_v24 }
  0xf8   :  { %2209 = vmatpush3.msra.mxu0 %v819_v24 }
  0xf9   :  { %2146 = vmatmul.mubr.msk.f32.gmra.mrb[12].mxu1 %vm197_vm2, %v2711_v29  ;;  %2211 = vmatmul.mubr.msk.f32.vlgmr.msra.gmra.mrb[0].mxu0 %vm197_vm2, %v2613_v2 }
  0xfa   :  { %2148 = vmatprep.mubr.msk.f32.mxu1 %vm2533_vm0, %v2534_v4  ;;  %2213 = vmatprep.mubr.msk.f32.mxu0 %vm197_vm2, %v2618_v3 }
  0xfd   :  { %2149 = vmatmul.mubr.msk.f32.gmra.mrb[14].mxu1 %vm197_vm2, %v2721_v33  ;;  %2214 = vmatmul.mubr.msk.f32.gmra.mrb[2].mxu0 %vm197_vm2, %v2627_v6 }
  0xfe   :  { %2151 = vmatprep.mubr.msk.f32.mxu1 %vm2533_vm0, %v2534_v4  ;;  %2226 = vmatprep.mubr.msk.f32.mxu0 %vm917_vm3, %v2894_v25 }
 0x101   :  { %2152 = vmatmul.mubr.msk.f32.gmra.mrb[16].mxu1 %vm197_vm2, %v2730_v37 }
 0x102   :  { %2154 = vmatprep.mubr.msk.f32.mxu1 %vm2533_vm0, %v2534_v4 }
 0x105   :  { %2155 = vmatmul.mubr.msk.f32.gmra.mrb[18].mxu1 %vm197_vm2, %v2739_v41  ;;  %v2913_v41 = vld [vmem:[%s3154_s3 + $0x18] sm:$0xff] }
 0x106   :  { %2159 = vmatprep.mubr.msk.f32.mxu1 %vm2533_vm0, %v2534_v4 }
 0x109   :  { %2160 = vmatmul.mubr.msk.f32.vlgmr.msra.gmra.mrb[10].mxu1 %vm197_vm2, %v428_v46  ;;  %v1942_v46 = vld [vmem:[%s3156_s7] ss:$0 sm:$0xff] }
 0x10a   :  { %2162 = vmatprep.mubr.msk.f32.mxu1 %vm2533_vm0, %v2534_v4  ;;  %2175 = vmatpush3.msra.mxu1 %v1922_v47 }
 0x10b   :  { %2191 = vmatprep.subr.mxu1 %v2534_v4 }
 0x10d   :  { %2163 = vmatmul.mubr.msk.f32.gmra.mrb[12].mxu1 %vm197_vm2, %v429_v49 }
 0x10e   :  { %2165 = vmatprep.mubr.msk.f32.mxu1 %vm2533_vm0, %v2534_v4 }
 0x111   :  { %2166 = vmatmul.mubr.msk.f32.gmra.mrb[14].mxu1 %vm197_vm2, %v430_v51 }
 0x112   :  { %2168 = vmatprep.mubr.msk.f32.mxu1 %vm2533_vm0, %v2534_v4 }
 0x115   :  { %2169 = vmatmul.mubr.msk.f32.gmra.mrb[16].mxu1 %vm197_vm2, %v431_v53 }
 0x116   :  { %2171 = vmatprep.mubr.msk.f32.mxu1 %vm2533_vm0, %v2534_v4 }
 0x119   :  { %2172 = vmatmul.mubr.msk.f32.gmra.mrb[18].mxu1 %vm197_vm2, %v432_v55 }
 0x11a   :  { %2176 = vmatprep.mubr.msk.f32.mxu1 %vm2533_vm0, %v2534_v4 }
 0x11d   :  { %2177 = vmatmul.mubr.msk.f32.vlgmr.msra.gmra.mrb[10].mxu1 %vm197_vm2, %v565_v57 }
 0x11e   :  { %2179 = vmatprep.mubr.msk.f32.mxu1 %vm2533_vm0, %v2534_v4  ;;  %2192 = vmatpush3.msra.mxu1 %v1928_v58 }
 0x11f   :  { %2412 = vmatprep.subr.bf16.mxu1 %v2411_v44 }
 0x121   :  { %2180 = vmatmul.mubr.msk.f32.gmra.mrb[12].mxu1 %vm197_vm2, %v566_v60 }
 0x122   :  { %2182 = vmatprep.mubr.msk.f32.mxu1 %vm2533_vm0, %v2534_v4 }
 0x125   :  { %2183 = vmatmul.mubr.msk.f32.gmra.mrb[14].mxu1 %vm197_vm2, %v567_v62 }
 0x126   :  { %2185 = vmatprep.mubr.msk.f32.mxu1 %vm2533_vm0, %v2534_v4 }
 0x129   :  { %2186 = vmatmul.mubr.msk.f32.gmra.mrb[16].mxu1 %vm197_vm2, %v568_v1 }
 0x12a   :  { %2188 = vmatprep.mubr.msk.f32.mxu1 %vm2533_vm0, %v2534_v4 }
 0x12d   :  { %2189 = vmatmul.mubr.msk.f32.gmra.mrb[18].mxu1 %vm197_vm2, %v569_v7 }
 0x12e   :  { %2193 = vmatprep.mubr.msk.f32.mxu1 %vm2533_vm0, %v2534_v4 }
 0x131   :  { %2194 = vmatmul.mubr.msk.f32.vlgmr.msra.gmra.mrb[10].mxu1 %vm197_vm2, %v702_v9 }
 0x132   :  { %2196 = vmatprep.mubr.msk.f32.mxu1 %vm2533_vm0, %v2534_v4  ;;  %2414 = vmatpush3.bf16.msra.mxu1 %v2411_v44 }
 0x135   :  { %2197 = vmatmul.mubr.msk.f32.gmra.mrb[12].mxu1 %vm197_vm2, %v703_v12 }
 0x136   :  { %2199 = vmatprep.mubr.msk.f32.mxu1 %vm2533_vm0, %v2534_v4 }
 0x139   :  { %2200 = vmatmul.mubr.msk.f32.gmra.mrb[14].mxu1 %vm197_vm2, %v704_v14  ;;  %v1127_v14 = vld [vmem:[%s3157_s8] sm:$0xff] }
 0x13a   :  { %2202 = vmatprep.mubr.msk.f32.mxu1 %vm2533_vm0, %v2534_v4 }
 0x13d   :  { %2203 = vmatmul.mubr.msk.f32.gmra.mrb[16].mxu1 %vm197_vm2, %v705_v20  ;;  %v1128_v20 = vld [vmem:[%s3157_s8 + $0x8] sm:$0xff] }
 0x13e   :  { %2205 = vmatprep.mubr.msk.f32.mxu1 %vm2533_vm0, %v2534_v4  ;;  %v2397_v24 = vpack.c.bf16 %v1128_v20, %v1127_v14 }
 0x141   :  { %2206 = vmatmul.mubr.msk.f32.gmra.mrb[18].mxu1 %vm197_vm2, %v706_v22 }
 0x204   :  { %v790_v26 = vpop.f32.mrb[10].mxu1 }
 0x205   :  { %v2195_v27 = vpop.f32.mrb[11].mxu1 }
 0x208   :  { %v795_v29 = vpop.f32.mrb[12].mxu1 }
 0x209   :  { %v2382_v30 = vpack.c.bf16 %v795_v29, %v790_v26  ;;  %v2198_v2 = vpop.f32.mrb[13].mxu1 }
 0x20b   :  { %2383 = vmatprep.subr.bf16.mxu0 %v2382_v30 }
 0x20c   :  { %v800_v31 = vpop.f32.mrb[14].mxu1  ;;  %2385 = vmatpush3.bf16.msra.mxu0 %v2382_v30 }
 0x20d   :  { %v2201_v3 = vpop.f32.mrb[15].mxu1 }
 0x210   :  { %v805_v33 = vpop.f32.mrb[16].mxu1 }
 0x211   :  { %v2386_v6 = vpack.c.bf16 %v805_v33, %v800_v31  ;;  %v2204_v34 = vpop.f32.mrb[17].mxu1 }
 0x213   :  { %2387 = vmatprep.subr.bf16.mxu0 %v2386_v6 }
 0x214   :  { %v810_v35 = vpop.f32.mrb[18].mxu1  ;;  %2389 = vmatpush3.bf16.msra.mxu0 %v2386_v6 }
 0x215   :  { %v2207_v37 = vpop.f32.mrb[19].mxu1  ;;  %2224 = vmatprep.subr.mxu0 %v810_v35 }
 0x218   :  { %2225 = vmatpush3.msra.mxu0 %v810_v35 }
 0x219   :  { %2227 = vmatmul.mubr.msk.f32.vlgmr.msra.gmra.mrb[0].mxu0 %vm917_vm3, %v2901_v38  ;;  %2390 = vmatprep.subr.bf16.mxu0 %v2532_v0 }
 0x21a   :  { %2229 = vmatprep.mubr.msk.f32.mxu0 %vm917_vm3, %v57_v39 }
 0x21d   :  { %2230 = vmatmul.mubr.msk.f32.gmra.mrb[2].mxu0 %vm917_vm3, %v2913_v41 }
 0x21e   :  { %2240 = vmatprep.mubr.msk.f32.mxu0 %vm2533_vm0, %v2534_v4 }
 0x2ec   :  { %v2228_v47 = vpop.f32.mrb[0].mxu0 }
 0x2ed   :  { %v1023_v49 = vadd.f32 %v2228_v47, %v1942_v46  ;;  %v996_v51 = vpop.f32.mrb[1].mxu0 }
 0x2ee   :  { %v1022_v53 = vadd.f32 %v1942_v46, %v996_v51 }
 0x2ef   :  { %v1027_v55 = vmax.f32 %v1023_v49, 0.0 }
 0x2f0   :  { %v1026_v57 = vmax.f32 %v1022_v53, 0.0  ;;  %v2231_v58 = vpop.f32.mrb[2].mxu0 }
 0x2f1   :  { %v1025_v60 = vadd.f32 %v2231_v58, %v1942_v46  ;;  %v1006_v62 = vpop.f32.mrb[3].mxu0 }
 0x2f2   :  { %v2391_v1 = vpack.c.bf16 %v1027_v55, %v1026_v57  ;;  %v1024_v7 = vadd.f32 %v1942_v46, %v1006_v62  ;;  %2354 = vmatprep.mubr.msk.f32.mxu1 %vm1129_vm4, %v1026_v57 }
 0x2f3   :  { %v1029_v9 = vmax.f32 %v1025_v60, 0.0  ;;  %2355 = vmatmul.mubr.msk.f32.vlgmr.msra.gmra.mrb[20].mxu1 %vm1129_vm4, %v1027_v55 }
 0x2f4   :  { %v1028_v12 = vmax.f32 %v1024_v7, 0.0  ;;  %2392 = vmatpush3.bf16.msra.mxu0 %v2391_v1 }
 0x2f5   :  { %2393 = vmatprep.subr.bf16.mxu0 %v2532_v0 }
 0x2f6   :  { %v2394_v22 = vpack.c.bf16 %v1029_v9, %v1028_v12  ;;  %2357 = vmatprep.mubr.msk.f32.mxu1 %vm1129_vm4, %v1028_v12 }
 0x2f7   :  { %2358 = vmatmul.mubr.msk.f32.gmra.mrb[22].mxu1 %vm1129_vm4, %v1029_v9  ;;  %v1987_v9 = vld [vmem:[%s3159_s11] ss:$0 sm:$0xff] }
 0x2f8   :  { %2395 = vmatpush3.bf16.msra.mxu0 %v2394_v22  ;;  %2373 = vmatprep.mubr.msk.f32.mxu1 %vm917_vm3, %v57_v39  ;;  %v1958_v39 = vld [vmem:[%s3157_s8 + $0x10] sm:$0xff] }
 0x2f9   :  { %2396 = vmatprep.subr.bf16.mxu0 %v2532_v0 }
 0x2fb   :  { %2241 = vmatmul.mubr.msk.f32.vlgmr.msra.gmra.mrb[4].mxu0 %vm59_vm1, %v2647_v13 }
 0x2fc   :  { %2243 = vmatprep.mubr.msk.f32.mxu0 %vm2533_vm0, %v2534_v4  ;;  %2398 = vmatpush3.bf16.msra.mxu0 %v2397_v24 }
 0x2fd   :  { %2399 = vmatprep.subr.bf16.mxu0 %v2532_v0 }
 0x2ff   :  { %2244 = vmatmul.mubr.msk.f32.gmra.mrb[6].mxu0 %vm59_vm1, %v2660_v15 }
 0x300   :  { %2246 = vmatprep.mubr.msk.f32.mxu0 %vm2533_vm0, %v2534_v4 }
 0x303   :  { %2247 = vmatmul.mubr.msk.f32.gmra.mrb[8].mxu0 %vm59_vm1, %v2669_v17  ;;  %v1120_v17 = vld [vmem:[%s3158_s9] sm:$0xff] }
 0x304   :  { %2249 = vmatprep.mubr.msk.f32.mxu0 %vm2533_vm0, %v2534_v4 }
 0x307   :  { %2250 = vmatmul.mubr.msk.f32.gmra.mrb[10].mxu0 %vm59_vm1, %v2678_v18  ;;  %v1121_v18 = vld [vmem:[%s3158_s9 + $0x8] sm:$0xff] }
 0x308   :  { %2252 = vmatprep.mubr.msk.f32.mxu0 %vm2533_vm0, %v2534_v4  ;;  %v2400_v27 = vpack.c.bf16 %v1121_v18, %v1120_v17 }
 0x30b   :  { %2253 = vmatmul.mubr.msk.f32.gmra.mrb[12].mxu0 %vm59_vm1, %v2687_v19 }
 0x30c   :  { %2259 = vmatprep.mubr.msk.f32.mxu0 %vm2533_vm0, %v2534_v4 }
 0x3c6   :  { %v2962_v13 = vpop.f32.mrb[20].mxu1 }
 0x3c7   :  { %v2964_v15 = vpop.f32.mrb[21].mxu1 }
 0x3ce   :  { %v2972_v26 = vpop.f32.mrb[4].mxu0 }
 0x3cf   :  { %v1122_v19 = vmul.f32 %v2972_v26, %v2699_v23  ;;  %v2242_v29 = vpop.f32.mrb[5].mxu0  ;;  %v1340_v46 = vmul.f32 %v2972_v26, %v2770_v45  ;;  %v1458_v51 = vmul.f32 %v2972_v26, %v2809_v56 }
 0x3d1   :  { %2260 = vmatmul.mubr.msk.f32.vlgmr.msra.gmra.mrb[14].mxu0 %vm1129_vm4, %v1122_v19 }
 0x3d2   :  { %v2977_v30 = vpop.f32.mrb[6].mxu0  ;;  %2262 = vmatprep.mubr.msk.f32.mxu0 %vm2533_vm0, %v2534_v4  ;;  %2401 = vmatpush3.bf16.msra.mxu0 %v2400_v27 }
 0x3d3   :  { %v2245_v2 = vpop.f32.mrb[7].mxu0  ;;  %v1123_v31 = vmul.f32 %v2977_v30, %v2709_v28  ;;  %2402 = vmatprep.subr.bf16.mxu0 %v2532_v0  ;;  %v1341_v47 = vmul.f32 %v2977_v30, %v2780_v48  ;;  %v1972_v48 = vld [vmem:[%s3157_s8 + $0x30] sm:$0xff] }
 0x3d5   :  { %2263 = vmatmul.mubr.msk.f32.gmra.mrb[16].mxu0 %vm1129_vm4, %v1123_v31 }
 0x3d6   :  { %v2985_v3 = vpop.f32.mrb[8].mxu0  ;;  %2265 = vmatprep.mubr.msk.f32.mxu0 %vm2533_vm0, %v2534_v4 }
 0x3d7   :  { %v2248_v23 = vpop.f32.mrb[9].mxu0  ;;  %v1124_v33 = vmul.f32 %v2985_v3, %v2718_v32  ;;  %v1342_v49 = vmul.f32 %v2985_v3, %v2787_v50  ;;  %v1973_v50 = vld [vmem:[%s3157_s8 + $0x38] sm:$0xff]  ;;  %v1460_v53 = vmul.f32 %v2985_v3, %v2825_v61  ;;  %v1576_v61 = vmul.f32 %v2972_v26, %v2846_v8 }
 0x3d9   :  { %2266 = vmatmul.mubr.msk.f32.gmra.mrb[18].mxu0 %vm1129_vm4, %v1124_v33 }
 0x3da   :  { %v2992_v6 = vpop.f32.mrb[10].mxu0  ;;  %2268 = vmatprep.mubr.msk.f32.mxu0 %vm2533_vm0, %v2534_v4 }
 0x3db   :  { %v2251_v28 = vpop.f32.mrb[11].mxu0  ;;  %v1125_v34 = vmul.f32 %v2992_v6, %v2728_v36  ;;  %v2403_v36 = vpack.c.bf16 %v1959_v42, %v1958_v39  ;;  %v1343_v45 = vmul.f32 %v2992_v6, %v2795_v52  ;;  %v2409_v52 = vpack.c.bf16 %v1973_v50, %v1972_v48 }
 0x3dc   :  { %v1461_v56 = vmul.f32 %v2992_v6, %v2833_v63  ;;  %v1577_v63 = vmul.f32 %v2977_v30, %v2853_v10  ;;  %v1579_v8 = vmul.f32 %v2992_v6, %v2867_v16 }
 0x3dd   :  { %2269 = vmatmul.mubr.msk.f32.gmra.mrb[20].mxu0 %vm1129_vm4, %v1125_v34 }
 0x3de   :  { %v2999_v35 = vpop.f32.mrb[12].mxu0  ;;  %2271 = vmatprep.mubr.msk.f32.mxu0 %vm2533_vm0, %v2534_v4 }
 0x3df   :  { %v2254_v37 = vpop.f32.mrb[13].mxu0  ;;  %v1126_v32 = vmul.f32 %v2999_v35, %v2737_v40  ;;  %v1965_v40 = vld [vmem:[%s3157_s8 + $0x20] sm:$0xff]  ;;  %v1580_v10 = vmul.f32 %v2999_v35, %v2874_v21 }
 0x3e0   :  { %v2406_v44 = vpack.c.bf16 %v1966_v43, %v1965_v40 }
 0x3e1   :  { %2272 = vmatmul.mubr.msk.f32.gmra.mrb[22].mxu0 %vm1129_vm4, %v1126_v32 }
 0x3e2   :  { %2278 = vmatprep.mubr.msk.f32.mxu0 %vm2533_vm0, %v2534_v4 }
 0x3e5   :  { %2279 = vmatmul.mubr.msk.f32.vlgmr.msra.gmra.mrb[14].mxu0 %vm1129_vm4, %v2972_v26 }
 0x3e6   :  { %2281 = vmatprep.mubr.msk.f32.mxu0 %vm2533_vm0, %v2534_v4  ;;  %2404 = vmatpush3.bf16.msra.mxu0 %v2403_v36 }
 0x3e7   :  { %2405 = vmatprep.subr.bf16.mxu0 %v2532_v0 }
 0x3e9   :  { %2282 = vmatmul.mubr.msk.f32.gmra.mrb[16].mxu0 %vm1129_vm4, %v2977_v30 }
 0x3ea   :  { %2284 = vmatprep.mubr.msk.f32.mxu0 %vm2533_vm0, %v2534_v4 }
 0x3ed   :  { %2285 = vmatmul.mubr.msk.f32.gmra.mrb[18].mxu0 %vm1129_vm4, %v2985_v3 }
 0x3ee   :  { %2287 = vmatprep.mubr.msk.f32.mxu0 %vm2533_vm0, %v2534_v4 }
 0x3f1   :  { %2288 = vmatmul.mubr.msk.f32.gmra.mrb[20].mxu0 %vm1129_vm4, %v2992_v6 }
 0x3f2   :  { %2290 = vmatprep.mubr.msk.f32.mxu0 %vm2533_vm0, %v2534_v4 }
 0x3f5   :  { %2291 = vmatmul.mubr.msk.f32.gmra.mrb[22].mxu0 %vm1129_vm4, %v2999_v35 }
 0x3f6   :  { %2297 = vmatprep.mubr.msk.f32.mxu0 %vm2533_vm0, %v2534_v4 }
 0x3f9   :  { %2298 = vmatmul.mubr.msk.f32.vlgmr.msra.gmra.mrb[14].mxu0 %vm1129_vm4, %v1340_v46 }
 0x3fa   :  { %2300 = vmatprep.mubr.msk.f32.mxu0 %vm2533_vm0, %v2534_v4  ;;  %2407 = vmatpush3.bf16.msra.mxu0 %v2406_v44 }
 0x3fb   :  { %2408 = vmatprep.subr.bf16.mxu0 %v2532_v0  ;;  %v1344_v0 = vmul.f32 %v2999_v35, %v2802_v54  ;;  %v1459_v54 = vmul.f32 %v2977_v30, %v2819_v59  ;;  %v1462_v59 = vmul.f32 %v2999_v35, %v2840_v5  ;;  %v1578_v5 = vmul.f32 %v2985_v3, %v2856_v11 }
 0x3fd   :  { %2301 = vmatmul.mubr.msk.f32.gmra.mrb[16].mxu0 %vm1129_vm4, %v1341_v47 }
 0x3fe   :  { %2303 = vmatprep.mubr.msk.f32.mxu0 %vm2533_vm0, %v2534_v4 }
 0x401   :  { %2304 = vmatmul.mubr.msk.f32.gmra.mrb[18].mxu0 %vm1129_vm4, %v1342_v49 }
 0x402   :  { %2306 = vmatprep.mubr.msk.f32.mxu0 %vm2533_vm0, %v2534_v4 }
 0x405   :  { %2307 = vmatmul.mubr.msk.f32.gmra.mrb[20].mxu0 %vm1129_vm4, %v1343_v45 }
 0x406   :  { %2309 = vmatprep.mubr.msk.f32.mxu0 %vm2533_vm0, %v2534_v4 }
 0x409   :  { %2310 = vmatmul.mubr.msk.f32.gmra.mrb[22].mxu0 %vm1129_vm4, %v1344_v0 }
 0x40a   :  { %2316 = vmatprep.mubr.msk.f32.mxu0 %vm2533_vm0, %v2534_v4 }
 0x40d   :  { %2317 = vmatmul.mubr.msk.f32.vlgmr.msra.gmra.mrb[14].mxu0 %vm1129_vm4, %v1458_v51 }
 0x40e   :  { %2319 = vmatprep.mubr.msk.f32.mxu0 %vm2533_vm0, %v2534_v4  ;;  %2410 = vmatpush3.bf16.msra.mxu0 %v2409_v52 }
 0x411   :  { %2320 = vmatmul.mubr.msk.f32.gmra.mrb[16].mxu0 %vm1129_vm4, %v1459_v54 }
 0x412   :  { %2322 = vmatprep.mubr.msk.f32.mxu0 %vm2533_vm0, %v2534_v4 }
 0x415   :  { %2323 = vmatmul.mubr.msk.f32.gmra.mrb[18].mxu0 %vm1129_vm4, %v1460_v53 }
 0x416   :  { %2325 = vmatprep.mubr.msk.f32.mxu0 %vm2533_vm0, %v2534_v4 }
 0x419   :  { %2326 = vmatmul.mubr.msk.f32.gmra.mrb[20].mxu0 %vm1129_vm4, %v1461_v56 }
 0x41a   :  { %2328 = vmatprep.mubr.msk.f32.mxu0 %vm2533_vm0, %v2534_v4 }
 0x41d   :  { %2329 = vmatmul.mubr.msk.f32.gmra.mrb[22].mxu0 %vm1129_vm4, %v1462_v59 }
 0x41e   :  { %2335 = vmatprep.mubr.msk.f32.mxu0 %vm2533_vm0, %v2534_v4 }
 0x421   :  { %2336 = vmatmul.mubr.msk.f32.vlgmr.msra.gmra.mrb[14].mxu0 %vm1129_vm4, %v1576_v61 }
 0x422   :  { %2338 = vmatprep.mubr.msk.f32.mxu0 %vm2533_vm0, %v2534_v4 }
 0x425   :  { %2339 = vmatmul.mubr.msk.f32.gmra.mrb[16].mxu0 %vm1129_vm4, %v1577_v63 }
 0x426   :  { %2341 = vmatprep.mubr.msk.f32.mxu0 %vm2533_vm0, %v2534_v4 }
 0x429   :  { %2342 = vmatmul.mubr.msk.f32.gmra.mrb[18].mxu0 %vm1129_vm4, %v1578_v5 }
 0x42a   :  { %2344 = vmatprep.mubr.msk.f32.mxu0 %vm2533_vm0, %v2534_v4 }
 0x42d   :  { %2345 = vmatmul.mubr.msk.f32.gmra.mrb[20].mxu0 %vm1129_vm4, %v1579_v8 }
 0x42e   :  { %2347 = vmatprep.mubr.msk.f32.mxu0 %vm2533_vm0, %v2534_v4 }
 0x431   :  { %2348 = vmatmul.mubr.msk.f32.gmra.mrb[22].mxu0 %vm1129_vm4, %v1580_v10 }
 0x432   :  { %2370 = vmatprep.mubr.msk.f32.mxu0 %vm917_vm3, %v2894_v25 }
 0x4f4   :  { %v1665_v11 = vpop.f32.mrb[14].mxu0 }
 0x4f5   :  { %v2337_v55 = vpop.f32.mrb[15].mxu0 }
 0x4f8   :  { %v1670_v57 = vpop.f32.mrb[16].mxu0 }
 0x4f9   :  { %v2415_v58 = vpack.c.bf16 %v1670_v57, %v1665_v11  ;;  %v2340_v60 = vpop.f32.mrb[17].mxu0 }
 0x4fb   :  { %2416 = vmatprep.subr.bf16.mxu0 %v2415_v58  ;;  %2423 = vmatprep.subr.bf16.mxu1 %v2415_v58 }
 0x4fc   :  { %v1675_v16 = vpop.f32.mrb[18].mxu0  ;;  %2418 = vmatpush3.bf16.msra.mxu0 %v2415_v58  ;;  %2426 = vmatpush3.bf16.msra.mxu1 %v2415_v58 }
 0x4fd   :  { %v2343_v62 = vpop.f32.mrb[19].mxu0 }
 0x500   :  { %v1680_v4 = vpop.f32.mrb[20].mxu0 }
 0x501   :  { %v2419_v1 = vpack.c.bf16 %v1680_v4, %v1675_v16  ;;  %v2346_v7 = vpop.f32.mrb[21].mxu0 }
 0x503   :  { %2420 = vmatprep.subr.bf16.mxu0 %v2419_v1  ;;  %2424 = vmatprep.subr.bf16.mxu1 %v2419_v1 }
 0x504   :  { %v1685_v21 = vpop.f32.mrb[22].mxu0  ;;  %2422 = vmatpush3.bf16.msra.mxu0 %v2419_v1  ;;  %2427 = vmatpush3.bf16.msra.mxu1 %v2419_v1 }
 0x505   :  { %v2349_v25 = vpop.f32.mrb[23].mxu0  ;;  %2368 = vmatprep.subr.mxu0 %v1685_v21  ;;  %2425 = vmatprep.subr.mxu1 %v1685_v21 }
 0x508   :  { %2369 = vmatpush3.msra.mxu0 %v1685_v21  ;;  %2428 = vmatpush3.msra.mxu1 %v1685_v21 }
 0x509   :  { %2371 = vmatmul.mubr.msk.f32.vlgmr.msra.gmra.mrb[24].mxu0 %vm917_vm3, %v2901_v38  ;;  %2374 = vmatmul.mubr.msk.f32.vlgmr.msra.gmra.mrb[22].mxu1 %vm917_vm3, %v2913_v41 }
 0x5dc   :  { %v2372_v12 = vpop.f32.mrb[24].mxu0  ;;  %v2375_v14 = vpop.f32.mrb[22].mxu1 }
 0x5dd   :  { %v1865_v20 = vadd.f32 %v2372_v12, %v2962_v13  ;;  %v1888_v22 = vadd.f32 %v2375_v14, %v1987_v9  ;;  %v1859_v24 = vpop.f32.mrb[25].mxu0  ;;  %v1869_v17 = vpop.f32.mrb[23].mxu1 }
 0x5de   :  { %v1860_v18 = vadd.f32 %v1859_v24, %v2964_v15  ;;  %v1887_v26 = vadd.f32 %v1987_v9, %v1869_v17 }
 0x5df   :  { %v1886_v27 = vadd.f32 %v1987_v9, %v1865_v20  ;;  %v1892_v19 = vmax.f32 %v1888_v22, 0.0 }
 0x5e0   :  { %v1885_v38 = vadd.f32 %v1987_v9, %v1860_v18  ;;  %v1891_v29 = vmax.f32 %v1887_v26, 0.0 }
 0x5e1   :  { %v1890_v30 = vmax.f32 %v1886_v27, 0.0  ;;  %1896 = vst.msk [vmem:[%s3160_s12 + $0x18] sm:$0xff] %vm1129_vm4, %v1892_v19 }
 0x5e2   :  { %v1889_v41 = vmax.f32 %v1885_v38, 0.0  ;;  %1895 = vst.msk [vmem:[%s3160_s12 + $0x10] sm:$0xff] %vm1129_vm4, %v1891_v29 }
 0x5e3   :  { %1894 = vst.msk [vmem:[%s3160_s12 + $0x8] sm:$0xff] %vm1129_vm4, %v1890_v30 }
 0x5e4   :  { %1893 = vst.msk [vmem:[%s3160_s12] sm:$0xff] %vm1129_vm4, %v1889_v41 }

// kernel: _forward_device.3
= control target key start
LH: loop header
LB: loop body
LE: loop exit
PB: predicated region body
PF: predicated region fallthrough
CT: control target
= control target key end

     0   :  { %s5480_s0 = inlined_call_operand.vmem [shape: f32[2,16,16], index: 0, kind: input, shape index: {}]   ;;  %s5481_s1 = inlined_call_operand.vmem [shape: f32[2,16,1], index: 1, kind: input, shape index: {}]   ;;  %s5482_s2 = inlined_call_operand.vmem [shape: f32[2,8,16], index: 2, kind: input, shape index: {}]   ;;  %s5483_s3 = inlined_call_operand.vmem [shape: f32[2,8,95], index: 3, kind: input, shape index: {}]   ;;  %s5484_s4 = inlined_call_operand.vmem [shape: f32[2,8,8], index: 4, kind: input, shape index: {}]   ;;  %s5485_s5 = inlined_call_operand.vmem [shape: f32[2,8,1], index: 5, kind: input, shape index: {}]   ;;  %s5486_s6 = inlined_call_operand.vmem [shape: f32[16,1], index: 6, kind: input, shape index: {}]   ;;  %s5487_s7 = inlined_call_operand.<no memory space> [shape: f32[1,1], index: 7, kind: input, shape index: {}]   ;;  %s5488_s8 = inlined_call_operand.vmem [shape: f32[16,48], index: 8, kind: input, shape index: {}]   ;;  %s5489_s9 = inlined_call_operand.vmem [shape: f32[95,48], index: 9, kind: input, shape index: {}]   ;;  %s5490_s10 = inlined_call_operand.vmem [shape: f32[5,48,48], index: 10, kind: input, shape index: {}]   ;;  %s5491_s11 = inlined_call_operand.vmem [shape: f32[6,16,48], index: 11, kind: input, shape index: {}]   ;;  %s5492_s12 = inlined_call_operand.vmem [shape: f32[6,95,48], index: 12, kind: input, shape index: {}]   ;;  %s5493_s13 = inlined_call_operand.vmem [shape: f32[6,1,48], index: 13, kind: input, shape index: {}]   ;;  %s5494_s14 = inlined_call_operand.vmem [shape: f32[16,1], index: 14, kind: input, shape index: {}]   ;;  %s5495_s16 = inlined_call_operand.vmem [shape: f32[16,32], index: 16, kind: input, shape index: {}]   ;;  %s5496_s17 = inlined_call_operand.vmem [shape: f32[1,32], index: 17, kind: input, shape index: {}]   ;;  %s5497_s18 = inlined_call_operand.vmem [shape: f32[32,16], index: 18, kind: input, shape index: {}]   ;;  %s5498_s19 = inlined_call_operand.vmem [shape: f32[1,16], index: 19, kind: input, shape index: {}]   ;;  %s5499_s20 = inlined_call_operand.vmem [shape: f32[16,8], index: 20, kind: input, shape index: {}]   ;;  %s5500_s21 = inlined_call_operand.vmem [shape: f32[1,8], index: 21, kind: input, shape index: {}]   ;;  %s5501_s22 = inlined_call_operand.vmem [shape: f32[8,1], index: 22, kind: input, shape index: {}]   ;;  %s5502_s24 = inlined_call_operand.vmem [shape: f32[2,1,1], index: 24, kind: output, shape index: {}]   ;;  %s5503_s15 = inlined_call_operand.<no memory space> [shape: f32[1,1], index: 15, kind: input, shape index: {}]   ;;  %s5504_s23 = inlined_call_operand.<no memory space> [shape: f32[1,1], index: 23, kind: input, shape index: {}]  }
   0x1   :  { %5507 = sst [smem:[#allocation5_spill]] %s5480_s0  ;;  %v31_v1 = vstv %s5503_s15  ;;  %v33_v2 = vstv %s5504_s23  ;;  %s4757_s0 = smov 0  }
   0x2   :  { %5508 = sst [smem:[#allocation6_spill]] %s5481_s1  ;;  %32 = vst [vmem:[#allocation3] sm:$0x1] %v31_v1  ;;  %34 = vst [vmem:[#allocation4] sm:$0x1] %v33_v2 }
   0x3   :  { %5509 = sst [smem:[#allocation7_spill]] %s5482_s2 }
   0x4   :  { %5510 = sst [smem:[#allocation8_spill]] %s5483_s3 }
   0x5   :  { %5511 = sst [smem:[#allocation9_spill]] %s5484_s4 }
   0x6   :  { %5512 = sst [smem:[#allocation10_spill]] %s5485_s5 }
   0x7   :  { %5513 = sst [smem:[#allocation11_spill]] %s5486_s6 }
   0x8   :  { %5514 = sst [smem:[#allocation12_spill]] %s5487_s7 }
   0x9   :  { %5515 = sst [smem:[#allocation13_spill]] %s5488_s8  ;;  %s5516_s27 = sld [smem:[#allocation12_spill]] }
   0xf   :  { %v29_v0 = vstv %s5516_s27 }
  0x10   :  { %30 = vst [vmem:[#allocation2] sm:$0x1] %v29_v0 }
  0x11 LB: > { %s3589_s7 = sadd.s32 4294967295, %s4614_s0   ;;  %p3593_p0 = scmp.ge.s32.totalorder %s4614_s0, 1  ;;  %s4614_s0 = sphi %s4757_s0, %s40_s0  }
  0x12   : > { %p714_p1 = scmp.lt.s32.totalorder %s4614_s0, 3 }
  0x14   : > { %p715_p2 = pnand %p3593_p0, %p714_p1 }
  0x15   : > { %s5517_s30 = sld [smem:[#allocation11_spill]] (!%p715_p2)  ;;  %p799_p3 = scmp.lt.s32.totalorder (!%p715_p2), %s3589_s7, 1  ;;  %vm845_vm0 = vcmask (!%p715_p2), 130048   ;;  %v4616_v8 = vmov (!%p715_p2), 0   ;;  %vm931_vm2 = vcmask (!%p715_p2), 7168   ;;  %v4617_v45 = vmov (!%p715_p2), 0.0|0.0  }
  0x16   : > { %718 = sbr.rel (%p715_p2) target bundleno = 4634 (0x121a), region = 116  ;;  %s5518_s5 = sld [smem:[#allocation5_spill]] (!%p715_p2)  ;;  %4597 = vset.pattern.permute.xlu0 (!%p715_p2), %v4616_v8  ;;  %4333 = vmatprep.subr.bf16.mxu1 (!%p715_p2), %v4617_v45  ;;  %vm4618_vm4 = vmmov (!%p715_p2), 0   ;;  %v4619_v46 = vmov (!%p715_p2), 0.0   ;;  %v1046_v47 = vld [vmem:[%s5489_s9] sm:$0xff] (!%p715_p2)  ;;  %v1047_v48 = vld [vmem:[%s5489_s9 + $0x8] sm:$0xff] (!%p715_p2) }
  0x17   : > { %s5519_s6 = sld [smem:[#allocation6_spill]] (!%p715_p2)  ;;  %v3602_v10 = vld [vmem:[#allocation2] ss:$0 sm:$0xff] (!%p715_p2)  ;;  %3946 = vmatprep.mubr.msk.f32.mxu1 (!%p715_p2), %vm4618_vm4, %v4619_v46  ;;  %v4337_v49 = vpack.c.bf16 (!%p715_p2), %v1047_v48, %v1046_v47  ;;  %v1048_v50 = vld [vmem:[%s5489_s9 + $0x10] sm:$0xff] (!%p715_p2)  ;;  %v1049_v51 = vld [vmem:[%s5489_s9 + $0x18] sm:$0xff] (!%p715_p2)  ;;  %vm1062_vm5 = vcmask (!%p715_p2), 1046528  }
  0x18   : > { %v4340_v52 = vpack.c.bf16 (!%p715_p2), %v1049_v51, %v1048_v50  ;;  %v1050_v53 = vld [vmem:[%s5489_s9 + $0x20] sm:$0xff] (!%p715_p2)  ;;  %v1051_v54 = vld [vmem:[%s5489_s9 + $0x28] sm:$0xff] (!%p715_p2)  ;;  %v1052_v56 = vld [vmem:[%s5489_s9 + $0x30] sm:$0xff] (!%p715_p2)  ;;  %vm4620_vm6 = vmmov (!%p715_p2), 1   ;;  %vm1058_vm8 = vcmask (!%p715_p2), 777216   ;;  %s5523_s3 = sld [smem:[#allocation13_spill]] (!%p715_p2) }
  0x19   : > { %v4343_v55 = vpack.c.bf16 (!%p715_p2), %v1051_v54, %v1050_v53  ;;  %v1053_v57 = vld [vmem:[%s5489_s9 + $0x38] sm:$0xff] (!%p715_p2)  ;;  %v1054_v59 = vld [vmem:[%s5489_s9 + $0x40] sm:$0xff] (!%p715_p2)  ;;  %v1055_v60 = vld [vmem:[%s5489_s9 + $0x48] sm:$0xff] (!%p715_p2)  ;;  %vm1374_vm9 = vcmask (!%p715_p2), 64512   ;;  %vm1455_vm10 = vcmask (!%p715_p2), 392192   ;;  %s4621_s4 = smov (!%p715_p2), 112  }
  0x1a   : > { %v4346_v58 = vpack.c.bf16 (!%p715_p2), %v1053_v57, %v1052_v56  ;;  %v4349_v61 = vpack.c.bf16 (!%p715_p2), %v1055_v60, %v1054_v59  ;;  %v1056_v62 = vld [vmem:[%s5489_s9 + $0x50] sm:$0xff] (!%p715_p2)  ;;  %v1057_v63 = vld [vmem:[%s5489_s9 + $0x58] sm:$0x7f] (!%p715_p2)  ;;  %vm4846_vm7 = vmpackc.low (!%p715_p2), %vm1062_vm5, %vm4620_vm6  ;;  %s4622_s1 = smov (!%p715_p2), 96   ;;  %s5526_s28 = sld [smem:[#allocation10_spill]] (!%p715_p2)  ;;  %vm3253_vm12 = vcmask (!%p715_p2), 261120  }
  0x1b   : > { %v836_v3 = vld [vmem:[%s5517_s30] sm:$0xff] (!%p715_p2)  ;;  %v837_v4 = vld [vmem:[%s5517_s30 + $0x8] sm:$0xff] (!%p715_p2)  ;;  %v4352_v0 = vpack.c.bf16 (!%p715_p2), %v1057_v63, %v1056_v62  ;;  %v3619_v48 = vld [vmem:[%s5492_s12 + $0x70] sm:$0xff] (!%p715_p2)  ;;  %vm3480_vm13 = vcmask (!%p715_p2), 0  }
  0x1c   : > { %v4329_v5 = vpack.c.bf16 (!%p715_p2), %v837_v4, %v836_v3  ;;  %v3622_v53 = vld [vmem:[%s5492_s12 + $0x88] sm:$0xff] (!%p715_p2)  ;;  %v3624_v56 = vld [vmem:[%s5492_s12 + $0x98] sm:$0xff] (!%p715_p2) }
  0x1d   : > { %s5528_s7 = smov (!%p799_p3, %s3589_s7), 1  ;;  %v3626_v59 = vld [vmem:[%s5492_s12 + $0xa8] sm:$0xff]  ;;  %v3628_v62 = vld [vmem:[%s5492_s12 + $0xb8] sm:$0x7f] }
  0x1e   : > { %4330 = vmatprep.subr.bf16.mxu0 %v4329_v5  ;;  %s3751_s8 = sshll.u32 %s5528_s7, 4  ;;  %s4839_s27 = sshll.u32 %s5528_s7, 3  ;;  %v1044_v3 = vld [vmem:[%s5523_s3] sm:$0xff]  ;;  %v1045_v4 = vld [vmem:[%s5523_s3 + $0x8] sm:$0xff] }
  0x1f   : > { %4332 = vmatpush3.bf16.msra.mxu0 %v4329_v5  ;;  %s803_s26 = scalar_lea.vmem %s5518_s5, %s3751_s8  ;;  %s808_s2 = scalar_lea.vmem %s5519_s6, %s3751_s8  ;;  %v4356_v5 = vpack.c.bf16 %v1045_v4, %v1044_v3  ;;  %v3616_v3 = vld [vmem:[%s5491_s11 + $0x18] sm:$0xff] }
  0x20   : > { %v4777_v6 = vld [vmem:[%s803_s26] sm:$0xff]  ;;  %v4779_v7 = vld [vmem:[%s803_s26 + $0x8] sm:$0xff]  ;;  %4336 = vmatprep.subr.bf16.mxu0 %v4617_v45  ;;  %s5524_s5 = sld [smem:[#allocation7_spill]]  ;;  %s824_s6 = scalar_lea.vmem %s5526_s28, %s4839_s27 }
  0x21   : > { %3939 = vmatprep.mubr.msk.f32.mxu0 %vm845_vm0, %v4777_v6  ;;  %v831_v9 = vld [vmem:[%s808_s2 + $0x8] sm:$0xff]  ;;  %v830_v11 = vld [vmem:[%s808_s2] sm:$0xff]  ;;  %s5520_s2 = sld [smem:[#allocation8_spill]] }
  0x22   : > { %3940 = vmatmul.mubr.msk.f32.vlgmr.msra.gmra.mrb[0].mxu0 %vm845_vm0, %v4779_v7  ;;  %vm928_vm1 = vcmp.gt.f32.partialorder %v831_v9, 0.0  ;;  %vm927_vm3 = vcmp.gt.f32.partialorder %v830_v11, 0.0 }
  0x23   : > { %3973 = vmatprep.mubr.msk.f32.mxu0 %vm4618_vm4, %v4619_v46  ;;  %4338 = vmatpush3.bf16.msra.mxu0 %v4337_v49  ;;  %v3620_v49 = vld [vmem:[%s5492_s12 + $0x78] sm:$0xff] }
  0x24   : > { %4339 = vmatprep.subr.bf16.mxu0 %v4617_v45  ;;  %v4393_v51 = vpack.c.bf16 %v3620_v49, %v3619_v48  ;;  %v3654_v48 = vld [vmem:[%s5492_s12 + $0x110] sm:$0xff]  ;;  %v3655_v49 = vld [vmem:[%s5492_s12 + $0x118] sm:$0x7f] }
  0x26   : > { %s812_s26 = scalar_lea.vmem %s5524_s5, %s4839_s27 }
  0x27   : > { %4341 = vmatpush3.bf16.msra.mxu0 %v4340_v52  ;;  %s816_s29 = scalar_lea.vmem %s5520_s2, %s4839_s27  ;;  %s5525_s2 = sld [smem:[#allocation9_spill]]  ;;  %v3621_v52 = vld [vmem:[%s5492_s12 + $0x80] sm:$0xff] }
  0x28   : > { %4342 = vmatprep.subr.bf16.mxu0 %v4617_v45  ;;  %v4852_v2 = vld [vmem:[%s816_s29] sm:$0xff]  ;;  %v4396_v54 = vpack.c.bf16 %v3622_v53, %v3621_v52  ;;  %v3643_v52 = vld [vmem:[%s5491_s11 + $0x28] sm:$0xff] }
  0x2b   : > { %4344 = vmatpush3.bf16.msra.mxu0 %v4343_v55  ;;  %v3623_v55 = vld [vmem:[%s5492_s12 + $0x90] sm:$0xff] }
  0x2c   : > { %4345 = vmatprep.subr.bf16.mxu0 %v4617_v45  ;;  %v4399_v57 = vpack.c.bf16 %v3624_v56, %v3623_v55  ;;  %v3663_v55 = vld [vmem:[%s5490_s10 + $0x68] sm:$0xff]  ;;  %v3664_v56 = vld [vmem:[%s5490_s10 + $0x70] sm:$0xff] }
  0x2d   : > { %s820_s29 = scalar_lea.vmem %s5525_s2, %s4839_s27  ;;  %s827_s27 = scalar_lea.vmem %s5502_s24, %s5528_s7 }
  0x2f   : > { %4347 = vmatpush3.bf16.msra.mxu0 %v4346_v58  ;;  %v3625_v58 = vld [vmem:[%s5492_s12 + $0xa0] sm:$0xff] }
  0x30   : > { %4348 = vmatprep.subr.bf16.mxu0 %v4617_v45  ;;  %v4402_v60 = vpack.c.bf16 %v3626_v59, %v3625_v58  ;;  %v3665_v58 = vld [vmem:[%s5490_s10 + $0x78] sm:$0xff] }
  0x31   : > { %v4446_v59 = vpack.c.bf16 %v3665_v58, %v3664_v56  ;;  %v3703_v56 = vld [vmem:[%s5492_s12 + $0x1a8] sm:$0xff]  ;;  %v3704_v58 = vld [vmem:[%s5492_s12 + $0x1b0] sm:$0xff] }
  0x33   : > { %4350 = vmatpush3.bf16.msra.mxu0 %v4349_v61  ;;  %v3627_v61 = vld [vmem:[%s5492_s12 + $0xb0] sm:$0xff] }
  0x34   : > { %4351 = vmatprep.subr.bf16.mxu0 %v4617_v45  ;;  %v4405_v63 = vpack.c.bf16 %v3628_v62, %v3627_v61  ;;  %v3666_v62 = vld [vmem:[%s5490_s10 + $0x80] sm:$0xff] }
  0x37   : > { %4354 = vmatpush3.bf16.msk.msra.mxu0 %vm4846_vm7, %v4352_v0  ;;  %v3615_v0 = vld [vmem:[%s5491_s11 + $0x10] sm:$0xff] }
  0x38   : > { %4355 = vmatprep.subr.bf16.mxu0 %v4617_v45  ;;  %v4409_v4 = vpack.c.bf16 %v3616_v3, %v3615_v0  ;;  %v3660_v3 = vld [vmem:[%s5493_s13 + $0x2] ss:$0 sm:$0xff] }
  0x3a   : > { %3974 = vmatmul.mubr.msk.f32.vlgmr.msra.gmra.mrb[2].mxu0 %vm1058_vm8, %v4852_v2 }
  0x3b   : > { %4357 = vmatpush3.bf16.msra.mxu0 %v4356_v5  ;;  %3980 = vmatprep.mubr.msk.f32.mxu0 %vm4618_vm4, %v4619_v46  ;;  %v1453_v5 = vld [vmem:[%s5490_s10 + $0x20] sm:$0xff] }
  0x3c   : > { %4380 = vmatprep.subr.bf16.mxu0 %v4617_v45 }
  0xf5   : > { %v3941_v12 = vpop.f32.mrb[0].mxu0 }
  0xf6   : > { %v924_v13 = vadd.f32 %v3941_v12, %v3602_v10  ;;  %v918_v14 = vpop.f32.mrb[1].mxu0  ;;  %v1211_v12 = vld [vmem:[%s5492_s12] sm:$0xff] }
  0xf7   : > { %v919_v15 = vadd.f32 %v3602_v10, %v918_v14 }
  0xf8   : > { %v930_v16 = vsel %vm928_vm1, %v924_v13, -1e+30  ;;  %v1212_v13 = vld [vmem:[%s5492_s12 + $0x8] sm:$0xff] }
  0xf9   : > { %v933_v17 = vsel %vm931_vm2, %v930_v16, -inf  ;;  %v929_v18 = vsel %vm927_vm3, %v919_v15, -1e+30  ;;  %v832_v15 = vld [vmem:[%s812_s26] sm:$0xff] }
  0xfa   : > { %v932_v19 = vsel %vm931_vm2, %v929_v18, -inf }
  0xfb   : > { %v934_v20 = vmax.f32 %v932_v19, %v933_v17  ;;  %v1216_v19 = vld [vmem:[%s5492_s12 + $0x28] sm:$0xff] }
  0xfd   : > { %v935_v21 = vrot.slane %v934_v20, 4 }
  0xff   : > { %v936_v22 = vmax.f32 %v934_v20, %v935_v21  ;;  %v1217_v21 = vld [vmem:[%s5492_s12 + $0x30] sm:$0xff] }
 0x101   : > { %v937_v23 = vrot.slane %v936_v22, 2 }
 0x103   : > { %v938_v24 = vmax.f32 %v936_v22, %v937_v23  ;;  %v1218_v22 = vld [vmem:[%s5492_s12 + $0x38] sm:$0xff] }
 0x104   : > { %v4368_v23 = vpack.c.bf16 %v1218_v22, %v1217_v21  ;;  %v3639_v21 = vld [vmem:[%s5490_s10 + $0x50] sm:$0xff]  ;;  %v3640_v22 = vld [vmem:[%s5490_s10 + $0x58] sm:$0xff] }
 0x105   : > { %v939_v25 = vrot.slane %v938_v24, 1 }
 0x107   : > { %v940_v26 = vmax.f32 %v938_v24, %v939_v25  ;;  %v1219_v24 = vld [vmem:[%s5492_s12 + $0x40] sm:$0xff]  ;;  %v1220_v25 = vld [vmem:[%s5492_s12 + $0x48] sm:$0xff] }
 0x109   : > { %v941_v27 = vsub.f32 %v929_v18, %v940_v26  ;;  %v942_v28 = vsub.f32 %v930_v16, %v940_v26  ;;  %v4359_v16 = vpack.c.bf16 %v1212_v13, %v1211_v12  ;;  %v1215_v18 = vld [vmem:[%s5492_s12 + $0x20] sm:$0xff]  ;;  %v4371_v26 = vpack.c.bf16 %v1220_v25, %v1219_v24 }
 0x10a   : > { %v4365_v20 = vpack.c.bf16 %v1216_v19, %v1215_v18  ;;  %v3633_v24 = vld [vmem:[%s5493_s13 + $0x1] ss:$0 sm:$0xff] }
 0x10b   : > { %v943_v29 = vmul.f32 1.442695, %v941_v27  ;;  %v945_v30 = vmul.f32 1.442695, %v942_v28  ;;  %v1221_v27 = vld [vmem:[%s5492_s12 + $0x50] sm:$0xff]  ;;  %v3644_v25 = vld [vmem:[%s5492_s12 + $0xc0] sm:$0xff] }
 0x10c   : > { %v1222_v28 = vld [vmem:[%s5492_s12 + $0x58] sm:$0x7f] }
 0x10d   : > { %4598 = vpow2.f32 %v943_v29  ;;  %v4374_v29 = vpack.c.bf16 %v1222_v28, %v1221_v27 }
 0x10e   : > { %4600 = vpow2.f32 %v945_v30  ;;  %v1209_v30 = vld [vmem:[%s5491_s11] sm:$0xff] }
 0x117   : > { %v4599_v31 = vpop.eup %4598 }
 0x118   : > { %v4601_v32 = vpop.eup %4600  ;;  %v947_v33 = vsel %vm931_vm2, %v4599_v31, 0.0 }
 0x119   : > { %v948_v34 = vsel %vm931_vm2, %v4601_v32, 0.0 }
 0x11a   : > { %v949_v35 = vadd.f32 %v948_v34, %v947_v33 }
 0x11c   : > { %v950_v36 = vrot.slane %v949_v35, 4 }
 0x11e   : > { %v951_v37 = vadd.f32 %v950_v36, %v949_v35  ;;  %v1449_v35 = vld [vmem:[%s5490_s10] sm:$0xff]  ;;  %v1450_v36 = vld [vmem:[%s5490_s10 + $0x8] sm:$0xff] }
 0x120   : > { %v952_v38 = vrot.slane %v951_v37, 2 }
 0x122   : > { %v953_v39 = vadd.f32 %v952_v38, %v951_v37  ;;  %v1451_v37 = vld [vmem:[%s5490_s10 + $0x10] sm:$0xff]  ;;  %v4381_v38 = vpack.c.bf16 %v1450_v36, %v1449_v35  ;;  %v3648_v36 = vld [vmem:[%s5492_s12 + $0xe0] sm:$0xff] }
 0x124   : > { %v954_v40 = vrot.slane %v953_v39, 1 }
 0x126   : > { %v955_v41 = vadd.f32 %v954_v40, %v953_v39  ;;  %v1452_v39 = vld [vmem:[%s5490_s10 + $0x18] sm:$0xff] }
 0x127   : > { %v4384_v40 = vpack.c.bf16 %v1452_v39, %v1451_v37  ;;  %v3649_v37 = vld [vmem:[%s5492_s12 + $0xe8] sm:$0xff]  ;;  %v3650_v39 = vld [vmem:[%s5492_s12 + $0xf0] sm:$0xff] }
 0x128   : > { %4602 = vrcp.f32 %v955_v41  ;;  %v3617_v41 = vld [vmem:[%s5492_s12 + $0x60] sm:$0xff] }
 0x132   : > { %v4603_v42 = vpop.eup %4602 }
 0x133   : > { %v957_v43 = vmul.f32 %v4603_v42, %v4599_v31  ;;  %v958_v44 = vmul.f32 %v4603_v42, %v4601_v32  ;;  %v1210_v31 = vld [vmem:[%s5491_s11 + $0x8] sm:$0xff] }
 0x134   : > { %v4378_v32 = vpack.c.bf16 %v1210_v31, %v1209_v30  ;;  %v3618_v42 = vld [vmem:[%s5492_s12 + $0x68] sm:$0xff] }
 0x135   : > { %961 = vperm.xlu0 %4597, %v957_v43   ;;  %v4965_v43 = vld [vmem:[%s820_s29] sm:$0xff] }
 0x139   : > { %966 = vperm.xlu0 %4597, %v958_v44   ;;  %v4390_v44 = vpack.c.bf16 %v3618_v42, %v3617_v41  ;;  %v3652_v42 = vld [vmem:[%s5492_s12 + $0x100] sm:$0xff] }
 0x1b4   : > { %v962_v8 = vpop.permute.xlu0 %961 }
 0x1b5   : > { %v969_v10 = vmul.f32 %v962_v8, %v4777_v6  ;;  %v1213_v6 = vld [vmem:[%s5492_s12 + $0x10] sm:$0xff]  ;;  %v1454_v8 = vld [vmem:[%s5490_s10 + $0x28] sm:$0xff] }
 0x1b8   : > { %v967_v9 = vpop.permute.xlu0 %966 }
 0x1b9   : > { %v970_v11 = vmul.f32 %v967_v9, %v4779_v7  ;;  %v1214_v7 = vld [vmem:[%s5492_s12 + $0x18] sm:$0xff]  ;;  %v4387_v9 = vpack.c.bf16 %v1454_v8, %v1453_v5  ;;  %v3672_v5 = vld [vmem:[%s5492_s12 + $0x128] sm:$0xff] }
 0x1ba   : > { %v4362_v17 = vpack.c.bf16 %v1214_v7, %v1213_v6  ;;  %v3637_v6 = vld [vmem:[%s5490_s10 + $0x40] sm:$0xff] }
 0x1bb   : > { %v4334_v14 = vpack.c.bf16 %v970_v11, %v969_v10  ;;  %v3612_v10 = vld [vmem:[%s5493_s13] ss:$0 sm:$0xff] }
 0x1bd   : > { %4335 = vmatpush3.bf16.msra.mxu1 %v4334_v14 }
 0x1be   : > { %4358 = vmatprep.subr.bf16.mxu1 %v4617_v45 }
 0x1c0   : > { %3947 = vmatmul.mubr.msk.f32.vlgmr.msra.gmra.mrb[0].mxu1 %vm845_vm0, %v832_v15  ;;  %v3635_v15 = vld [vmem:[%s5490_s10 + $0x30] sm:$0xff] }
 0x1c1   : > { %4360 = vmatpush3.bf16.msra.mxu1 %v4359_v16  ;;  %4007 = vmatprep.mubr.msk.f32.mxu1 %vm4618_vm4, %v4619_v46  ;;  %v3636_v16 = vld [vmem:[%s5490_s10 + $0x38] sm:$0xff] }
 0x1c2   : > { %4361 = vmatprep.subr.bf16.mxu1 %v4617_v45  ;;  %v4412_v7 = vpack.c.bf16 %v3636_v16, %v3635_v15  ;;  %v3675_v16 = vld [vmem:[%s5492_s12 + $0x140] sm:$0xff] }
 0x1c5   : > { %4363 = vmatpush3.bf16.msra.mxu1 %v4362_v17  ;;  %v3638_v17 = vld [vmem:[%s5490_s10 + $0x48] sm:$0xff] }
 0x1c6   : > { %4364 = vmatprep.subr.bf16.mxu1 %v4617_v45  ;;  %v4415_v18 = vpack.c.bf16 %v3638_v17, %v3637_v6  ;;  %v3676_v6 = vld [vmem:[%s5492_s12 + $0x148] sm:$0xff]  ;;  %v3677_v17 = vld [vmem:[%s5492_s12 + $0x150] sm:$0xff] }
 0x1c9   : > { %4366 = vmatpush3.bf16.msra.mxu1 %v4365_v20 }
 0x1ca   : > { %4367 = vmatprep.subr.bf16.mxu1 %v4617_v45 }
 0x1cd   : > { %4369 = vmatpush3.bf16.msra.mxu1 %v4368_v23  ;;  %v4418_v23 = vpack.c.bf16 %v3640_v22, %v3639_v21  ;;  %v3680_v21 = vld [vmem:[%s5492_s12 + $0x168] sm:$0xff] }
 0x1ce   : > { %4370 = vmatprep.subr.bf16.mxu1 %v4617_v45 }
 0x1d1   : > { %4372 = vmatpush3.bf16.msra.mxu1 %v4371_v26  ;;  %v3645_v26 = vld [vmem:[%s5492_s12 + $0xc8] sm:$0xff] }
 0x1d2   : > { %4373 = vmatprep.subr.bf16.mxu1 %v4617_v45  ;;  %v4421_v30 = vpack.c.bf16 %v3645_v26, %v3644_v25  ;;  %v3669_v26 = vld [vmem:[%s5491_s11 + $0x30] sm:$0xff] }
 0x1d5   : > { %4376 = vmatpush3.bf16.msk.msra.mxu1 %vm4846_vm7, %v4374_v29 }
 0x1d6   : > { %4377 = vmatprep.subr.bf16.mxu1 %v4617_v45 }
 0x1d8   : > { %4008 = vmatmul.mubr.msk.f32.vlgmr.msra.gmra.mrb[2].mxu1 %vm1058_vm8, %v4852_v2 }
 0x1d9   : > { %4379 = vmatpush3.bf16.msra.mxu1 %v4378_v32  ;;  %4014 = vmatprep.mubr.msk.f32.mxu1 %vm4618_vm4, %v4619_v46  ;;  %v3646_v32 = vld [vmem:[%s5492_s12 + $0xd0] sm:$0xff] }
 0x1da   : > { %4017 = vmatprep.subr.mxu1 %v4619_v46 }
 0x293   : > { %v4931_v33 = vpop.f32.mrb[0].mxu1 }
 0x294   : > { %v3948_v34 = vpop.f32.mrb[1].mxu1  ;;  %3981 = vmatmul.mubr.msk.f32.vlgmr.msra.gmra.mrb[2].mxu0 %vm845_vm0, %v4931_v33  ;;  %4015 = vmatmul.mubr.msk.f32.vlgmr.msra.gmra.mrb[2].mxu1 %vm845_vm0, %v4931_v33 }
 0x295   : > { %4019 = vmatprep.mubr.msk.f32.mxu1 %vm4618_vm4, %v4619_v46  ;;  %4034 = vmatprep.mubr.msk.f32.mxu0 %vm4618_vm4, %v4619_v46  ;;  %v3647_v34 = vld [vmem:[%s5492_s12 + $0xd8] sm:$0xff] }
 0x296   : > { %4382 = vmatpush3.bf16.msra.mxu0 %v4381_v38  ;;  %v4424_v35 = vpack.c.bf16 %v3647_v34, %v3646_v32  ;;  %v4427_v38 = vpack.c.bf16 %v3649_v37, %v3648_v36  ;;  %v3692_v34 = vld [vmem:[%s5490_s10 + $0xa8] sm:$0xff] }
 0x297   : > { %4383 = vmatprep.subr.bf16.mxu0 %v4617_v45 }
 0x29a   : > { %4385 = vmatpush3.bf16.msra.mxu0 %v4384_v40  ;;  %v3651_v40 = vld [vmem:[%s5492_s12 + $0xf8] sm:$0xff] }
 0x29b   : > { %4386 = vmatprep.subr.bf16.mxu0 %v4617_v45  ;;  %v4430_v41 = vpack.c.bf16 %v3651_v40, %v3650_v39  ;;  %v3694_v39 = vld [vmem:[%s5490_s10 + $0xb8] sm:$0xff] }
 0x29e   : > { %4388 = vmatpush3.bf16.msra.mxu0 %v4387_v9 }
 0x29f   : > { %4411 = vmatprep.subr.bf16.mxu0 %v4617_v45 }
 0x367   : > { %v1205_v47 = vpop.f32.mrb[2].mxu0 }
 0x368   : > { %v3982_v50 = vpop.f32.mrb[3].mxu0  ;;  %4018 = vmatpush3.msra.mxu1 %v1205_v47 }
 0x369   : > { %4020 = vmatmul.mubr.msk.f32.vlgmr.msra.gmra.mrb[2].mxu1 %vm1374_vm9, %v4965_v43  ;;  %4389 = vmatprep.subr.bf16.mxu1 %v4617_v45  ;;  %v4436_v50 = vpack.c.bf16 %v3655_v49, %v3654_v48 }
 0x36a   : > { %4391 = vmatpush3.bf16.msra.mxu1 %v4390_v44  ;;  %4061 = vmatprep.mubr.msk.f32.mxu1 %vm4618_vm4, %v4619_v46  ;;  %v3653_v44 = vld [vmem:[%s5492_s12 + $0x108] sm:$0xff] }
 0x36b   : > { %4392 = vmatprep.subr.bf16.mxu1 %v4617_v45  ;;  %v4433_v47 = vpack.c.bf16 %v3653_v44, %v3652_v42  ;;  %v3698_v42 = vld [vmem:[%s5492_s12 + $0x180] sm:$0xff]  ;;  %v3699_v44 = vld [vmem:[%s5492_s12 + $0x188] sm:$0xff] }
 0x36e   : > { %4394 = vmatpush3.bf16.msra.mxu1 %v4393_v51  ;;  %v3642_v51 = vld [vmem:[%s5491_s11 + $0x20] sm:$0xff] }
 0x36f   : > { %4395 = vmatprep.subr.bf16.mxu1 %v4617_v45  ;;  %v4440_v53 = vpack.c.bf16 %v3643_v52, %v3642_v51  ;;  %v3700_v52 = vld [vmem:[%s5492_s12 + $0x190] sm:$0xff] }
 0x372   : > { %4397 = vmatpush3.bf16.msra.mxu1 %v4396_v54  ;;  %v3662_v54 = vld [vmem:[%s5490_s10 + $0x60] sm:$0xff] }
 0x373   : > { %4398 = vmatprep.subr.bf16.mxu1 %v4617_v45 }
 0x376   : > { %4400 = vmatpush3.bf16.msra.mxu1 %v4399_v57  ;;  %v4443_v57 = vpack.c.bf16 %v3663_v55, %v3662_v54  ;;  %v3702_v55 = vld [vmem:[%s5492_s12 + $0x1a0] sm:$0xff] }
 0x377   : > { %4401 = vmatprep.subr.bf16.mxu1 %v4617_v45 }
 0x37a   : > { %4403 = vmatpush3.bf16.msra.mxu1 %v4402_v60 }
 0x37b   : > { %4404 = vmatprep.subr.bf16.mxu1 %v4617_v45 }
 0x37e   : > { %4407 = vmatpush3.bf16.msk.msra.mxu1 %vm4846_vm7, %v4405_v63  ;;  %v3667_v63 = vld [vmem:[%s5490_s10 + $0x88] sm:$0xff] }
 0x37f   : > { %4408 = vmatprep.subr.bf16.mxu1 %v4617_v45  ;;  %v4449_v0 = vpack.c.bf16 %v3667_v63, %v3666_v62  ;;  %v3707_v62 = vld [vmem:[%s5492_s12 + $0x1c8] sm:$0xff] }
 0x381   : > { %4062 = vmatmul.mubr.msk.f32.vlgmr.msra.gmra.mrb[4].mxu1 %vm1058_vm8, %v4852_v2 }
 0x382   : > { %4410 = vmatpush3.bf16.msra.mxu1 %v4409_v4  ;;  %4068 = vmatprep.mubr.msk.f32.mxu1 %vm4618_vm4, %v4619_v46  ;;  %v3671_v4 = vld [vmem:[%s5492_s12 + $0x120] sm:$0xff] }
 0x383   : > { %4071 = vmatprep.subr.mxu1 %v4619_v46 }
 0x389   : > { %4069 = vmatmul.mubr.msk.f32.vlgmr.msra.gmra.mrb[4].mxu1 %vm845_vm0, %v4931_v33 }
 0x38a   : > { %4073 = vmatprep.mubr.msk.f32.mxu1 %vm4618_vm4, %v4619_v46 }
 0x43c   : > { %v1444_v11 = vpop.f32.mrb[2].mxu1 }
 0x43d   : > { %v4550_v12 = vadd.f32 %v3612_v10, %v1444_v11  ;;  %v4021_v13 = vpop.f32.mrb[3].mxu1  ;;  %v4452_v11 = vpack.c.bf16 %v3672_v5, %v3671_v4  ;;  %v3696_v5 = vld [vmem:[%s5491_s11 + $0x40] sm:$0xff] }
 0x43e   : > { %v3673_v13 = vld [vmem:[%s5492_s12 + $0x130] sm:$0xff] }
 0x43f   : > { %v1448_v14 = vmax.f32 %v4550_v12, 0.0 }
 0x441   : > { %4035 = vmatmul.mubr.msk.f32.vlgmr.msra.gmra.mrb[4].mxu0 %vm1455_vm10, %v1448_v14  ;;  %v3674_v14 = vld [vmem:[%s5492_s12 + $0x138] sm:$0xff] }
 0x442   : > { %4088 = vmatprep.mubr.msk.f32.mxu0 %vm4618_vm4, %v4619_v46  ;;  %4413 = vmatpush3.bf16.msra.mxu0 %v4412_v7  ;;  %v4455_v15 = vpack.c.bf16 %v3674_v14, %v3673_v13  ;;  %v4458_v7 = vpack.c.bf16 %v3676_v6, %v3675_v16  ;;  %v3719_v14 = vld [vmem:[%s5490_s10 + $0xd8] sm:$0xff] }
 0x443   : > { %4414 = vmatprep.subr.bf16.mxu0 %v4617_v45 }
 0x446   : > { %4416 = vmatpush3.bf16.msra.mxu0 %v4415_v18  ;;  %v3678_v18 = vld [vmem:[%s5492_s12 + $0x158] sm:$0xff] }
 0x447   : > { %4417 = vmatprep.subr.bf16.mxu0 %v4617_v45 }
 0x44a   : > { %4419 = vmatpush3.bf16.msra.mxu0 %v4418_v23  ;;  %v3681_v23 = vld [vmem:[%s5492_s12 + $0x170] sm:$0xff] }
 0x44b   : > { %4420 = vmatprep.subr.bf16.mxu0 %v4617_v45 }
 0x514   : > { %v1525_v19 = vpop.f32.mrb[4].mxu0 }
 0x515   : > { %v4036_v20 = vpop.f32.mrb[5].mxu0  ;;  %4072 = vmatpush3.msra.mxu1 %v1525_v19  ;;  %v4461_v19 = vpack.c.bf16 %v3678_v18, %v3677_v17  ;;  %v3721_v17 = vld [vmem:[%s5490_s10 + $0xe8] sm:$0xff] }
 0x516   : > { %4074 = vmatmul.mubr.msk.f32.vlgmr.msra.gmra.mrb[4].mxu1 %vm1374_vm9, %v4965_v43  ;;  %4442 = vmatprep.subr.bf16.mxu1 %v4617_v45  ;;  %v3679_v20 = vld [vmem:[%s5492_s12 + $0x160] sm:$0xff] }
 0x517   : > { %4142 = vmatprep.mubr.msk.f32.mxu1 %vm4618_vm4, %v4619_v46  ;;  %4444 = vmatpush3.bf16.msra.mxu1 %v4443_v57  ;;  %v4464_v22 = vpack.c.bf16 %v3680_v21, %v3679_v20  ;;  %v4489_v57 = vpack.c.bf16 %v3703_v56, %v3702_v55  ;;  %v3725_v20 = vld [vmem:[%s5492_s12 + $0x1e0] sm:$0xff]  ;;  %v3726_v21 = vld [vmem:[%s5492_s12 + $0x1e8] sm:$0xff] }
 0x518   : > { %4445 = vmatprep.subr.bf16.mxu1 %v4617_v45 }
 0x51b   : > { %4447 = vmatpush3.bf16.msra.mxu1 %v4446_v59  ;;  %v3705_v59 = vld [vmem:[%s5492_s12 + $0x1b8] sm:$0xff] }
 0x51c   : > { %4448 = vmatprep.subr.bf16.mxu1 %v4617_v45 }
 0x51f   : > { %4450 = vmatpush3.bf16.msra.mxu1 %v4449_v0  ;;  %v3708_v0 = vld [vmem:[%s5492_s12 + $0x1d0] sm:$0xff] }
 0x520   : > { %4451 = vmatprep.subr.bf16.mxu1 %v4617_v45 }
 0x5e9   : > { %v1763_v27 = vpop.f32.mrb[4].mxu1 }
 0x5ea   : > { %v4551_v28 = vadd.f32 %v3633_v24, %v1763_v27  ;;  %v4075_v29 = vpop.f32.mrb[5].mxu1  ;;  %v3682_v24 = vld [vmem:[%s5492_s12 + $0x178] sm:$0x7f] }
 0x5eb   : > { %v4467_v25 = vpack.c.bf16 %v3682_v24, %v3681_v23  ;;  %v3670_v27 = vld [vmem:[%s5491_s11 + $0x38] sm:$0xff]  ;;  %v3689_v29 = vld [vmem:[%s5490_s10 + $0x90] sm:$0xff] }
 0x5ec   : > { %v1767_v31 = vmax.f32 %v4551_v28, 0.0  ;;  %v4471_v28 = vpack.c.bf16 %v3670_v27, %v3669_v26  ;;  %v3727_v27 = vld [vmem:[%s5492_s12 + $0x1f0] sm:$0xff] }
 0x5ee   : > { %4089 = vmatmul.mubr.msk.f32.vlgmr.msra.gmra.mrb[6].mxu0 %vm1455_vm10, %v1767_v31  ;;  %v3691_v31 = vld [vmem:[%s5490_s10 + $0xa0] sm:$0xff] }
 0x5ef   : > { %4422 = vmatpush3.bf16.msra.mxu0 %v4421_v30  ;;  %4115 = vmatprep.mubr.msk.f32.mxu0 %vm4618_vm4, %v4619_v46  ;;  %v3690_v30 = vld [vmem:[%s5490_s10 + $0x98] sm:$0xff] }
 0x5f0   : > { %4423 = vmatprep.subr.bf16.mxu0 %v4617_v45  ;;  %v4474_v32 = vpack.c.bf16 %v3690_v30, %v3689_v29  ;;  %v3729_v30 = vld [vmem:[%s5492_s12 + $0x200] sm:$0xff] }
 0x5f3   : > { %4425 = vmatpush3.bf16.msra.mxu0 %v4424_v35  ;;  %v4477_v35 = vpack.c.bf16 %v3692_v34, %v3691_v31  ;;  %v3730_v31 = vld [vmem:[%s5492_s12 + $0x208] sm:$0xff]  ;;  %v3731_v34 = vld [vmem:[%s5492_s12 + $0x210] sm:$0xff] }
 0x5f4   : > { %4426 = vmatprep.subr.bf16.mxu0 %v4617_v45 }
 0x5f7   : > { %4428 = vmatpush3.bf16.msra.mxu0 %v4427_v38  ;;  %v3693_v38 = vld [vmem:[%s5490_s10 + $0xb0] sm:$0xff] }
 0x5f8   : > { %4429 = vmatprep.subr.bf16.mxu0 %v4617_v45  ;;  %v4480_v40 = vpack.c.bf16 %v3694_v39, %v3693_v38  ;;  %v3734_v38 = vld [vmem:[%s5492_s12 + $0x228] sm:$0xff] }
 0x5fb   : > { %4431 = vmatpush3.bf16.msra.mxu0 %v4430_v41  ;;  %v3687_v41 = vld [vmem:[%s5493_s13 + $0x3] ss:$0 sm:$0xff] }
 0x5fc   : > { %4432 = vmatprep.subr.bf16.mxu0 %v4617_v45 }
 0x5ff   : > { %4434 = vmatpush3.bf16.msra.mxu0 %v4433_v47 }
 0x600   : > { %4435 = vmatprep.subr.bf16.mxu0 %v4617_v45 }
 0x603   : > { %4438 = vmatpush3.bf16.msk.msra.mxu0 %vm4846_vm7, %v4436_v50  ;;  %v4483_v50 = vpack.c.bf16 %v3699_v44, %v3698_v42  ;;  %v3723_v44 = vld [vmem:[%s5491_s11 + $0x50] sm:$0xff] }
 0x604   : > { %4439 = vmatprep.subr.bf16.mxu0 %v4617_v45 }
 0x606   : > { %4116 = vmatmul.mubr.msk.f32.vlgmr.msra.gmra.mrb[8].mxu0 %vm1058_vm8, %v4852_v2 }
 0x607   : > { %4441 = vmatpush3.bf16.msra.mxu0 %v4440_v53  ;;  %4122 = vmatprep.mubr.msk.f32.mxu0 %vm4618_vm4, %v4619_v46  ;;  %v3701_v53 = vld [vmem:[%s5492_s12 + $0x198] sm:$0xff] }
 0x608   : > { %4125 = vmatprep.subr.mxu0 %v4619_v46  ;;  %v4486_v54 = vpack.c.bf16 %v3701_v53, %v3700_v52 }
 0x60e   : > { %4123 = vmatmul.mubr.msk.f32.vlgmr.msra.gmra.mrb[8].mxu0 %vm845_vm0, %v4931_v33 }
 0x60f   : > { %4127 = vmatprep.mubr.msk.f32.mxu0 %vm4618_vm4, %v4619_v46 }
 0x6c1   : > { %v1844_v60 = vpop.f32.mrb[6].mxu0 }
 0x6c2   : > { %v4090_v61 = vpop.f32.mrb[7].mxu0  ;;  %4126 = vmatpush3.msra.mxu0 %v1844_v60  ;;  %v4492_v60 = vpack.c.bf16 %v3705_v59, %v3704_v58 }
 0x6c3   : > { %4128 = vmatmul.mubr.msk.f32.vlgmr.msra.gmra.mrb[8].mxu0 %vm1374_vm9, %v4965_v43  ;;  %4473 = vmatprep.subr.bf16.mxu0 %v4617_v45  ;;  %v3706_v61 = vld [vmem:[%s5492_s12 + $0x1c0] sm:$0xff] }
 0x6c4   : > { %4196 = vmatprep.mubr.msk.f32.mxu0 %vm4618_vm4, %v4619_v46  ;;  %4475 = vmatpush3.bf16.msra.mxu0 %v4474_v32  ;;  %v4495_v63 = vpack.c.bf16 %v3707_v62, %v3706_v61  ;;  %v4520_v32 = vpack.c.bf16 %v3730_v31, %v3729_v30  ;;  %v835_v61 = vld [vmem:[%s824_s6] sm:$0xff] }
 0x6c5   : > { %4476 = vmatprep.subr.bf16.mxu0 %v4617_v45  ;;  %v3743_v62 = vld [vmem:[#allocation3] ss:$0 sm:$0xff]  ;;  %vm3137_vm11 = vcmp.gt.f32.partialorder %v835_v61, 0.0 }
 0x6c8   : > { %4478 = vmatpush3.bf16.msra.mxu0 %v4477_v35  ;;  %v3732_v35 = vld [vmem:[%s5492_s12 + $0x218] sm:$0xff] }
 0x6c9   : > { %4479 = vmatprep.subr.bf16.mxu0 %v4617_v45 }
 0x6cc   : > { %4481 = vmatpush3.bf16.msra.mxu0 %v4480_v40  ;;  %v3735_v40 = vld [vmem:[%s5492_s12 + $0x230] sm:$0xff] }
 0x6cd   : > { %4482 = vmatprep.subr.bf16.mxu0 %v4617_v45 }
 0x796   : > { %v2082_v8 = vpop.f32.mrb[8].mxu0 }
 0x797   : > { %v4552_v9 = vadd.f32 %v3660_v3, %v2082_v8  ;;  %v4129_v10 = vpop.f32.mrb[9].mxu0  ;;  %v3709_v3 = vld [vmem:[%s5492_s12 + $0x1d8] sm:$0x7f]  ;;  %v3697_v8 = vld [vmem:[%s5491_s11 + $0x48] sm:$0xff] }
 0x798   : > { %v4498_v4 = vpack.c.bf16 %v3709_v3, %v3708_v0  ;;  %v3716_v10 = vld [vmem:[%s5490_s10 + $0xc0] sm:$0xff] }
 0x799   : > { %v2086_v12 = vmax.f32 %v4552_v9, 0.0  ;;  %v4502_v9 = vpack.c.bf16 %v3697_v8, %v3696_v5 }
 0x79b   : > { %4143 = vmatmul.mubr.msk.f32.vlgmr.msra.gmra.mrb[6].mxu1 %vm1455_vm10, %v2086_v12  ;;  %v3718_v12 = vld [vmem:[%s5490_s10 + $0xd0] sm:$0xff] }
 0x79c   : > { %4453 = vmatpush3.bf16.msra.mxu1 %v4452_v11  ;;  %4169 = vmatprep.mubr.msk.f32.mxu1 %vm4618_vm4, %v4619_v46  ;;  %v3717_v11 = vld [vmem:[%s5490_s10 + $0xc8] sm:$0xff] }
 0x79d   : > { %4454 = vmatprep.subr.bf16.mxu1 %v4617_v45  ;;  %v4505_v13 = vpack.c.bf16 %v3717_v11, %v3716_v10 }
 0x7a0   : > { %4456 = vmatpush3.bf16.msra.mxu1 %v4455_v15  ;;  %v4508_v15 = vpack.c.bf16 %v3719_v14, %v3718_v12 }
 0x7a1   : > { %4457 = vmatprep.subr.bf16.mxu1 %v4617_v45 }
 0x7a4   : > { %4459 = vmatpush3.bf16.msra.mxu1 %v4458_v7  ;;  %v3720_v7 = vld [vmem:[%s5490_s10 + $0xe0] sm:$0xff] }
 0x7a5   : > { %4460 = vmatprep.subr.bf16.mxu1 %v4617_v45  ;;  %v4511_v18 = vpack.c.bf16 %v3721_v17, %v3720_v7 }
 0x7a8   : > { %4462 = vmatpush3.bf16.msra.mxu1 %v4461_v19  ;;  %v3714_v19 = vld [vmem:[%s5493_s13 + $0x4] ss:$0 sm:$0xff] }
 0x7a9   : > { %4463 = vmatprep.subr.bf16.mxu1 %v4617_v45 }
 0x7ac   : > { %4465 = vmatpush3.bf16.msra.mxu1 %v4464_v22 }
 0x7ad   : > { %4466 = vmatprep.subr.bf16.mxu1 %v4617_v45 }
 0x7b0   : > { %4469 = vmatpush3.bf16.msk.msra.mxu1 %vm4846_vm7, %v4467_v25  ;;  %v4514_v25 = vpack.c.bf16 %v3726_v21, %v3725_v20 }
 0x7b1   : > { %4470 = vmatprep.subr.bf16.mxu1 %v4617_v45 }
 0x7b3   : > { %4170 = vmatmul.mubr.msk.f32.vlgmr.msra.gmra.mrb[8].mxu1 %vm1058_vm8, %v4852_v2 }
 0x7b4   : > { %4472 = vmatpush3.bf16.msra.mxu1 %v4471_v28  ;;  %4176 = vmatprep.mubr.msk.f32.mxu1 %vm4618_vm4, %v4619_v46  ;;  %v3728_v28 = vld [vmem:[%s5492_s12 + $0x1f8] sm:$0xff] }
 0x7b5   : > { %4179 = vmatprep.subr.mxu1 %v4619_v46  ;;  %v4517_v29 = vpack.c.bf16 %v3728_v28, %v3727_v27 }
 0x7bb   : > { %4177 = vmatmul.mubr.msk.f32.vlgmr.msra.gmra.mrb[8].mxu1 %vm845_vm0, %v4931_v33 }
 0x7bc   : > { %4181 = vmatprep.mubr.msk.f32.mxu1 %vm4618_vm4, %v4619_v46 }
 0x86e   : > { %v2163_v36 = vpop.f32.mrb[6].mxu1 }
 0x86f   : > { %v4144_v37 = vpop.f32.mrb[7].mxu1  ;;  %4180 = vmatpush3.msra.mxu1 %v2163_v36  ;;  %v4523_v36 = vpack.c.bf16 %v3732_v35, %v3731_v34  ;;  %v3248_v35 = vld [vmem:[%s5497_s18] sm:$0xff] }
 0x870   : > { %4182 = vmatmul.mubr.msk.f32.vlgmr.msra.gmra.mrb[8].mxu1 %vm1374_vm9, %v4965_v43  ;;  %4504 = vmatprep.subr.bf16.mxu1 %v4617_v45  ;;  %v3733_v37 = vld [vmem:[%s5492_s12 + $0x220] sm:$0xff] }
 0x871   : > { %4250 = vmatprep.mubr.msk.f32.mxu1 %vm4618_vm4, %v4619_v46  ;;  %4506 = vmatpush3.bf16.msra.mxu1 %v4505_v13  ;;  %v4526_v39 = vpack.c.bf16 %v3734_v38, %v3733_v37 }
 0x872   : > { %4507 = vmatprep.subr.bf16.mxu1 %v4617_v45 }
 0x875   : > { %4509 = vmatpush3.bf16.msra.mxu1 %v4508_v15 }
 0x876   : > { %4510 = vmatprep.subr.bf16.mxu1 %v4617_v45 }
 0x879   : > { %4512 = vmatpush3.bf16.msra.mxu1 %v4511_v18 }
 0x87a   : > { %4513 = vmatprep.subr.bf16.mxu1 %v4617_v45 }
 0x943   : > { %v2401_v47 = vpop.f32.mrb[8].mxu1 }
 0x944   : > { %v4553_v48 = vadd.f32 %v3687_v41, %v2401_v47  ;;  %v4183_v49 = vpop.f32.mrb[9].mxu1  ;;  %v3736_v41 = vld [vmem:[%s5492_s12 + $0x238] sm:$0x7f] }
 0x945   : > { %v4529_v42 = vpack.c.bf16 %v3736_v41, %v3735_v40  ;;  %v3724_v47 = vld [vmem:[%s5491_s11 + $0x58] sm:$0xff]  ;;  %v3250_v40 = vld [vmem:[%s5497_s18 + $0x10] sm:$0xff] }
 0x946   : > { %v2405_v51 = vmax.f32 %v4553_v48, 0.0  ;;  %v4533_v48 = vpack.c.bf16 %v3724_v47, %v3723_v44  ;;  %v3251_v41 = vld [vmem:[%s5497_s18 + $0x18] sm:$0xff]  ;;  %v3173_v44 = vld [vmem:[%s5496_s17] sm:$0x1] }
 0x948   : > { %4197 = vmatmul.mubr.msk.f32.vlgmr.msra.gmra.mrb[10].mxu0 %vm1455_vm10, %v2405_v51 }
 0x949   : > { %4484 = vmatpush3.bf16.msra.mxu0 %v4483_v50  ;;  %4223 = vmatprep.mubr.msk.f32.mxu0 %vm4618_vm4, %v4619_v46  ;;  %v3056_v50 = vld [vmem:[%s5494_s14 + $0x8] sm:$0xff] }
 0x94a   : > { %4485 = vmatprep.subr.bf16.mxu0 %v4617_v45 }
 0x94d   : > { %4487 = vmatpush3.bf16.msra.mxu0 %v4486_v54 }
 0x94e   : > { %4488 = vmatprep.subr.bf16.mxu0 %v4617_v45 }
 0x951   : > { %4490 = vmatpush3.bf16.msra.mxu0 %v4489_v57 }
 0x952   : > { %4491 = vmatprep.subr.bf16.mxu0 %v4617_v45 }
 0x955   : > { %4493 = vmatpush3.bf16.msra.mxu0 %v4492_v60 }
 0x956   : > { %4494 = vmatprep.subr.bf16.mxu0 %v4617_v45 }
 0x959   : > { %4496 = vmatpush3.bf16.msra.mxu0 %v4495_v63 }
 0x95a   : > { %4497 = vmatprep.subr.bf16.mxu0 %v4617_v45 }
 0x95d   : > { %4500 = vmatpush3.bf16.msk.msra.mxu0 %vm4846_vm7, %v4498_v4 }
 0x95e   : > { %4501 = vmatprep.subr.bf16.mxu0 %v4617_v45 }
 0x960   : > { %4224 = vmatmul.mubr.msk.f32.vlgmr.msra.gmra.mrb[12].mxu0 %vm1058_vm8, %v4852_v2 }
 0x961   : > { %4503 = vmatpush3.bf16.msra.mxu0 %v4502_v9  ;;  %4230 = vmatprep.mubr.msk.f32.mxu0 %vm4618_vm4, %v4619_v46 }
 0x962   : > { %4233 = vmatprep.subr.mxu0 %v4619_v46 }
 0x968   : > { %4231 = vmatmul.mubr.msk.f32.vlgmr.msra.gmra.mrb[12].mxu0 %vm845_vm0, %v4931_v33 }
 0x969   : > { %4235 = vmatprep.mubr.msk.f32.mxu0 %vm4618_vm4, %v4619_v46 }
 0xa1b   : > { %v2482_v16 = vpop.f32.mrb[10].mxu0 }
 0xa1c   : > { %v4198_v6 = vpop.f32.mrb[11].mxu0  ;;  %4234 = vmatpush3.msra.mxu0 %v2482_v16 }
 0xa1d   : > { %4236 = vmatmul.mubr.msk.f32.vlgmr.msra.gmra.mrb[12].mxu0 %vm1374_vm9, %v4965_v43  ;;  %4535 = vmatprep.subr.bf16.mxu0 %v4617_v45 }
 0xa1e   : > { %4296 = vmatprep.mubr.msk.f32.mxu0 %vm4618_vm4, %v4619_v46 }
 0xaf0   : > { %v2720_v22 = vpop.f32.mrb[12].mxu0 }
 0xaf1   : > { %v4554_v23 = vadd.f32 %v3714_v19, %v2720_v22  ;;  %v4237_v24 = vpop.f32.mrb[13].mxu0 }
 0xaf2   : > { %v3171_v24 = vld [vmem:[%s5495_s16] sm:$0xff] }
 0xaf3   : > { %v2724_v26 = vmax.f32 %v4554_v23, 0.0 }
 0xaf5   : > { %4251 = vmatmul.mubr.msk.f32.vlgmr.msra.gmra.mrb[10].mxu1 %vm1455_vm10, %v2724_v26 }
 0xaf6   : > { %4515 = vmatpush3.bf16.msra.mxu1 %v4514_v25  ;;  %4277 = vmatprep.mubr.msk.f32.mxu1 %vm4618_vm4, %v4619_v46  ;;  %v3172_v25 = vld [vmem:[%s5495_s16 + $0x8] sm:$0xff] }
 0xaf7   : > { %4516 = vmatprep.subr.bf16.mxu1 %v4617_v45  ;;  %v4539_v26 = vpack.c.bf16 %v3172_v25, %v3171_v24 }
 0xafa   : > { %4518 = vmatpush3.bf16.msra.mxu1 %v4517_v29 }
 0xafb   : > { %4519 = vmatprep.subr.bf16.mxu1 %v4617_v45 }
 0xafe   : > { %4521 = vmatpush3.bf16.msra.mxu1 %v4520_v32 }
 0xaff   : > { %4522 = vmatprep.subr.bf16.mxu1 %v4617_v45 }
 0xb02   : > { %4524 = vmatpush3.bf16.msra.mxu1 %v4523_v36  ;;  %v3249_v36 = vld [vmem:[%s5497_s18 + $0x8] sm:$0xff] }
 0xb03   : > { %4525 = vmatprep.subr.bf16.mxu1 %v4617_v45  ;;  %v4542_v38 = vpack.c.bf16 %v3249_v36, %v3248_v35 }
 0xb06   : > { %4527 = vmatpush3.bf16.msra.mxu1 %v4526_v39 }
 0xb07   : > { %4528 = vmatprep.subr.bf16.mxu1 %v4617_v45 }
 0xb0a   : > { %4531 = vmatpush3.bf16.msk.msra.mxu1 %vm4846_vm7, %v4529_v42  ;;  %v4545_v42 = vpack.c.bf16 %v3251_v41, %v3250_v40 }
 0xb0b   : > { %4532 = vmatprep.subr.bf16.mxu1 %v4617_v45 }
 0xb0d   : > { %4278 = vmatmul.mubr.msk.f32.vlgmr.msra.gmra.mrb[12].mxu1 %vm1058_vm8, %v4852_v2  ;;  %v3055_v2 = vld [vmem:[%s5494_s14] sm:$0xff] }
 0xb0e   : > { %4534 = vmatpush3.bf16.msra.mxu1 %v4533_v48  ;;  %4284 = vmatprep.mubr.msk.f32.mxu1 %vm4618_vm4, %v4619_v46  ;;  %v4536_v51 = vpack.c.bf16 %v3056_v50, %v3055_v2  ;;  %v3328_v2 = vld [vmem:[%s5499_s20] sm:$0xff] }
 0xb0f   : > { %4287 = vmatprep.subr.mxu1 %v4619_v46 }
 0xb10   : > { %4537 = vmatpush3.bf16.msra.mxu0 %v4536_v51 }
 0xb11   : > { %4538 = vmatprep.subr.bf16.mxu0 %v4617_v45 }
 0xb15   : > { %4285 = vmatmul.mubr.msk.f32.vlgmr.msra.gmra.mrb[12].mxu1 %vm845_vm0, %v4931_v33  ;;  %v3741_v33 = vld [vmem:[%s5493_s13 + $0x5] ss:$0 sm:$0xff] }
 0xb16   : > { %4289 = vmatprep.mubr.msk.f32.mxu1 %vm4618_vm4, %v4619_v46 }
 0xbc8   : > { %v2801_v1 = vpop.f32.mrb[10].mxu1 }
 0xbc9   : > { %v4252_v49 = vpop.f32.mrb[11].mxu1  ;;  %4288 = vmatpush3.msra.mxu1 %v2801_v1 }
 0xbca   : > { %4290 = vmatmul.mubr.msk.f32.vlgmr.msra.gmra.mrb[12].mxu1 %vm1374_vm9, %v4965_v43 }
 0xc9d   : > { %v3039_v52 = vpop.f32.mrb[12].mxu1 }
 0xc9e   : > { %v4555_v53 = vadd.f32 %v3741_v33, %v3039_v52  ;;  %v4291_v54 = vpop.f32.mrb[13].mxu1  ;;  %v3252_v33 = vld [vmem:[%s5498_s19] sm:$0x1] }
 0xca0   : > { %v3043_v43 = vmax.f32 %v4555_v53, 0.0 }
 0xca2   : > { %3045 = vrot.lane.b32.xlu1 %v3043_v43, %s4621_s4 }
 0xca6   : > { %3049 = vrot.lane.b32.xlu1 %v3043_v43, %s4622_s1 }
 0xd14   : > { %v3046_v55 = vpop.permute.xlu1 %3045 }
 0xd15   : > { %v3048_v56 = vadd.f32 %v3046_v55, %v3043_v43  ;;  %v3405_v43 = vld [vmem:[%s5501_s22] sm:$0xff] }
 0xd16   : > { %v3330_v55 = vld [vmem:[%s5500_s21] sm:$0x1] }
 0xd18   : > { %v3050_v57 = vpop.permute.xlu1 %3049 }
 0xd19   : > { %v3052_v58 = vadd.f32 %v3050_v57, %v3048_v56 }
 0xd1b   : > { %v3053_v59 = vmul.f32 0.33333334, %v3052_v58 }
 0xd1d   : > { %v3054_v60 = vmax.f32 %v3053_v59, 0.0 }
 0xd1f   : > { %4297 = vmatmul.mubr.msk.f32.vlgmr.msra.gmra.mrb[14].mxu0 %vm845_vm0, %v3054_v60 }
 0xd20   : > { %4303 = vmatprep.mubr.msk.f32.mxu0 %vm4618_vm4, %v4619_v46  ;;  %4540 = vmatpush3.bf16.msra.mxu0 %v4539_v26 }
 0xd21   : > { %4541 = vmatprep.subr.bf16.mxu0 %v4617_v45 }
 0xdf2   : > { %v3133_v63 = vpop.f32.mrb[14].mxu0 }
 0xdf3   : > { %v3134_v0 = vadd.f32 %v3743_v62, %v3133_v63  ;;  %v4298_v3 = vpop.f32.mrb[15].mxu0 }
 0xdf5   : > { %v3138_v4 = vsel %vm3137_vm11, %v3134_v0, -1e+30 }
 0xdf6   : > { %v3139_v5 = vsel %vm931_vm2, %v3138_v4, -inf }
 0xdf7   : > { %v3140_v8 = vrot.slane %v3139_v5, 4 }
 0xdf9   : > { %v3141_v9 = vmax.f32 %v3139_v5, %v3140_v8 }
 0xdfb   : > { %v3142_v10 = vrot.slane %v3141_v9, 2 }
 0xdfd   : > { %v3143_v11 = vmax.f32 %v3141_v9, %v3142_v10 }
 0xdff   : > { %v3144_v12 = vrot.slane %v3143_v11, 1 }
 0xe01   : > { %v3145_v13 = vmax.f32 %v3143_v11, %v3144_v12 }
 0xe03   : > { %v3146_v14 = vsub.f32 %v3138_v4, %v3145_v13 }
 0xe05   : > { %v3147_v15 = vmul.f32 1.442695, %v3146_v14 }
 0xe07   : > { %4604 = vpow2.f32 %v3147_v15 }
 0xe11   : > { %v4605_v16 = vpop.eup %4604 }
 0xe12   : > { %v3149_v6 = vsel %vm931_vm2, %v4605_v16, 0.0 }
 0xe13   : > { %v3150_v7 = vrot.slane %v3149_v6, 4 }
 0xe15   : > { %v3151_v17 = vadd.f32 %v3150_v7, %v3149_v6 }
 0xe17   : > { %v3152_v18 = vrot.slane %v3151_v17, 2 }
 0xe19   : > { %v3153_v19 = vadd.f32 %v3152_v18, %v3151_v17 }
 0xe1b   : > { %v3154_v20 = vrot.slane %v3153_v19, 1 }
 0xe1d   : > { %v3155_v21 = vadd.f32 %v3154_v20, %v3153_v19 }
 0xe1f   : > { %4606 = vrcp.f32 %v3155_v21 }
 0xe29   : > { %v4607_v22 = vpop.eup %4606 }
 0xe2a   : > { %v3157_v23 = vmul.f32 %v4607_v22, %v4605_v16 }
 0xe2c   : > { %3160 = vperm.xlu0 %4597, %v3157_v23  }
 0xeab   : > { %v3161_v27 = vpop.permute.xlu0 %3160 }
 0xeac   : > { %v3163_v28 = vmul.f32 %v3161_v27, %v3054_v60  ;;  %v3406_v60 = vld [vmem:[#allocation4] sm:$0x1] }
 0xeae   : > { %v3164_v29 = vsel %vm845_vm0, %v3163_v28, 0.0 }
 0xeaf   : > { %v3165_v30 = vrot.slane %v3164_v29, 4 }
 0xeb1   : > { %v3166_v31 = vadd.f32 %v3165_v30, %v3164_v29 }
 0xeb3   : > { %v3167_v32 = vrot.slane %v3166_v31, 2 }
 0xeb5   : > { %v3168_v34 = vadd.f32 %v3167_v32, %v3166_v31 }
 0xeb7   : > { %v3169_v37 = vrot.slane %v3168_v34, 1 }
 0xeb9   : > { %v3170_v39 = vadd.f32 %v3169_v37, %v3168_v34 }
 0xebb   : > { %4304 = vmatmul.mubr.msk.f32.vlgmr.msra.gmra.mrb[16].mxu0 %vm845_vm0, %v3170_v39 }
 0xebc   : > { %4543 = vmatpush3.bf16.msra.mxu0 %v4542_v38  ;;  %4314 = vmatprep.mubr.msk.f32.mxu0 %vm4618_vm4, %v4619_v46 }
 0xebd   : > { %4544 = vmatprep.subr.bf16.mxu0 %v4617_v45 }
 0xec0   : > { %4546 = vmatpush3.bf16.msra.mxu0 %v4545_v42 }
 0xec1   : > { %4547 = vmatprep.subr.bf16.mxu0 %v4617_v45  ;;  %v3329_v45 = vld [vmem:[%s5499_s20 + $0x8] sm:$0xff] }
 0xec2   : > { %v4548_v50 = vpack.c.bf16 %v3329_v45, %v3328_v2 }
 0xf8e   : > { %v3243_v47 = vpop.f32.mrb[16].mxu0 }
 0xf8f   : > { %v3244_v48 = vadd.f32 %v3243_v47, %v3173_v44  ;;  %v4305_v1 = vpop.f32.mrb[17].mxu0 }
 0xf91   : > { %v3247_v49 = vmax.f32 %v3244_v48, 0.0 }
 0xf93   : > { %4315 = vmatmul.mubr.msk.f32.vlgmr.msra.gmra.mrb[18].mxu0 %vm3253_vm12, %v3247_v49 }
 0xf94   : > { %4321 = vmatprep.mubr.msk.f32.mxu0 %vm4618_vm4, %v4619_v46  ;;  %4549 = vmatpush3.bf16.msra.mxu0 %v4548_v50 }
 0xf95   : > { %4324 = vmatprep.subr.mxu0 %v4619_v46 }
0x1066   : > { %v3323_v51 = vpop.f32.mrb[18].mxu0 }
0x1067   : > { %v3324_v52 = vadd.f32 %v3323_v51, %v3252_v33  ;;  %v4316_v53 = vpop.f32.mrb[19].mxu0 }
0x1069   : > { %v3327_v54 = vmax.f32 %v3324_v52, 0.0 }
0x106b   : > { %4322 = vmatmul.mubr.msk.f32.vlgmr.msra.gmra.mrb[20].mxu0 %vm845_vm0, %v3327_v54 }
0x106c   : > { %4326 = vmatprep.mubr.msk.f32.mxu0 %vm4618_vm4, %v4619_v46  ;;  %4325 = vmatpush3.msra.mxu0 %v3405_v43 }
0x113e   : > { %v3400_v56 = vpop.f32.mrb[20].mxu0 }
0x113f   : > { %v3401_v57 = vadd.f32 %v3400_v56, %v3330_v55  ;;  %v4323_v58 = vpop.f32.mrb[21].mxu0 }
0x1141   : > { %v3404_v59 = vmax.f32 %v3401_v57, 0.0 }
0x1143   : > { %4327 = vmatmul.mubr.msk.f32.vlgmr.msra.gmra.mrb[22].mxu0 %vm1374_vm9, %v3404_v59 }
0x1216   : > { %v3476_v46 = vpop.f32.mrb[22].mxu0 }
0x1217   : > { %v3477_v61 = vadd.f32 %v3476_v46, %v3406_v60  ;;  %v4328_v62 = vpop.f32.mrb[23].mxu0 }
0x1219   : > { %3481 = vst.msk [vmem:[%s827_s27] sm:$0x1] %vm3480_vm13, %v3477_v61 }
0x121a PF: > { %s40_s0 = sadd.s32 1, %s4614_s0  }
0x121b   : > { %p37_p4 = scmp.ge.s32.totalorder %s40_s0, 4  }
0x121d   :  { %39 = sbr.rel (!%p37_p4) target bundleno = 17 (0x11), region = 180 }

</bundles_post_ra>
